<compile_context>
chip_gen: v5e
topology: v5e:2x2
jax: 0.10.0
libtpu: 0.0.40
codegen_flags: <defaults>
</compile_context>

<pallas_src>
import functools

import jax
import jax.numpy as jnp
from jax.experimental import pallas as pl
from jax.experimental.pallas import tpu as pltpu

LANES = 128                      # TPU lane width; all matmul N dims padded to this
_VMEM_LIMIT = 32 * 1024 * 1024   # safe on v5e/v6e (128 MiB) and v7x (64 MiB) VMEM


def _round_up(x, m):
    return (x + m - 1) // m * m


# ----------------------------------------------------------------------------
# Pallas kernels
# ----------------------------------------------------------------------------
def _matmul_bias_kernel(x_ref, w_ref, b_ref, o_ref, *, apply_relu: bool):
    """One M-tile of o = act(x @ w + b); w/b are lane-padded to 128 columns."""
    acc = jnp.dot(x_ref[...], w_ref[...], preferred_element_type=jnp.float32)
    acc = acc + b_ref[...]                     # (1, N) broadcasts over rows
    if apply_relu:
        acc = jnp.maximum(acc, 0.0)
    o_ref[...] = acc.astype(o_ref.dtype)


def _fc_head_kernel(x_ref, w1_ref, b1_ref, w2_ref, b2_ref, w3_ref, b3_ref, o_ref):
    """Fused fc1->ReLU->fc2->ReLU->fc3; intermediates stay on-chip."""
    h = jnp.dot(x_ref[...], w1_ref[...], preferred_element_type=jnp.float32) + b1_ref[...]
    h = jnp.maximum(h, 0.0)
    h = jnp.dot(h, w2_ref[...], preferred_element_type=jnp.float32) + b2_ref[...]
    h = jnp.maximum(h, 0.0)
    h = jnp.dot(h, w3_ref[...], preferred_element_type=jnp.float32) + b3_ref[...]
    o_ref[...] = h.astype(o_ref.dtype)


def _max4_kernel(a_ref, b_ref, c_ref, d_ref, o_ref):
    """Elementwise max of the 4 strided views of a 2x2 max-pool window."""
    o_ref[...] = jnp.maximum(
        jnp.maximum(a_ref[...], b_ref[...]),
        jnp.maximum(c_ref[...], d_ref[...]),
    )


# ----------------------------------------------------------------------------
# Pallas-call wrappers (grid + BlockSpecs)
# ----------------------------------------------------------------------------
def _linear(x, w, b, *, relu: bool, tm: int = 1024):
    """x: (M, K), w: (K, 128), b: (1, 128) -> (M, 128), tiled & pipelined over M."""
    M, K = x.shape
    N = w.shape[1]
    Mp = _round_up(M, 8)
    if Mp != M:
        x = jnp.pad(x, ((0, Mp - M), (0, 0)))
    tm = min(tm, Mp)
    out = pl.pallas_call(
        functools.partial(_matmul_bias_kernel, apply_relu=relu),
        grid=(pl.cdiv(Mp, tm),),
        in_specs=[
            pl.BlockSpec((tm, K), lambda i: (i, 0)),
            pl.BlockSpec((K, N), lambda i: (0, 0)),
            pl.BlockSpec((1, N), lambda i: (0, 0)),
        ],
        out_specs=pl.BlockSpec((tm, N), lambda i: (i, 0)),
        out_shape=jax.ShapeDtypeStruct((Mp, N), jnp.float32),
        compiler_params=pltpu.CompilerParams(
            dimension_semantics=("parallel",),
            vmem_limit_bytes=_VMEM_LIMIT,
        ),
    )(x, w, b)
    return out[:M] if Mp != M else out


def _fc_head(x, p, *, tm: int = 1024):
    """Fused fc1/fc2/fc3 head. x: (B, 400) -> (B, 128) (first 10 cols valid)."""
    M, K = x.shape
    N = LANES
    Mp = _round_up(M, 8)
    if Mp != M:
        x = jnp.pad(x, ((0, Mp - M), (0, 0)))
    tm = min(tm, Mp)
    out = pl.pallas_call(
        _fc_head_kernel,
        grid=(pl.cdiv(Mp, tm),),
        in_specs=[
            pl.BlockSpec((tm, K), lambda i: (i, 0)),
            pl.BlockSpec((K, N), lambda i: (0, 0)),
            pl.BlockSpec((1, N), lambda i: (0, 0)),
            pl.BlockSpec((N, N), lambda i: (0, 0)),
            pl.BlockSpec((1, N), lambda i: (0, 0)),
            pl.BlockSpec((N, N), lambda i: (0, 0)),
            pl.BlockSpec((1, N), lambda i: (0, 0)),
        ],
        out_specs=pl.BlockSpec((tm, N), lambda i: (i, 0)),
        out_shape=jax.ShapeDtypeStruct((Mp, N), jnp.float32),
        compiler_params=pltpu.CompilerParams(
            dimension_semantics=("parallel",),
            vmem_limit_bytes=_VMEM_LIMIT,
        ),
    )(x, p["fc1_w"], p["fc1_b"], p["fc2_w"], p["fc2_b"], p["fc3_w"], p["fc3_b"])
    return out[:M] if Mp != M else out


def _maxpool2x2(x_nhwc, *, gb: int = 8):
    """2x2 max pool, stride 2, on an NHWC tensor with lane-dense C (=128)."""
    B, H, W, C = x_nhwc.shape
    OH, OW = H // 2, W // 2
    hw = OH * OW
    views = [
        x_nhwc[:, i::2, j::2, :].reshape(B, hw, C)
        for i in range(2)
        for j in range(2)
    ]
    gb = min(gb, B)
    spec = pl.BlockSpec((gb, hw, C), lambda i: (i, 0, 0))
    out = pl.pallas_call(
        _max4_kernel,
        grid=(pl.cdiv(B, gb),),
        in_specs=[spec, spec, spec, spec],
        out_specs=spec,
        out_shape=jax.ShapeDtypeStruct((B, hw, C), jnp.float32),
        compiler_params=pltpu.CompilerParams(
            dimension_semantics=("parallel",),
            vmem_limit_bytes=_VMEM_LIMIT,
        ),
    )(*views)
    return out.reshape(B, OH, OW, C)


# ----------------------------------------------------------------------------
# Conv-as-im2col glue
# ----------------------------------------------------------------------------
def _im2col(x_nhwc, k):
    """Extract all k x k patches (valid, stride 1) -> (B*OH*OW, k*k*C)."""
    B, H, W, C = x_nhwc.shape
    OH, OW = H - k + 1, W - k + 1
    patches = jnp.stack(
        [x_nhwc[:, i:i + OH, j:j + OW, :] for i in range(k) for j in range(k)],
        axis=3,
    )  # (B, OH, OW, k*k, C) — ordering (kh, kw, c)
    return patches.reshape(B * OH * OW, k * k * C), (B, OH, OW)


def _conv2d_relu(x_nhwc, w_col_padded, b_padded, k):
    """Valid conv (stride 1) + bias + ReLU via im2col + tiled Pallas matmul."""
    # TODO(synk): move im2col into the Pallas kernel (halo-row DMA + in-kernel
    # patch gather) to avoid materializing the patch matrix in HBM.
    cols, (B, OH, OW) = _im2col(x_nhwc, k)
    out = _linear(cols, w_col_padded, b_padded, relu=True)
    return out.reshape(B, OH, OW, w_col_padded.shape[1])   # C is lane-padded (128)


# ----------------------------------------------------------------------------
# Parameters (PyTorch-shaped init) + one-time layout prep
# ----------------------------------------------------------------------------
def init_params(key):
    ks = jax.random.split(key, 10)

    def u(k, shape, fan_in):
        bound = 1.0 / jnp.sqrt(jnp.float32(fan_in))
        return jax.random.uniform(k, shape, jnp.float32, -bound, bound)

    return {
        "conv1_w": u(ks[0], (6, 3, 5, 5), 3 * 5 * 5),
        "conv1_b": u(ks[1], (6,), 3 * 5 * 5),
        "conv2_w": u(ks[2], (16, 6, 5, 5), 6 * 5 * 5),
        "conv2_b": u(ks[3], (16,), 6 * 5 * 5),
        "fc1_w": u(ks[4], (120, 400), 400),   # PyTorch (out, in)
        "fc1_b": u(ks[5], (120,), 400),
        "fc2_w": u(ks[6], (84, 120), 120),
        "fc2_b": u(ks[7], (84,), 120),
        "fc3_w": u(ks[8], (10, 84), 84),
        "fc3_b": u(ks[9], (10,), 84),
    }


def _pad_to(a, shape):
    return jnp.pad(a, [(0, t - s) for t, s in zip(shape, a.shape)])


def prepare_params(params):
    """One-time layout prep (outside the jitted forward): transpose to (K, N)
    and zero-pad every matmul N (and inner FC K) up to 128 lanes."""
    # (OC, IC, KH, KW) -> (KH, KW, IC, OC) -> (KH*KW*IC, OC): matches im2col order
    w1 = jnp.transpose(params["conv1_w"], (2, 3, 1, 0)).reshape(5 * 5 * 3, 6)
    w2 = jnp.transpose(params["conv2_w"], (2, 3, 1, 0)).reshape(5 * 5 * 6, 16)
    return {
        "conv1_w": _pad_to(w1, (75, LANES)),
        "conv1_b": _pad_to(params["conv1_b"][None, :], (1, LANES)),
        "conv2_w": _pad_to(w2, (150, LANES)),
        "conv2_b": _pad_to(params["conv2_b"][None, :], (1, LANES)),
        "fc1_w": _pad_to(params["fc1_w"].T, (400, LANES)),        # (400,120)->(400,128)
        "fc1_b": _pad_to(params["fc1_b"][None, :], (1, LANES)),
        "fc2_w": _pad_to(params["fc2_w"].T, (LANES, LANES)),      # (120,84)->(128,128)
        "fc2_b": _pad_to(params["fc2_b"][None, :], (1, LANES)),
        "fc3_w": _pad_to(params["fc3_w"].T, (LANES, LANES)),      # (84,10)->(128,128)
        "fc3_b": _pad_to(params["fc3_b"][None, :], (1, LANES)),
    }


# ----------------------------------------------------------------------------
# Forward pass (matches torch Net.forward)
# ----------------------------------------------------------------------------
@jax.jit
def net_forward(prepped, x_nchw):
    B = x_nchw.shape[0]
    x = jnp.transpose(x_nchw, (0, 2, 3, 1)).astype(jnp.float32)       # NCHW -> NHWC
    x = _conv2d_relu(x, prepped["conv1_w"], prepped["conv1_b"], 5)    # (B,28,28,128)
    x = _maxpool2x2(x)[..., :6]                                       # (B,14,14,6)
    x = _conv2d_relu(x, prepped["conv2_w"], prepped["conv2_b"], 5)    # (B,10,10,128)
    x = _maxpool2x2(x)[..., :16]                                      # (B,5,5,16)
    # flatten in torch order: NHWC -> NCHW -> (B, 16*5*5)
    x = jnp.transpose(x, (0, 3, 1, 2)).reshape(B, 16 * 5 * 5)
    x = _fc_head(x, prepped)                                          # (B,128)
    return x[:, :10]                                                  # (B, 10)


if __name__ == "__main__":
    key = jax.random.PRNGKey(0)
    pkey, xkey = jax.random.split(key)
    params = init_params(pkey)
    prepped = prepare_params(params)          # layout prep happens once, outside jit
    # Module implies 3x32x32 inputs (16*5*5 after two conv+pool stages).
    x = jax.random.normal(xkey, (2, 3, 32, 32), jnp.float32)
    out = net_forward(prepped, x)
    jax.block_until_ready(out)
    assert out.shape == (2, 10) and out.dtype == jnp.float32
    print("KERNEL_OK")
</pallas_src>

<mosaic_0001>
module attributes {stable_mosaic.version = 11 : i64} {
  func.func @_matmul_bias_kernel(%arg0: i32, %arg1: memref<1024x75xf32, #tpu.memory_space<vmem>>, %arg2: memref<75x128xf32, #tpu.memory_space<vmem>>, %arg3: memref<1x128xf32, #tpu.memory_space<vmem>>, %arg4: memref<1024x128xf32, #tpu.memory_space<vmem>>) attributes {dimension_semantics = [#tpu.dimension_semantics<parallel>], iteration_bounds = array<i64: 2>, scalar_prefetch = 0 : i64, scratch_operands = 0 : i64, tpu.core_type = #tpu.core_type<tc>, window_params = [{transform_indices = @transform_0, window_bounds = array<i64: 1024, 75>}, {pipeline_mode = #tpu.pipeline_mode<synchronous>, transform_indices = @transform_1, window_bounds = array<i64: 75, 128>}, {pipeline_mode = #tpu.pipeline_mode<synchronous>, transform_indices = @transform_2, window_bounds = array<i64: 1, 128>}, {transform_indices = @transform_3, window_bounds = array<i64: 1024, 128>}]} {
    %c0 = arith.constant 0 : index
    %c0_0 = arith.constant 0 : index
    %0 = vector.load %arg1[%c0, %c0_0] : memref<1024x75xf32, #tpu.memory_space<vmem>>, vector<1024x75xf32>
    %c0_1 = arith.constant 0 : index
    %c0_2 = arith.constant 0 : index
    %1 = vector.load %arg2[%c0_1, %c0_2] : memref<75x128xf32, #tpu.memory_space<vmem>>, vector<75x128xf32>
    %cst = arith.constant dense<0.000000e+00> : vector<1024x128xf32>
    %2 = tpu.matmul %0, %1, %cst {dimension_numbers = #tpu.dot_dimension_numbers<[1], [0], [0], [1], [0, 0, 1, 1], [], []>} : vector<1024x75xf32>, vector<75x128xf32>, vector<1024x128xf32> -> vector<1024x128xf32>
    %c0_3 = arith.constant 0 : index
    %c0_4 = arith.constant 0 : index
    %3 = vector.load %arg3[%c0_3, %c0_4] : memref<1x128xf32, #tpu.memory_space<vmem>>, vector<1x128xf32>
    %4 = vector.broadcast %3 : vector<1x128xf32> to vector<1024x128xf32>
    %5 = arith.addf %2, %4 : vector<1024x128xf32>
    %cst_5 = arith.constant 0.000000e+00 : f32
    %6 = vector.broadcast %cst_5 : f32 to vector<1024x128xf32>
    %7 = arith.maximumf %5, %6 : vector<1024x128xf32>
    %c0_6 = arith.constant 0 : index
    %c0_7 = arith.constant 0 : index
    %8 = vector.load %arg4[%c0_6, %c0_7] : memref<1024x128xf32, #tpu.memory_space<vmem>>, vector<1024x128xf32>
    tpu.vector_store %arg4[%c0_6, %c0_7], %7 {strides = array<i32>} : memref<1024x128xf32, #tpu.memory_space<vmem>>, vector<1024x128xf32>,
    return
  }
  func.func @transform_0(%arg0: i32) -> (i32, i32) {
    %c0_i32 = arith.constant 0 : i32
    %c0_i32_0 = arith.constant 0 : i32
    return %arg0, %c0_i32 : i32, i32
  }
  func.func @transform_1(%arg0: i32) -> (i32, i32) {
    %c0_i32 = arith.constant 0 : i32
    %c0_i32_0 = arith.constant 0 : i32
    %c0_i32_1 = arith.constant 0 : i32
    return %c0_i32, %c0_i32_0 : i32, i32
  }
  func.func @transform_2(%arg0: i32) -> (i32, i32) {
    %c0_i32 = arith.constant 0 : i32
    %c0_i32_0 = arith.constant 0 : i32
    %c0_i32_1 = arith.constant 0 : i32
    return %c0_i32, %c0_i32_0 : i32, i32
  }
  func.func @transform_3(%arg0: i32) -> (i32, i32) {
    %c0_i32 = arith.constant 0 : i32
    %c0_i32_0 = arith.constant 0 : i32
    return %arg0, %c0_i32 : i32, i32
  }
}

module attributes {stable_mosaic.version = 11 : i64} {
  func.func @_max4_kernel(%arg0: i32, %arg1: memref<2x196x128xf32, #tpu.memory_space<vmem>>, %arg2: memref<2x196x128xf32, #tpu.memory_space<vmem>>, %arg3: memref<2x196x128xf32, #tpu.memory_space<vmem>>, %arg4: memref<2x196x128xf32, #tpu.memory_space<vmem>>, %arg5: memref<2x196x128xf32, #tpu.memory_space<vmem>>) attributes {dimension_semantics = [#tpu.dimension_semantics<parallel>], iteration_bounds = array<i64: 1>, scalar_prefetch = 0 : i64, scratch_operands = 0 : i64, tpu.core_type = #tpu.core_type<tc>, window_params = [{transform_indices = @transform_0, window_bounds = array<i64: 2, 196, 128>}, {transform_indices = @transform_1, window_bounds = array<i64: 2, 196, 128>}, {transform_indices = @transform_2, window_bounds = array<i64: 2, 196, 128>}, {transform_indices = @transform_3, window_bounds = array<i64: 2, 196, 128>}, {transform_indices = @transform_4, window_bounds = array<i64: 2, 196, 128>}]} {
    %c0 = arith.constant 0 : index
    %c0_0 = arith.constant 0 : index
    %c0_1 = arith.constant 0 : index
    %0 = vector.load %arg1[%c0, %c0_0, %c0_1] : memref<2x196x128xf32, #tpu.memory_space<vmem>>, vector<2x196x128xf32>
    %c0_2 = arith.constant 0 : index
    %c0_3 = arith.constant 0 : index
    %c0_4 = arith.constant 0 : index
    %1 = vector.load %arg2[%c0_2, %c0_3, %c0_4] : memref<2x196x128xf32, #tpu.memory_space<vmem>>, vector<2x196x128xf32>
    %2 = arith.maximumf %0, %1 : vector<2x196x128xf32>
    %c0_5 = arith.constant 0 : index
    %c0_6 = arith.constant 0 : index
    %c0_7 = arith.constant 0 : index
    %3 = vector.load %arg3[%c0_5, %c0_6, %c0_7] : memref<2x196x128xf32, #tpu.memory_space<vmem>>, vector<2x196x128xf32>
    %c0_8 = arith.constant 0 : index
    %c0_9 = arith.constant 0 : index
    %c0_10 = arith.constant 0 : index
    %4 = vector.load %arg4[%c0_8, %c0_9, %c0_10] : memref<2x196x128xf32, #tpu.memory_space<vmem>>, vector<2x196x128xf32>
    %5 = arith.maximumf %3, %4 : vector<2x196x128xf32>
    %6 = arith.maximumf %2, %5 : vector<2x196x128xf32>
    %c0_11 = arith.constant 0 : index
    %c0_12 = arith.constant 0 : index
    %c0_13 = arith.constant 0 : index
    %7 = vector.load %arg5[%c0_11, %c0_12, %c0_13] : memref<2x196x128xf32, #tpu.memory_space<vmem>>, vector<2x196x128xf32>
    tpu.vector_store %arg5[%c0_11, %c0_12, %c0_13], %6 {strides = array<i32>} : memref<2x196x128xf32, #tpu.memory_space<vmem>>, vector<2x196x128xf32>,
    return
  }
  func.func @transform_0(%arg0: i32) -> (i32, i32, i32) {
    %c0_i32 = arith.constant 0 : i32
    %c0_i32_0 = arith.constant 0 : i32
    %c0_i32_1 = arith.constant 0 : i32
    return %arg0, %c0_i32, %c0_i32_0 : i32, i32, i32
  }
  func.func @transform_1(%arg0: i32) -> (i32, i32, i32) {
    %c0_i32 = arith.constant 0 : i32
    %c0_i32_0 = arith.constant 0 : i32
    %c0_i32_1 = arith.constant 0 : i32
    return %arg0, %c0_i32, %c0_i32_0 : i32, i32, i32
  }
  func.func @transform_2(%arg0: i32) -> (i32, i32, i32) {
    %c0_i32 = arith.constant 0 : i32
    %c0_i32_0 = arith.constant 0 : i32
    %c0_i32_1 = arith.constant 0 : i32
    return %arg0, %c0_i32, %c0_i32_0 : i32, i32, i32
  }
  func.func @transform_3(%arg0: i32) -> (i32, i32, i32) {
    %c0_i32 = arith.constant 0 : i32
    %c0_i32_0 = arith.constant 0 : i32
    %c0_i32_1 = arith.constant 0 : i32
    return %arg0, %c0_i32, %c0_i32_0 : i32, i32, i32
  }
  func.func @transform_4(%arg0: i32) -> (i32, i32, i32) {
    %c0_i32 = arith.constant 0 : i32
    %c0_i32_0 = arith.constant 0 : i32
    %c0_i32_1 = arith.constant 0 : i32
    return %arg0, %c0_i32, %c0_i32_0 : i32, i32, i32
  }
}

module attributes {stable_mosaic.version = 11 : i64} {
  func.func @_matmul_bias_kernel(%arg0: i32, %arg1: memref<200x150xf32, #tpu.memory_space<vmem>>, %arg2: memref<150x128xf32, #tpu.memory_space<vmem>>, %arg3: memref<1x128xf32, #tpu.memory_space<vmem>>, %arg4: memref<200x128xf32, #tpu.memory_space<vmem>>) attributes {dimension_semantics = [#tpu.dimension_semantics<parallel>], iteration_bounds = array<i64: 1>, scalar_prefetch = 0 : i64, scratch_operands = 0 : i64, tpu.core_type = #tpu.core_type<tc>, window_params = [{transform_indices = @transform_0, window_bounds = array<i64: 200, 150>}, {pipeline_mode = #tpu.pipeline_mode<synchronous>, transform_indices = @transform_1, window_bounds = array<i64: 150, 128>}, {pipeline_mode = #tpu.pipeline_mode<synchronous>, transform_indices = @transform_2, window_bounds = array<i64: 1, 128>}, {transform_indices = @transform_3, window_bounds = array<i64: 200, 128>}]} {
    %c0 = arith.constant 0 : index
    %c0_0 = arith.constant 0 : index
    %0 = vector.load %arg1[%c0, %c0_0] : memref<200x150xf32, #tpu.memory_space<vmem>>, vector<200x150xf32>
    %c0_1 = arith.constant 0 : index
    %c0_2 = arith.constant 0 : index
    %1 = vector.load %arg2[%c0_1, %c0_2] : memref<150x128xf32, #tpu.memory_space<vmem>>, vector<150x128xf32>
    %cst = arith.constant dense<0.000000e+00> : vector<200x128xf32>
    %2 = tpu.matmul %0, %1, %cst {dimension_numbers = #tpu.dot_dimension_numbers<[1], [0], [0], [1], [0, 0, 1, 1], [], []>} : vector<200x150xf32>, vector<150x128xf32>, vector<200x128xf32> -> vector<200x128xf32>
    %c0_3 = arith.constant 0 : index
    %c0_4 = arith.constant 0 : index
    %3 = vector.load %arg3[%c0_3, %c0_4] : memref<1x128xf32, #tpu.memory_space<vmem>>, vector<1x128xf32>
    %4 = vector.broadcast %3 : vector<1x128xf32> to vector<200x128xf32>
    %5 = arith.addf %2, %4 : vector<200x128xf32>
    %cst_5 = arith.constant 0.000000e+00 : f32
    %6 = vector.broadcast %cst_5 : f32 to vector<200x128xf32>
    %7 = arith.maximumf %5, %6 : vector<200x128xf32>
    %c0_6 = arith.constant 0 : index
    %c0_7 = arith.constant 0 : index
    %8 = vector.load %arg4[%c0_6, %c0_7] : memref<200x128xf32, #tpu.memory_space<vmem>>, vector<200x128xf32>
    tpu.vector_store %arg4[%c0_6, %c0_7], %7 {strides = array<i32>} : memref<200x128xf32, #tpu.memory_space<vmem>>, vector<200x128xf32>,
    return
  }
  func.func @transform_0(%arg0: i32) -> (i32, i32) {
    %c0_i32 = arith.constant 0 : i32
    %c0_i32_0 = arith.constant 0 : i32
    return %arg0, %c0_i32 : i32, i32
  }
  func.func @transform_1(%arg0: i32) -> (i32, i32) {
    %c0_i32 = arith.constant 0 : i32
    %c0_i32_0 = arith.constant 0 : i32
    %c0_i32_1 = arith.constant 0 : i32
    return %c0_i32, %c0_i32_0 : i32, i32
  }
  func.func @transform_2(%arg0: i32) -> (i32, i32) {
    %c0_i32 = arith.constant 0 : i32
    %c0_i32_0 = arith.constant 0 : i32
    %c0_i32_1 = arith.constant 0 : i32
    return %c0_i32, %c0_i32_0 : i32, i32
  }
  func.func @transform_3(%arg0: i32) -> (i32, i32) {
    %c0_i32 = arith.constant 0 : i32
    %c0_i32_0 = arith.constant 0 : i32
    return %arg0, %c0_i32 : i32, i32
  }
}

module attributes {stable_mosaic.version = 11 : i64} {
  func.func @_max4_kernel(%arg0: i32, %arg1: memref<2x25x128xf32, #tpu.memory_space<vmem>>, %arg2: memref<2x25x128xf32, #tpu.memory_space<vmem>>, %arg3: memref<2x25x128xf32, #tpu.memory_space<vmem>>, %arg4: memref<2x25x128xf32, #tpu.memory_space<vmem>>, %arg5: memref<2x25x128xf32, #tpu.memory_space<vmem>>) attributes {dimension_semantics = [#tpu.dimension_semantics<parallel>], iteration_bounds = array<i64: 1>, scalar_prefetch = 0 : i64, scratch_operands = 0 : i64, tpu.core_type = #tpu.core_type<tc>, window_params = [{transform_indices = @transform_0, window_bounds = array<i64: 2, 25, 128>}, {transform_indices = @transform_1, window_bounds = array<i64: 2, 25, 128>}, {transform_indices = @transform_2, window_bounds = array<i64: 2, 25, 128>}, {transform_indices = @transform_3, window_bounds = array<i64: 2, 25, 128>}, {transform_indices = @transform_4, window_bounds = array<i64: 2, 25, 128>}]} {
    %c0 = arith.constant 0 : index
    %c0_0 = arith.constant 0 : index
    %c0_1 = arith.constant 0 : index
    %0 = vector.load %arg1[%c0, %c0_0, %c0_1] : memref<2x25x128xf32, #tpu.memory_space<vmem>>, vector<2x25x128xf32>
    %c0_2 = arith.constant 0 : index
    %c0_3 = arith.constant 0 : index
    %c0_4 = arith.constant 0 : index
    %1 = vector.load %arg2[%c0_2, %c0_3, %c0_4] : memref<2x25x128xf32, #tpu.memory_space<vmem>>, vector<2x25x128xf32>
    %2 = arith.maximumf %0, %1 : vector<2x25x128xf32>
    %c0_5 = arith.constant 0 : index
    %c0_6 = arith.constant 0 : index
    %c0_7 = arith.constant 0 : index
    %3 = vector.load %arg3[%c0_5, %c0_6, %c0_7] : memref<2x25x128xf32, #tpu.memory_space<vmem>>, vector<2x25x128xf32>
    %c0_8 = arith.constant 0 : index
    %c0_9 = arith.constant 0 : index
    %c0_10 = arith.constant 0 : index
    %4 = vector.load %arg4[%c0_8, %c0_9, %c0_10] : memref<2x25x128xf32, #tpu.memory_space<vmem>>, vector<2x25x128xf32>
    %5 = arith.maximumf %3, %4 : vector<2x25x128xf32>
    %6 = arith.maximumf %2, %5 : vector<2x25x128xf32>
    %c0_11 = arith.constant 0 : index
    %c0_12 = arith.constant 0 : index
    %c0_13 = arith.constant 0 : index
    %7 = vector.load %arg5[%c0_11, %c0_12, %c0_13] : memref<2x25x128xf32, #tpu.memory_space<vmem>>, vector<2x25x128xf32>
    tpu.vector_store %arg5[%c0_11, %c0_12, %c0_13], %6 {strides = array<i32>} : memref<2x25x128xf32, #tpu.memory_space<vmem>>, vector<2x25x128xf32>,
    return
  }
  func.func @transform_0(%arg0: i32) -> (i32, i32, i32) {
    %c0_i32 = arith.constant 0 : i32
    %c0_i32_0 = arith.constant 0 : i32
    %c0_i32_1 = arith.constant 0 : i32
    return %arg0, %c0_i32, %c0_i32_0 : i32, i32, i32
  }
  func.func @transform_1(%arg0: i32) -> (i32, i32, i32) {
    %c0_i32 = arith.constant 0 : i32
    %c0_i32_0 = arith.constant 0 : i32
    %c0_i32_1 = arith.constant 0 : i32
    return %arg0, %c0_i32, %c0_i32_0 : i32, i32, i32
  }
  func.func @transform_2(%arg0: i32) -> (i32, i32, i32) {
    %c0_i32 = arith.constant 0 : i32
    %c0_i32_0 = arith.constant 0 : i32
    %c0_i32_1 = arith.constant 0 : i32
    return %arg0, %c0_i32, %c0_i32_0 : i32, i32, i32
  }
  func.func @transform_3(%arg0: i32) -> (i32, i32, i32) {
    %c0_i32 = arith.constant 0 : i32
    %c0_i32_0 = arith.constant 0 : i32
    %c0_i32_1 = arith.constant 0 : i32
    return %arg0, %c0_i32, %c0_i32_0 : i32, i32, i32
  }
  func.func @transform_4(%arg0: i32) -> (i32, i32, i32) {
    %c0_i32 = arith.constant 0 : i32
    %c0_i32_0 = arith.constant 0 : i32
    %c0_i32_1 = arith.constant 0 : i32
    return %arg0, %c0_i32, %c0_i32_0 : i32, i32, i32
  }
}

module attributes {stable_mosaic.version = 11 : i64} {
  func.func @_fc_head_kernel(%arg0: i32, %arg1: memref<8x400xf32, #tpu.memory_space<vmem>>, %arg2: memref<400x128xf32, #tpu.memory_space<vmem>>, %arg3: memref<1x128xf32, #tpu.memory_space<vmem>>, %arg4: memref<128x128xf32, #tpu.memory_space<vmem>>, %arg5: memref<1x128xf32, #tpu.memory_space<vmem>>, %arg6: memref<128x128xf32, #tpu.memory_space<vmem>>, %arg7: memref<1x128xf32, #tpu.memory_space<vmem>>, %arg8: memref<8x128xf32, #tpu.memory_space<vmem>>) attributes {dimension_semantics = [#tpu.dimension_semantics<parallel>], iteration_bounds = array<i64: 1>, scalar_prefetch = 0 : i64, scratch_operands = 0 : i64, tpu.core_type = #tpu.core_type<tc>, window_params = [{transform_indices = @transform_0, window_bounds = array<i64: 8, 400>}, {pipeline_mode = #tpu.pipeline_mode<synchronous>, transform_indices = @transform_1, window_bounds = array<i64: 400, 128>}, {pipeline_mode = #tpu.pipeline_mode<synchronous>, transform_indices = @transform_2, window_bounds = array<i64: 1, 128>}, {pipeline_mode = #tpu.pipeline_mode<synchronous>, transform_indices = @transform_3, window_bounds = array<i64: 128, 128>}, {pipeline_mode = #tpu.pipeline_mode<synchronous>, transform_indices = @transform_4, window_bounds = array<i64: 1, 128>}, {pipeline_mode = #tpu.pipeline_mode<synchronous>, transform_indices = @transform_5, window_bounds = array<i64: 128, 128>}, {pipeline_mode = #tpu.pipeline_mode<synchronous>, transform_indices = @transform_6, window_bounds = array<i64: 1, 128>}, {transform_indices = @transform_7, window_bounds = array<i64: 8, 128>}]} {
    %c0 = arith.constant 0 : index
    %c0_0 = arith.constant 0 : index
    %0 = vector.load %arg1[%c0, %c0_0] : memref<8x400xf32, #tpu.memory_space<vmem>>, vector<8x400xf32>
    %c0_1 = arith.constant 0 : index
    %c0_2 = arith.constant 0 : index
    %1 = vector.load %arg2[%c0_1, %c0_2] : memref<400x128xf32, #tpu.memory_space<vmem>>, vector<400x128xf32>
    %cst = arith.constant dense<0.000000e+00> : vector<8x128xf32>
    %2 = tpu.matmul %0, %1, %cst {dimension_numbers = #tpu.dot_dimension_numbers<[1], [0], [0], [1], [0, 0, 1, 1], [], []>} : vector<8x400xf32>, vector<400x128xf32>, vector<8x128xf32> -> vector<8x128xf32>
    %c0_3 = arith.constant 0 : index
    %c0_4 = arith.constant 0 : index
    %3 = vector.load %arg3[%c0_3, %c0_4] : memref<1x128xf32, #tpu.memory_space<vmem>>, vector<1x128xf32>
    %4 = vector.broadcast %3 : vector<1x128xf32> to vector<8x128xf32>
    %5 = arith.addf %2, %4 : vector<8x128xf32>
    %cst_5 = arith.constant 0.000000e+00 : f32
    %6 = vector.broadcast %cst_5 : f32 to vector<8x128xf32>
    %7 = arith.maximumf %5, %6 : vector<8x128xf32>
    %c0_6 = arith.constant 0 : index
    %c0_7 = arith.constant 0 : index
    %8 = vector.load %arg4[%c0_6, %c0_7] : memref<128x128xf32, #tpu.memory_space<vmem>>, vector<128x128xf32>
    %cst_8 = arith.constant dense<0.000000e+00> : vector<8x128xf32>
    %9 = tpu.matmul %7, %8, %cst_8 {dimension_numbers = #tpu.dot_dimension_numbers<[1], [0], [0], [1], [0, 0, 1, 1], [], []>} : vector<8x128xf32>, vector<128x128xf32>, vector<8x128xf32> -> vector<8x128xf32>
    %c0_9 = arith.constant 0 : index
    %c0_10 = arith.constant 0 : index
    %10 = vector.load %arg5[%c0_9, %c0_10] : memref<1x128xf32, #tpu.memory_space<vmem>>, vector<1x128xf32>
    %11 = vector.broadcast %10 : vector<1x128xf32> to vector<8x128xf32>
    %12 = arith.addf %9, %11 : vector<8x128xf32>
    %cst_11 = arith.constant 0.000000e+00 : f32
    %13 = vector.broadcast %cst_11 : f32 to vector<8x128xf32>
    %14 = arith.maximumf %12, %13 : vector<8x128xf32>
    %c0_12 = arith.constant 0 : index
    %c0_13 = arith.constant 0 : index
    %15 = vector.load %arg6[%c0_12, %c0_13] : memref<128x128xf32, #tpu.memory_space<vmem>>, vector<128x128xf32>
    %cst_14 = arith.constant dense<0.000000e+00> : vector<8x128xf32>
    %16 = tpu.matmul %14, %15, %cst_14 {dimension_numbers = #tpu.dot_dimension_numbers<[1], [0], [0], [1], [0, 0, 1, 1], [], []>} : vector<8x128xf32>, vector<128x128xf32>, vector<8x128xf32> -> vector<8x128xf32>
    %c0_15 = arith.constant 0 : index
    %c0_16 = arith.constant 0 : index
    %17 = vector.load %arg7[%c0_15, %c0_16] : memref<1x128xf32, #tpu.memory_space<vmem>>, vector<1x128xf32>
    %18 = vector.broadcast %17 : vector<1x128xf32> to vector<8x128xf32>
    %19 = arith.addf %16, %18 : vector<8x128xf32>
    %c0_17 = arith.constant 0 : index
    %c0_18 = arith.constant 0 : index
    %20 = vector.load %arg8[%c0_17, %c0_18] : memref<8x128xf32, #tpu.memory_space<vmem>>, vector<8x128xf32>
    tpu.vector_store %arg8[%c0_17, %c0_18], %19 {strides = array<i32>} : memref<8x128xf32, #tpu.memory_space<vmem>>, vector<8x128xf32>,
    return
  }
  func.func @transform_0(%arg0: i32) -> (i32, i32) {
    %c0_i32 = arith.constant 0 : i32
    %c0_i32_0 = arith.constant 0 : i32
    return %arg0, %c0_i32 : i32, i32
  }
  func.func @transform_1(%arg0: i32) -> (i32, i32) {
    %c0_i32 = arith.constant 0 : i32
    %c0_i32_0 = arith.constant 0 : i32
    %c0_i32_1 = arith.constant 0 : i32
    return %c0_i32, %c0_i32_0 : i32, i32
  }
  func.func @transform_2(%arg0: i32) -> (i32, i32) {
    %c0_i32 = arith.constant 0 : i32
    %c0_i32_0 = arith.constant 0 : i32
    %c0_i32_1 = arith.constant 0 : i32
    return %c0_i32, %c0_i32_0 : i32, i32
  }
  func.func @transform_3(%arg0: i32) -> (i32, i32) {
    %c0_i32 = arith.constant 0 : i32
    %c0_i32_0 = arith.constant 0 : i32
    %c0_i32_1 = arith.constant 0 : i32
    return %c0_i32, %c0_i32_0 : i32, i32
  }
  func.func @transform_4(%arg0: i32) -> (i32, i32) {
    %c0_i32 = arith.constant 0 : i32
    %c0_i32_0 = arith.constant 0 : i32
    %c0_i32_1 = arith.constant 0 : i32
    return %c0_i32, %c0_i32_0 : i32, i32
  }
  func.func @transform_5(%arg0: i32) -> (i32, i32) {
    %c0_i32 = arith.constant 0 : i32
    %c0_i32_0 = arith.constant 0 : i32
    %c0_i32_1 = arith.constant 0 : i32
    return %c0_i32, %c0_i32_0 : i32, i32
  }
  func.func @transform_6(%arg0: i32) -> (i32, i32) {
    %c0_i32 = arith.constant 0 : i32
    %c0_i32_0 = arith.constant 0 : i32
    %c0_i32_1 = arith.constant 0 : i32
    return %c0_i32, %c0_i32_0 : i32, i32
  }
  func.func @transform_7(%arg0: i32) -> (i32, i32) {
    %c0_i32 = arith.constant 0 : i32
    %c0_i32_0 = arith.constant 0 : i32
    return %arg0, %c0_i32 : i32, i32
  }
}

</mosaic_0001>

<bundles_post_ra>
// kernel: net_forward.5
= control target key start
LH: loop header
LB: loop body
LE: loop exit
PB: predicated region body
PF: predicated region fallthrough
CT: control target
= control target key end

     0   :  { %s2104_s12 = smov 0   ;;  %s2106_s13 = smov 0   ;;  %s2840_s0 = inlined_call_operand.vmem [shape: f32[1568,75], index: 0, kind: input, shape index: {}]   ;;  %s2841_s1 = inlined_call_operand.vmem [shape: f32[75,128], index: 1, kind: input, shape index: {}]   ;;  %s2842_s2 = inlined_call_operand.vmem [shape: f32[1,128], index: 2, kind: input, shape index: {}]   ;;  %s2843_s3 = inlined_call_operand.vmem [shape: f32[1568,128], index: 3, kind: output, shape index: {}]  }
   0x1   :  { %s2108_s14 = smov 0  }
   0x2 LB: > { %s2117_s15 = sadd.s32 4294967295, %s2050_s14   ;;  %s2119_s16 = sadd.s32 1, %s2050_s14   ;;  %s2050_s14 = sphi %s2108_s14, %s2852_s14   ;;  %s2046_s13 = sphi %s2106_s13, %s2851_s13   ;;  %s2042_s12 = sphi %s2104_s12, %s2850_s12  }
   0x3   : > { %s85_s17 = ssub.s32 %s2050_s14, %s2119_s16  ;;  %s88_s18 = sadd.s32 1, %s2046_s13 }
   0x4   : > { %p86_p0 = scmp.eq.s32.totalorder %s85_s17, 0  ;;  %p98_p1 = scmp.ne.s32.totalorder %s2046_s13, %s2042_s12 }
   0x5   : > { %p99_p2 = scmp.eq.s32.totalorder %s2117_s15, 1  ;;  %p1723_p3 = scmp.ge.s32.totalorder %s2050_s14, 1 }
   0x6   : > { %s2127_s19 = scalar_select %p86_p0, %s2046_s13, %s88_s18  }
   0x7   : > { %p2129_p4 = por %p99_p2, %p98_p1  ;;  %p146_p5 = scmp.lt.s32.totalorder %s2050_s14, 3 }
   0x9   : > { %p147_p6 = pnand %p1723_p3, %p146_p5 }
   0xa   : > { %s2140_s25 = sshll.u32 (!%p147_p6), %s2117_s15, 7  ;;  %s170_s27 = sand.u32 (!%p147_p6), 1, %s2042_s12  }
   0xb   : > { %150 = sbr.rel (%p147_p6) target bundleno = 486 (0x1e6), region = 32  ;;  %p178_p7 = scmp.lt.s32.totalorder (!%p147_p6), %s2140_s25, 195 }
   0xc   : > { %s1724_s30 = sshll.u32 (!%p147_p6), %s170_s27, 10 }
   0xd   : > { %s2317_s12 = scalar_lea.vmem (!%p147_p6), [#allocation2], %s1724_s30  }
  0x10   : > { %v329_v0 = vld [vmem:[%s2841_s1 + $0x48] sm:$0x7]  ;;  %vm719_vm0 = vcmask 1042432   ;;  %v328_v1 = vld [vmem:[%s2841_s1 + $0x40] sm:$0xff]  ;;  %v327_v2 = vld [vmem:[%s2841_s1 + $0x38] sm:$0xff]  ;;  %s179_s5 = scalar_select %p178_p7, %s2140_s25, 195 }
  0x11   : > { %1877 = vmatpush.msk.msra.mxu2 %vm719_vm0, %v329_v0  ;;  %1878 = vmatpush.msk.msra.mxu3 %vm719_vm0, %v329_v0  ;;  %v326_v3 = vld [vmem:[%s2841_s1 + $0x30] sm:$0xff]  ;;  %v325_v4 = vld [vmem:[%s2841_s1 + $0x28] sm:$0xff]  ;;  %v324_v5 = vld [vmem:[%s2841_s1 + $0x20] sm:$0xff]  ;;  %vm334_vm1 = vcmask 613376   ;;  %s1388_s6 = ssub.s32 (%p2129_p4), 196, %s2140_s25  ;;  %s1873_s7 = sshll.u32 (%p2129_p4), %s2117_s15, 10 }
  0x12   : > { %1727 = vmatpush.msk.msra.mxu0 %vm719_vm0, %v329_v0  ;;  %1876 = vmatpush.msk.msra.mxu1 %vm719_vm0, %v329_v0  ;;  %v323_v6 = vld [vmem:[%s2841_s1 + $0x18] sm:$0xff]  ;;  %s1726_s10 = sshll.u32 %s179_s5, 3  ;;  %v322_v7 = vld [vmem:[%s2841_s1 + $0x10] sm:$0xff]  ;;  %v321_v8 = vld [vmem:[%s2841_s1 + $0x8] sm:$0xff]  ;;  %p1389_p8 = scmp.lt.s32.totalorder (%p2129_p4), %s1388_s6, 128 }
  0x13   : > { %1880 = vmatpush.msra.mxu2 %v328_v1  ;;  %1881 = vmatpush.msra.mxu3 %v328_v1  ;;  %s2168_s23 = scalar_lea.vmem %s2840_s0, %s1726_s10  ;;  %v320_v9 = vld [vmem:[%s2841_s1] sm:$0xff]  ;;  %s2705_s10 = scalar_lea.vmem (%p2129_p4), %s2843_s3, %s1873_s7  }
  0x14   : > { %730 = vmatpush.msra.mxu0 %v328_v1  ;;  %1879 = vmatpush.msra.mxu1 %v328_v1  ;;  %v256_v10 = vld [vmem:[%s2168_s23 + $0x200] sm:$0xff]  ;;  %v257_v14 = vld [vmem:[%s2168_s23 + $0x208] sm:$0xff]  ;;  %v258_v18 = vld [vmem:[%s2168_s23 + $0x210] sm:$0xff] }
  0x15   : > { %1883 = vmatpush.msra.mxu2 %v327_v2  ;;  %1884 = vmatpush.msra.mxu3 %v327_v2  ;;  %v288_v11 = vld [vmem:[%s2168_s23 + $0x300] sm:$0xff]  ;;  %v289_v15 = vld [vmem:[%s2168_s23 + $0x308] sm:$0xff]  ;;  %v290_v19 = vld [vmem:[%s2168_s23 + $0x310] sm:$0xff] }
  0x16   : > { %731 = vmatpush.msra.mxu0 %v327_v2  ;;  %1882 = vmatpush.msra.mxu1 %v327_v2  ;;  %v192_v12 = vld [vmem:[%s2168_s23] sm:$0xff]  ;;  %v193_v16 = vld [vmem:[%s2168_s23 + $0x8] sm:$0xff]  ;;  %v194_v20 = vld [vmem:[%s2168_s23 + $0x10] sm:$0xff] }
  0x17   : > { %1886 = vmatpush.msra.mxu2 %v326_v3  ;;  %1887 = vmatpush.msra.mxu3 %v326_v3  ;;  %v224_v13 = vld [vmem:[%s2168_s23 + $0x100] sm:$0xff]  ;;  %v225_v17 = vld [vmem:[%s2168_s23 + $0x108] sm:$0xff]  ;;  %v226_v21 = vld [vmem:[%s2168_s23 + $0x110] sm:$0xff] }
  0x18   : > { %732 = vmatpush.msra.mxu0 %v326_v3  ;;  %1885 = vmatpush.msra.mxu1 %v326_v3  ;;  %v259_v22 = vld [vmem:[%s2168_s23 + $0x218] sm:$0xff]  ;;  %v260_v26 = vld [vmem:[%s2168_s23 + $0x220] sm:$0xff]  ;;  %v261_v30 = vld [vmem:[%s2168_s23 + $0x228] sm:$0xff] }
  0x19   : > { %1889 = vmatpush.msra.mxu2 %v325_v4  ;;  %1890 = vmatpush.msra.mxu3 %v325_v4  ;;  %v291_v23 = vld [vmem:[%s2168_s23 + $0x318] sm:$0xff]  ;;  %v292_v27 = vld [vmem:[%s2168_s23 + $0x320] sm:$0xff]  ;;  %v293_v31 = vld [vmem:[%s2168_s23 + $0x328] sm:$0xff] }
  0x1a   : > { %733 = vmatpush.msra.mxu0 %v325_v4  ;;  %1888 = vmatpush.msra.mxu1 %v325_v4  ;;  %v195_v24 = vld [vmem:[%s2168_s23 + $0x18] sm:$0xff]  ;;  %v196_v28 = vld [vmem:[%s2168_s23 + $0x20] sm:$0xff]  ;;  %v197_v32 = vld [vmem:[%s2168_s23 + $0x28] sm:$0xff] }
  0x1b   : > { %1892 = vmatpush.msra.mxu2 %v324_v5  ;;  %1893 = vmatpush.msra.mxu3 %v324_v5  ;;  %v227_v25 = vld [vmem:[%s2168_s23 + $0x118] sm:$0xff]  ;;  %v228_v29 = vld [vmem:[%s2168_s23 + $0x120] sm:$0xff]  ;;  %v229_v33 = vld [vmem:[%s2168_s23 + $0x128] sm:$0xff] }
  0x1c   : > { %734 = vmatpush.msra.mxu0 %v324_v5  ;;  %1891 = vmatpush.msra.mxu1 %v324_v5  ;;  %v262_v34 = vld [vmem:[%s2168_s23 + $0x230] sm:$0xff]  ;;  %v263_v38 = vld [vmem:[%s2168_s23 + $0x238] sm:$0xff]  ;;  %v264_v42 = vld [vmem:[%s2168_s23 + $0x240] sm:$0xff] }
  0x1d   : > { %1895 = vmatpush.msra.mxu2 %v323_v6  ;;  %1896 = vmatpush.msra.mxu3 %v323_v6  ;;  %v294_v35 = vld [vmem:[%s2168_s23 + $0x330] sm:$0xff]  ;;  %v295_v39 = vld [vmem:[%s2168_s23 + $0x338] sm:$0xff]  ;;  %v296_v43 = vld [vmem:[%s2168_s23 + $0x340] sm:$0xff] }
  0x1e   : > { %735 = vmatpush.msra.mxu0 %v323_v6  ;;  %1894 = vmatpush.msra.mxu1 %v323_v6  ;;  %v198_v36 = vld [vmem:[%s2168_s23 + $0x30] sm:$0xff]  ;;  %v199_v40 = vld [vmem:[%s2168_s23 + $0x38] sm:$0xff]  ;;  %v200_v44 = vld [vmem:[%s2168_s23 + $0x40] sm:$0xff] }
  0x1f   : > { %1898 = vmatpush.msra.mxu2 %v322_v7  ;;  %1899 = vmatpush.msra.mxu3 %v322_v7  ;;  %v230_v37 = vld [vmem:[%s2168_s23 + $0x130] sm:$0xff]  ;;  %v231_v41 = vld [vmem:[%s2168_s23 + $0x138] sm:$0xff]  ;;  %v232_v45 = vld [vmem:[%s2168_s23 + $0x140] sm:$0xff] }
  0x20   : > { %736 = vmatpush.msra.mxu0 %v322_v7  ;;  %1897 = vmatpush.msra.mxu1 %v322_v7  ;;  %v265_v46 = vld [vmem:[%s2168_s23 + $0x248] sm:$0xff]  ;;  %v266_v50 = vld [vmem:[%s2168_s23 + $0x250] sm:$0xff]  ;;  %v267_v54 = vld [vmem:[%s2168_s23 + $0x258] sm:$0xff] }
  0x21   : > { %1901 = vmatpush.msra.mxu2 %v321_v8  ;;  %1902 = vmatpush.msra.mxu3 %v321_v8  ;;  %v297_v47 = vld [vmem:[%s2168_s23 + $0x348] sm:$0xff]  ;;  %v298_v51 = vld [vmem:[%s2168_s23 + $0x350] sm:$0xff]  ;;  %v299_v55 = vld [vmem:[%s2168_s23 + $0x358] sm:$0xff] }
  0x22   : > { %737 = vmatpush.msra.mxu0 %v321_v8  ;;  %1900 = vmatpush.msra.mxu1 %v321_v8  ;;  %v201_v48 = vld [vmem:[%s2168_s23 + $0x48] sm:$0xff]  ;;  %v202_v52 = vld [vmem:[%s2168_s23 + $0x50] sm:$0xff]  ;;  %v203_v56 = vld [vmem:[%s2168_s23 + $0x58] sm:$0xff] }
  0x23   : > { %1904 = vmatpush.msra.mxu2 %v320_v9  ;;  %1905 = vmatpush.msra.mxu3 %v320_v9  ;;  %v233_v49 = vld [vmem:[%s2168_s23 + $0x148] sm:$0xff]  ;;  %v234_v53 = vld [vmem:[%s2168_s23 + $0x150] sm:$0xff]  ;;  %v235_v57 = vld [vmem:[%s2168_s23 + $0x158] sm:$0xff] }
  0x24   : > { %1792 = vmatmul.msk.f32.vlgmr.msra.gmra.mxu2 %vm334_vm1, %v256_v10  ;;  %1824 = vmatmul.msk.f32.vlgmr.msra.gmra.mxu3 %vm334_vm1, %v288_v11  ;;  %v268_v58 = vld [vmem:[%s2168_s23 + $0x260] sm:$0xff]  ;;  %v269_v62 = vld [vmem:[%s2168_s23 + $0x268] sm:$0xff]  ;;  %v270_v2 = vld [vmem:[%s2168_s23 + $0x270] sm:$0xff] }
  0x25   : > { %738 = vmatpush.msra.mxu0 %v320_v9  ;;  %1903 = vmatpush.msra.mxu1 %v320_v9  ;;  %v300_v59 = vld [vmem:[%s2168_s23 + $0x360] sm:$0xff]  ;;  %v301_v63 = vld [vmem:[%s2168_s23 + $0x368] sm:$0xff]  ;;  %v302_v3 = vld [vmem:[%s2168_s23 + $0x370] sm:$0xff] }
  0x26   : > { %1728 = vmatmul.msk.f32.vlgmr.msra.gmra.mxu0 %vm334_vm1, %v192_v12  ;;  %1760 = vmatmul.msk.f32.vlgmr.msra.gmra.mxu1 %vm334_vm1, %v224_v13  ;;  %v204_v60 = vld [vmem:[%s2168_s23 + $0x60] sm:$0xff]  ;;  %v205_v0 = vld [vmem:[%s2168_s23 + $0x68] sm:$0xff]  ;;  %v206_v4 = vld [vmem:[%s2168_s23 + $0x70] sm:$0xff] }
  0x27   : > { %v236_v61 = vld [vmem:[%s2168_s23 + $0x160] sm:$0xff]  ;;  %v237_v1 = vld [vmem:[%s2168_s23 + $0x168] sm:$0xff]  ;;  %v238_v5 = vld [vmem:[%s2168_s23 + $0x170] sm:$0xff] }
  0x28   : > { %v271_v6 = vld [vmem:[%s2168_s23 + $0x278] sm:$0xff]  ;;  %v2305_v10 = vld [vmem:[%s2842_s2] ss:$0 sm:$0xff] }
  0x29   : > { %v303_v7 = vld [vmem:[%s2168_s23 + $0x378] sm:$0xff]  ;;  %v272_v11 = vld [vmem:[%s2168_s23 + $0x280] sm:$0xff] }
  0x2a   : > { %v207_v8 = vld [vmem:[%s2168_s23 + $0x78] sm:$0xff]  ;;  %v304_v12 = vld [vmem:[%s2168_s23 + $0x380] sm:$0xff] }
  0x2b   : > { %v239_v9 = vld [vmem:[%s2168_s23 + $0x178] sm:$0xff] }
  0x2c   : > { %1793 = vmatmul.msk.f32.gmra.mxu2 %vm334_vm1, %v257_v14  ;;  %1825 = vmatmul.msk.f32.gmra.mxu3 %vm334_vm1, %v289_v15  ;;  %v208_v15 = vld [vmem:[%s2168_s23 + $0x80] sm:$0xff] }
  0x2e   : > { %1729 = vmatmul.msk.f32.gmra.mxu0 %vm334_vm1, %v193_v16  ;;  %1761 = vmatmul.msk.f32.gmra.mxu1 %vm334_vm1, %v225_v17  ;;  %v240_v16 = vld [vmem:[%s2168_s23 + $0x180] sm:$0xff] }
  0x34   : > { %1794 = vmatmul.msk.f32.gmra.mxu2 %vm334_vm1, %v258_v18  ;;  %1826 = vmatmul.msk.f32.gmra.mxu3 %vm334_vm1, %v290_v19 }
  0x36   : > { %1730 = vmatmul.msk.f32.gmra.mxu0 %vm334_vm1, %v194_v20  ;;  %1762 = vmatmul.msk.f32.gmra.mxu1 %vm334_vm1, %v226_v21 }
  0x3c   : > { %1795 = vmatmul.msk.f32.gmra.mxu2 %vm334_vm1, %v259_v22  ;;  %1827 = vmatmul.msk.f32.gmra.mxu3 %vm334_vm1, %v291_v23 }
  0x3e   : > { %1731 = vmatmul.msk.f32.gmra.mxu0 %vm334_vm1, %v195_v24  ;;  %1763 = vmatmul.msk.f32.gmra.mxu1 %vm334_vm1, %v227_v25  ;;  %v273_v25 = vld [vmem:[%s2168_s23 + $0x288] sm:$0xff] }
  0x44   : > { %1796 = vmatmul.msk.f32.gmra.mxu2 %vm334_vm1, %v260_v26  ;;  %1828 = vmatmul.msk.f32.gmra.mxu3 %vm334_vm1, %v292_v27  ;;  %v305_v26 = vld [vmem:[%s2168_s23 + $0x388] sm:$0xff] }
  0x46   : > { %1732 = vmatmul.msk.f32.gmra.mxu0 %vm334_vm1, %v196_v28  ;;  %1764 = vmatmul.msk.f32.gmra.mxu1 %vm334_vm1, %v228_v29 }
  0x4c   : > { %1797 = vmatmul.msk.f32.gmra.mxu2 %vm334_vm1, %v261_v30  ;;  %1829 = vmatmul.msk.f32.gmra.mxu3 %vm334_vm1, %v293_v31  ;;  %v209_v31 = vld [vmem:[%s2168_s23 + $0x88] sm:$0xff] }
  0x4e   : > { %1733 = vmatmul.msk.f32.gmra.mxu0 %vm334_vm1, %v197_v32  ;;  %1765 = vmatmul.msk.f32.gmra.mxu1 %vm334_vm1, %v229_v33  ;;  %v241_v32 = vld [vmem:[%s2168_s23 + $0x188] sm:$0xff] }
  0x54   : > { %1798 = vmatmul.msk.f32.gmra.mxu2 %vm334_vm1, %v262_v34  ;;  %1830 = vmatmul.msk.f32.gmra.mxu3 %vm334_vm1, %v294_v35 }
  0x56   : > { %1734 = vmatmul.msk.f32.gmra.mxu0 %vm334_vm1, %v198_v36  ;;  %1766 = vmatmul.msk.f32.gmra.mxu1 %vm334_vm1, %v230_v37 }
  0x5c   : > { %1799 = vmatmul.msk.f32.gmra.mxu2 %vm334_vm1, %v263_v38  ;;  %1831 = vmatmul.msk.f32.gmra.mxu3 %vm334_vm1, %v295_v39 }
  0x5e   : > { %1735 = vmatmul.msk.f32.gmra.mxu0 %vm334_vm1, %v199_v40  ;;  %1767 = vmatmul.msk.f32.gmra.mxu1 %vm334_vm1, %v231_v41  ;;  %v274_v41 = vld [vmem:[%s2168_s23 + $0x290] sm:$0xff] }
  0x64   : > { %1800 = vmatmul.msk.f32.gmra.mxu2 %vm334_vm1, %v264_v42  ;;  %1832 = vmatmul.msk.f32.gmra.mxu3 %vm334_vm1, %v296_v43  ;;  %v306_v42 = vld [vmem:[%s2168_s23 + $0x390] sm:$0xff] }
  0x66   : > { %1736 = vmatmul.msk.f32.gmra.mxu0 %vm334_vm1, %v200_v44  ;;  %1768 = vmatmul.msk.f32.gmra.mxu1 %vm334_vm1, %v232_v45 }
  0x6c   : > { %1801 = vmatmul.msk.f32.gmra.mxu2 %vm334_vm1, %v265_v46  ;;  %1833 = vmatmul.msk.f32.gmra.mxu3 %vm334_vm1, %v297_v47  ;;  %v210_v47 = vld [vmem:[%s2168_s23 + $0x90] sm:$0xff] }
  0x6e   : > { %1737 = vmatmul.msk.f32.gmra.mxu0 %vm334_vm1, %v201_v48  ;;  %1769 = vmatmul.msk.f32.gmra.mxu1 %vm334_vm1, %v233_v49  ;;  %v242_v48 = vld [vmem:[%s2168_s23 + $0x190] sm:$0xff] }
  0x74   : > { %1802 = vmatmul.msk.f32.gmra.mxu2 %vm334_vm1, %v266_v50  ;;  %1834 = vmatmul.msk.f32.gmra.mxu3 %vm334_vm1, %v298_v51 }
  0x76   : > { %1738 = vmatmul.msk.f32.gmra.mxu0 %vm334_vm1, %v202_v52  ;;  %1770 = vmatmul.msk.f32.gmra.mxu1 %vm334_vm1, %v234_v53 }
  0x7c   : > { %1803 = vmatmul.msk.f32.gmra.mxu2 %vm334_vm1, %v267_v54  ;;  %1835 = vmatmul.msk.f32.gmra.mxu3 %vm334_vm1, %v299_v55 }
  0x7e   : > { %1739 = vmatmul.msk.f32.gmra.mxu0 %vm334_vm1, %v203_v56  ;;  %1771 = vmatmul.msk.f32.gmra.mxu1 %vm334_vm1, %v235_v57  ;;  %v275_v57 = vld [vmem:[%s2168_s23 + $0x298] sm:$0xff] }
  0x84   : > { %1804 = vmatmul.msk.f32.gmra.mxu2 %vm334_vm1, %v268_v58  ;;  %1836 = vmatmul.msk.f32.gmra.mxu3 %vm334_vm1, %v300_v59  ;;  %v307_v58 = vld [vmem:[%s2168_s23 + $0x398] sm:$0xff] }
  0x86   : > { %1740 = vmatmul.msk.f32.gmra.mxu0 %vm334_vm1, %v204_v60  ;;  %1772 = vmatmul.msk.f32.gmra.mxu1 %vm334_vm1, %v236_v61 }
  0x8c   : > { %1805 = vmatmul.msk.f32.gmra.mxu2 %vm334_vm1, %v269_v62  ;;  %1837 = vmatmul.msk.f32.gmra.mxu3 %vm334_vm1, %v301_v63  ;;  %v211_v63 = vld [vmem:[%s2168_s23 + $0x98] sm:$0xff] }
  0x8e   : > { %1741 = vmatmul.msk.f32.gmra.mxu0 %vm334_vm1, %v205_v0  ;;  %1773 = vmatmul.msk.f32.gmra.mxu1 %vm334_vm1, %v237_v1  ;;  %v243_v0 = vld [vmem:[%s2168_s23 + $0x198] sm:$0xff] }
  0x94   : > { %1806 = vmatmul.msk.f32.gmra.mxu2 %vm334_vm1, %v270_v2  ;;  %1838 = vmatmul.msk.f32.gmra.mxu3 %vm334_vm1, %v302_v3 }
  0x96   : > { %1742 = vmatmul.msk.f32.gmra.mxu0 %vm334_vm1, %v206_v4  ;;  %1774 = vmatmul.msk.f32.gmra.mxu1 %vm334_vm1, %v238_v5 }
  0x9c   : > { %1807 = vmatmul.msk.f32.gmra.mxu2 %vm334_vm1, %v271_v6  ;;  %1839 = vmatmul.msk.f32.gmra.mxu3 %vm334_vm1, %v303_v7 }
  0x9e   : > { %1743 = vmatmul.msk.f32.gmra.mxu0 %vm334_vm1, %v207_v8  ;;  %1775 = vmatmul.msk.f32.gmra.mxu1 %vm334_vm1, %v239_v9  ;;  %v276_v9 = vld [vmem:[%s2168_s23 + $0x2a0] sm:$0xff] }
  0xa3   : > { %v740_v13 = vpop.f32.mrf.mxu0  ;;  %v836_v14 = vpop.f32.mrf.mxu1 }
  0xa4   : > { %1808 = vmatmul.msk.f32.gmra.mxu2 %vm334_vm1, %v272_v11  ;;  %1840 = vmatmul.msk.f32.gmra.mxu3 %vm334_vm1, %v304_v12  ;;  %v741_v17 = vadd.f32 %v2305_v10, %v740_v13  ;;  %v837_v18 = vadd.f32 %v2305_v10, %v836_v14  ;;  %v308_v11 = vld [vmem:[%s2168_s23 + $0x3a0] sm:$0xff] }
  0xa6   : > { %v1124_v19 = vmax.f32 %v741_v17, 0.0  ;;  %v1156_v20 = vmax.f32 %v837_v18, 0.0  ;;  %1744 = vmatmul.msk.f32.gmra.mxu0 %vm334_vm1, %v208_v15  ;;  %1776 = vmatmul.msk.f32.gmra.mxu1 %vm334_vm1, %v240_v16  ;;  %v212_v16 = vld [vmem:[%s2168_s23 + $0xa0] sm:$0xff] }
  0xa7   : > { %v932_v21 = vpop.f32.mrf.mxu2  ;;  %v1028_v22 = vpop.f32.mrf.mxu3  ;;  %v244_v17 = vld [vmem:[%s2168_s23 + $0x1a0] sm:$0xff] }
  0xa8   : > { %1252 = vst [vmem:[%s2317_s12] sm:$0xff] %v1124_v19  ;;  %v933_v23 = vadd.f32 %v2305_v10, %v932_v21  ;;  %v1029_v24 = vadd.f32 %v2305_v10, %v1028_v22 }
  0xa9   : > { %1284 = vst [vmem:[%s2317_s12 + $0x100] sm:$0xff] %v1156_v20 }
  0xaa   : > { %v1188_v27 = vmax.f32 %v933_v23, 0.0  ;;  %v1220_v28 = vmax.f32 %v1029_v24, 0.0 }
  0xab   : > { %v743_v29 = vpop.f32.mrf.mxu0  ;;  %v839_v30 = vpop.f32.mrf.mxu1 }
  0xac   : > { %1316 = vst [vmem:[%s2317_s12 + $0x200] sm:$0xff] %v1188_v27  ;;  %1809 = vmatmul.msk.f32.gmra.mxu2 %vm334_vm1, %v273_v25  ;;  %1841 = vmatmul.msk.f32.gmra.mxu3 %vm334_vm1, %v305_v26  ;;  %v744_v33 = vadd.f32 %v2305_v10, %v743_v29  ;;  %v840_v34 = vadd.f32 %v2305_v10, %v839_v30  ;;  %v277_v26 = vld [vmem:[%s2168_s23 + $0x2a8] sm:$0xff] }
  0xad   : > { %1348 = vst [vmem:[%s2317_s12 + $0x300] sm:$0xff] %v1220_v28  ;;  %v309_v27 = vld [vmem:[%s2168_s23 + $0x3a8] sm:$0xff] }
  0xae   : > { %v1125_v35 = vmax.f32 %v744_v33, 0.0  ;;  %v1157_v36 = vmax.f32 %v840_v34, 0.0  ;;  %1745 = vmatmul.msk.f32.gmra.mxu0 %vm334_vm1, %v209_v31  ;;  %1777 = vmatmul.msk.f32.gmra.mxu1 %vm334_vm1, %v241_v32  ;;  %v213_v32 = vld [vmem:[%s2168_s23 + $0xa8] sm:$0xff] }
  0xaf   : > { %v935_v37 = vpop.f32.mrf.mxu2  ;;  %v1031_v38 = vpop.f32.mrf.mxu3  ;;  %v245_v33 = vld [vmem:[%s2168_s23 + $0x1a8] sm:$0xff] }
  0xb0   : > { %1253 = vst [vmem:[%s2317_s12 + $0x8] sm:$0xff] %v1125_v35  ;;  %v936_v39 = vadd.f32 %v2305_v10, %v935_v37  ;;  %v1032_v40 = vadd.f32 %v2305_v10, %v1031_v38 }
  0xb1   : > { %1285 = vst [vmem:[%s2317_s12 + $0x108] sm:$0xff] %v1157_v36 }
  0xb2   : > { %v1189_v43 = vmax.f32 %v936_v39, 0.0  ;;  %v1221_v44 = vmax.f32 %v1032_v40, 0.0 }
  0xb3   : > { %v746_v45 = vpop.f32.mrf.mxu0  ;;  %v842_v46 = vpop.f32.mrf.mxu1 }
  0xb4   : > { %1317 = vst [vmem:[%s2317_s12 + $0x208] sm:$0xff] %v1189_v43  ;;  %1810 = vmatmul.msk.f32.gmra.mxu2 %vm334_vm1, %v274_v41  ;;  %1842 = vmatmul.msk.f32.gmra.mxu3 %vm334_vm1, %v306_v42  ;;  %v747_v49 = vadd.f32 %v2305_v10, %v746_v45  ;;  %v843_v50 = vadd.f32 %v2305_v10, %v842_v46  ;;  %v278_v42 = vld [vmem:[%s2168_s23 + $0x2b0] sm:$0xff] }
  0xb5   : > { %1349 = vst [vmem:[%s2317_s12 + $0x308] sm:$0xff] %v1221_v44  ;;  %v310_v43 = vld [vmem:[%s2168_s23 + $0x3b0] sm:$0xff] }
  0xb6   : > { %v1126_v51 = vmax.f32 %v747_v49, 0.0  ;;  %v1158_v52 = vmax.f32 %v843_v50, 0.0  ;;  %1746 = vmatmul.msk.f32.gmra.mxu0 %vm334_vm1, %v210_v47  ;;  %1778 = vmatmul.msk.f32.gmra.mxu1 %vm334_vm1, %v242_v48  ;;  %v214_v48 = vld [vmem:[%s2168_s23 + $0xb0] sm:$0xff] }
  0xb7   : > { %v938_v53 = vpop.f32.mrf.mxu2  ;;  %v1034_v54 = vpop.f32.mrf.mxu3  ;;  %v246_v49 = vld [vmem:[%s2168_s23 + $0x1b0] sm:$0xff] }
  0xb8   : > { %1254 = vst [vmem:[%s2317_s12 + $0x10] sm:$0xff] %v1126_v51  ;;  %v939_v55 = vadd.f32 %v2305_v10, %v938_v53  ;;  %v1035_v56 = vadd.f32 %v2305_v10, %v1034_v54 }
  0xb9   : > { %1286 = vst [vmem:[%s2317_s12 + $0x110] sm:$0xff] %v1158_v52 }
  0xba   : > { %v1190_v59 = vmax.f32 %v939_v55, 0.0  ;;  %v1222_v60 = vmax.f32 %v1035_v56, 0.0 }
  0xbb   : > { %v749_v61 = vpop.f32.mrf.mxu0  ;;  %v845_v62 = vpop.f32.mrf.mxu1 }
  0xbc   : > { %1318 = vst [vmem:[%s2317_s12 + $0x210] sm:$0xff] %v1190_v59  ;;  %1811 = vmatmul.msk.f32.gmra.mxu2 %vm334_vm1, %v275_v57  ;;  %1843 = vmatmul.msk.f32.gmra.mxu3 %vm334_vm1, %v307_v58  ;;  %v750_v1 = vadd.f32 %v2305_v10, %v749_v61  ;;  %v846_v2 = vadd.f32 %v2305_v10, %v845_v62  ;;  %v279_v58 = vld [vmem:[%s2168_s23 + $0x2b8] sm:$0xff] }
  0xbd   : > { %1350 = vst [vmem:[%s2317_s12 + $0x310] sm:$0xff] %v1222_v60  ;;  %v311_v59 = vld [vmem:[%s2168_s23 + $0x3b8] sm:$0xff] }
  0xbe   : > { %v1127_v3 = vmax.f32 %v750_v1, 0.0  ;;  %v1159_v4 = vmax.f32 %v846_v2, 0.0  ;;  %1747 = vmatmul.msk.f32.gmra.mxu0 %vm334_vm1, %v211_v63  ;;  %1779 = vmatmul.msk.f32.gmra.mxu1 %vm334_vm1, %v243_v0  ;;  %v215_v0 = vld [vmem:[%s2168_s23 + $0xb8] sm:$0xff] }
  0xbf   : > { %v941_v5 = vpop.f32.mrf.mxu2  ;;  %v1037_v6 = vpop.f32.mrf.mxu3  ;;  %v247_v1 = vld [vmem:[%s2168_s23 + $0x1b8] sm:$0xff] }
  0xc0   : > { %1255 = vst [vmem:[%s2317_s12 + $0x18] sm:$0xff] %v1127_v3  ;;  %v942_v7 = vadd.f32 %v2305_v10, %v941_v5  ;;  %v1038_v8 = vadd.f32 %v2305_v10, %v1037_v6 }
  0xc1   : > { %1287 = vst [vmem:[%s2317_s12 + $0x118] sm:$0xff] %v1159_v4 }
  0xc2   : > { %v1191_v12 = vmax.f32 %v942_v7, 0.0  ;;  %v1223_v13 = vmax.f32 %v1038_v8, 0.0 }
  0xc3   : > { %v752_v14 = vpop.f32.mrf.mxu0  ;;  %v848_v15 = vpop.f32.mrf.mxu1 }
  0xc4   : > { %1319 = vst [vmem:[%s2317_s12 + $0x218] sm:$0xff] %v1191_v12  ;;  %1812 = vmatmul.msk.f32.gmra.mxu2 %vm334_vm1, %v276_v9  ;;  %1844 = vmatmul.msk.f32.gmra.mxu3 %vm334_vm1, %v308_v11  ;;  %v753_v18 = vadd.f32 %v2305_v10, %v752_v14  ;;  %v849_v19 = vadd.f32 %v2305_v10, %v848_v15  ;;  %v280_v11 = vld [vmem:[%s2168_s23 + $0x2c0] sm:$0xff] }
  0xc5   : > { %1351 = vst [vmem:[%s2317_s12 + $0x318] sm:$0xff] %v1223_v13  ;;  %v312_v12 = vld [vmem:[%s2168_s23 + $0x3c0] sm:$0xff] }
  0xc6   : > { %v1128_v20 = vmax.f32 %v753_v18, 0.0  ;;  %v1160_v21 = vmax.f32 %v849_v19, 0.0  ;;  %1748 = vmatmul.msk.f32.gmra.mxu0 %vm334_vm1, %v212_v16  ;;  %1780 = vmatmul.msk.f32.gmra.mxu1 %vm334_vm1, %v244_v17  ;;  %v216_v17 = vld [vmem:[%s2168_s23 + $0xc0] sm:$0xff] }
  0xc7   : > { %v944_v22 = vpop.f32.mrf.mxu2  ;;  %v1040_v23 = vpop.f32.mrf.mxu3  ;;  %v248_v18 = vld [vmem:[%s2168_s23 + $0x1c0] sm:$0xff] }
  0xc8   : > { %1256 = vst [vmem:[%s2317_s12 + $0x20] sm:$0xff] %v1128_v20  ;;  %v945_v24 = vadd.f32 %v2305_v10, %v944_v22  ;;  %v1041_v25 = vadd.f32 %v2305_v10, %v1040_v23 }
  0xc9   : > { %1288 = vst [vmem:[%s2317_s12 + $0x120] sm:$0xff] %v1160_v21 }
  0xca   : > { %v1192_v28 = vmax.f32 %v945_v24, 0.0  ;;  %v1224_v29 = vmax.f32 %v1041_v25, 0.0 }
  0xcb   : > { %v755_v30 = vpop.f32.mrf.mxu0  ;;  %v851_v31 = vpop.f32.mrf.mxu1 }
  0xcc   : > { %1320 = vst [vmem:[%s2317_s12 + $0x220] sm:$0xff] %v1192_v28  ;;  %1813 = vmatmul.msk.f32.gmra.mxu2 %vm334_vm1, %v277_v26  ;;  %1845 = vmatmul.msk.f32.gmra.mxu3 %vm334_vm1, %v309_v27  ;;  %v756_v34 = vadd.f32 %v2305_v10, %v755_v30  ;;  %v852_v35 = vadd.f32 %v2305_v10, %v851_v31  ;;  %v281_v27 = vld [vmem:[%s2168_s23 + $0x2c8] sm:$0xff] }
  0xcd   : > { %1352 = vst [vmem:[%s2317_s12 + $0x320] sm:$0xff] %v1224_v29  ;;  %v313_v28 = vld [vmem:[%s2168_s23 + $0x3c8] sm:$0xff] }
  0xce   : > { %v1129_v36 = vmax.f32 %v756_v34, 0.0  ;;  %v1161_v37 = vmax.f32 %v852_v35, 0.0  ;;  %1749 = vmatmul.msk.f32.gmra.mxu0 %vm334_vm1, %v213_v32  ;;  %1781 = vmatmul.msk.f32.gmra.mxu1 %vm334_vm1, %v245_v33  ;;  %v217_v33 = vld [vmem:[%s2168_s23 + $0xc8] sm:$0xff] }
  0xcf   : > { %v947_v38 = vpop.f32.mrf.mxu2  ;;  %v1043_v39 = vpop.f32.mrf.mxu3  ;;  %v249_v34 = vld [vmem:[%s2168_s23 + $0x1c8] sm:$0xff] }
  0xd0   : > { %1257 = vst [vmem:[%s2317_s12 + $0x28] sm:$0xff] %v1129_v36  ;;  %v948_v40 = vadd.f32 %v2305_v10, %v947_v38  ;;  %v1044_v41 = vadd.f32 %v2305_v10, %v1043_v39 }
  0xd1   : > { %1289 = vst [vmem:[%s2317_s12 + $0x128] sm:$0xff] %v1161_v37 }
  0xd2   : > { %v1193_v44 = vmax.f32 %v948_v40, 0.0  ;;  %v1225_v45 = vmax.f32 %v1044_v41, 0.0 }
  0xd3   : > { %v758_v46 = vpop.f32.mrf.mxu0  ;;  %v854_v47 = vpop.f32.mrf.mxu1 }
  0xd4   : > { %1321 = vst [vmem:[%s2317_s12 + $0x228] sm:$0xff] %v1193_v44  ;;  %1814 = vmatmul.msk.f32.gmra.mxu2 %vm334_vm1, %v278_v42  ;;  %1846 = vmatmul.msk.f32.gmra.mxu3 %vm334_vm1, %v310_v43  ;;  %v759_v50 = vadd.f32 %v2305_v10, %v758_v46  ;;  %v855_v51 = vadd.f32 %v2305_v10, %v854_v47  ;;  %v282_v43 = vld [vmem:[%s2168_s23 + $0x2d0] sm:$0xff] }
  0xd5   : > { %1353 = vst [vmem:[%s2317_s12 + $0x328] sm:$0xff] %v1225_v45  ;;  %v314_v44 = vld [vmem:[%s2168_s23 + $0x3d0] sm:$0xff] }
  0xd6   : > { %v1130_v52 = vmax.f32 %v759_v50, 0.0  ;;  %v1162_v53 = vmax.f32 %v855_v51, 0.0  ;;  %1750 = vmatmul.msk.f32.gmra.mxu0 %vm334_vm1, %v214_v48  ;;  %1782 = vmatmul.msk.f32.gmra.mxu1 %vm334_vm1, %v246_v49  ;;  %v218_v49 = vld [vmem:[%s2168_s23 + $0xd0] sm:$0xff] }
  0xd7   : > { %v950_v54 = vpop.f32.mrf.mxu2  ;;  %v1046_v55 = vpop.f32.mrf.mxu3  ;;  %v250_v50 = vld [vmem:[%s2168_s23 + $0x1d0] sm:$0xff] }
  0xd8   : > { %1258 = vst [vmem:[%s2317_s12 + $0x30] sm:$0xff] %v1130_v52  ;;  %v951_v56 = vadd.f32 %v2305_v10, %v950_v54  ;;  %v1047_v57 = vadd.f32 %v2305_v10, %v1046_v55 }
  0xd9   : > { %1290 = vst [vmem:[%s2317_s12 + $0x130] sm:$0xff] %v1162_v53 }
  0xda   : > { %v1194_v60 = vmax.f32 %v951_v56, 0.0  ;;  %v1226_v61 = vmax.f32 %v1047_v57, 0.0 }
  0xdb   : > { %v761_v62 = vpop.f32.mrf.mxu0  ;;  %v857_v63 = vpop.f32.mrf.mxu1 }
  0xdc   : > { %1322 = vst [vmem:[%s2317_s12 + $0x230] sm:$0xff] %v1194_v60  ;;  %1815 = vmatmul.msk.f32.gmra.mxu2 %vm334_vm1, %v279_v58  ;;  %1847 = vmatmul.msk.f32.gmra.mxu3 %vm334_vm1, %v311_v59  ;;  %v762_v2 = vadd.f32 %v2305_v10, %v761_v62  ;;  %v858_v3 = vadd.f32 %v2305_v10, %v857_v63  ;;  %v283_v59 = vld [vmem:[%s2168_s23 + $0x2d8] sm:$0xff] }
  0xdd   : > { %1354 = vst [vmem:[%s2317_s12 + $0x330] sm:$0xff] %v1226_v61  ;;  %v315_v60 = vld [vmem:[%s2168_s23 + $0x3d8] sm:$0xff] }
  0xde   : > { %v1131_v4 = vmax.f32 %v762_v2, 0.0  ;;  %v1163_v5 = vmax.f32 %v858_v3, 0.0  ;;  %1751 = vmatmul.msk.f32.gmra.mxu0 %vm334_vm1, %v215_v0  ;;  %1783 = vmatmul.msk.f32.gmra.mxu1 %vm334_vm1, %v247_v1  ;;  %v219_v1 = vld [vmem:[%s2168_s23 + $0xd8] sm:$0xff] }
  0xdf   : > { %v953_v6 = vpop.f32.mrf.mxu2  ;;  %v1049_v7 = vpop.f32.mrf.mxu3  ;;  %v251_v2 = vld [vmem:[%s2168_s23 + $0x1d8] sm:$0xff] }
  0xe0   : > { %1259 = vst [vmem:[%s2317_s12 + $0x38] sm:$0xff] %v1131_v4  ;;  %v954_v8 = vadd.f32 %v2305_v10, %v953_v6  ;;  %v1050_v9 = vadd.f32 %v2305_v10, %v1049_v7 }
  0xe1   : > { %1291 = vst [vmem:[%s2317_s12 + $0x138] sm:$0xff] %v1163_v5 }
  0xe2   : > { %v1195_v13 = vmax.f32 %v954_v8, 0.0  ;;  %v1227_v14 = vmax.f32 %v1050_v9, 0.0 }
  0xe3   : > { %v764_v15 = vpop.f32.mrf.mxu0  ;;  %v860_v16 = vpop.f32.mrf.mxu1 }
  0xe4   : > { %1323 = vst [vmem:[%s2317_s12 + $0x238] sm:$0xff] %v1195_v13  ;;  %1816 = vmatmul.msk.f32.gmra.mxu2 %vm334_vm1, %v280_v11  ;;  %1848 = vmatmul.msk.f32.gmra.mxu3 %vm334_vm1, %v312_v12  ;;  %v765_v19 = vadd.f32 %v2305_v10, %v764_v15  ;;  %v861_v20 = vadd.f32 %v2305_v10, %v860_v16  ;;  %v284_v12 = vld [vmem:[%s2168_s23 + $0x2e0] sm:$0xff] }
  0xe5   : > { %1355 = vst [vmem:[%s2317_s12 + $0x338] sm:$0xff] %v1227_v14  ;;  %v316_v13 = vld [vmem:[%s2168_s23 + $0x3e0] sm:$0xff] }
  0xe6   : > { %v1132_v21 = vmax.f32 %v765_v19, 0.0  ;;  %v1164_v22 = vmax.f32 %v861_v20, 0.0  ;;  %1752 = vmatmul.msk.f32.gmra.mxu0 %vm334_vm1, %v216_v17  ;;  %1784 = vmatmul.msk.f32.gmra.mxu1 %vm334_vm1, %v248_v18  ;;  %v220_v18 = vld [vmem:[%s2168_s23 + $0xe0] sm:$0xff] }
  0xe7   : > { %v956_v23 = vpop.f32.mrf.mxu2  ;;  %v1052_v24 = vpop.f32.mrf.mxu3  ;;  %v252_v19 = vld [vmem:[%s2168_s23 + $0x1e0] sm:$0xff] }
  0xe8   : > { %1260 = vst [vmem:[%s2317_s12 + $0x40] sm:$0xff] %v1132_v21  ;;  %v957_v25 = vadd.f32 %v2305_v10, %v956_v23  ;;  %v1053_v26 = vadd.f32 %v2305_v10, %v1052_v24 }
  0xe9   : > { %1292 = vst [vmem:[%s2317_s12 + $0x140] sm:$0xff] %v1164_v22 }
  0xea   : > { %v1196_v29 = vmax.f32 %v957_v25, 0.0  ;;  %v1228_v30 = vmax.f32 %v1053_v26, 0.0 }
  0xeb   : > { %v767_v31 = vpop.f32.mrf.mxu0  ;;  %v863_v32 = vpop.f32.mrf.mxu1 }
  0xec   : > { %1324 = vst [vmem:[%s2317_s12 + $0x240] sm:$0xff] %v1196_v29  ;;  %1817 = vmatmul.msk.f32.gmra.mxu2 %vm334_vm1, %v281_v27  ;;  %1849 = vmatmul.msk.f32.gmra.mxu3 %vm334_vm1, %v313_v28  ;;  %v768_v35 = vadd.f32 %v2305_v10, %v767_v31  ;;  %v864_v36 = vadd.f32 %v2305_v10, %v863_v32  ;;  %v285_v28 = vld [vmem:[%s2168_s23 + $0x2e8] sm:$0xff] }
  0xed   : > { %1356 = vst [vmem:[%s2317_s12 + $0x340] sm:$0xff] %v1228_v30  ;;  %v317_v29 = vld [vmem:[%s2168_s23 + $0x3e8] sm:$0xff] }
  0xee   : > { %v1133_v37 = vmax.f32 %v768_v35, 0.0  ;;  %v1165_v38 = vmax.f32 %v864_v36, 0.0  ;;  %1753 = vmatmul.msk.f32.gmra.mxu0 %vm334_vm1, %v217_v33  ;;  %1785 = vmatmul.msk.f32.gmra.mxu1 %vm334_vm1, %v249_v34  ;;  %v221_v34 = vld [vmem:[%s2168_s23 + $0xe8] sm:$0xff] }
  0xef   : > { %v959_v39 = vpop.f32.mrf.mxu2  ;;  %v1055_v40 = vpop.f32.mrf.mxu3  ;;  %v253_v35 = vld [vmem:[%s2168_s23 + $0x1e8] sm:$0xff] }
  0xf0   : > { %1261 = vst [vmem:[%s2317_s12 + $0x48] sm:$0xff] %v1133_v37  ;;  %v960_v41 = vadd.f32 %v2305_v10, %v959_v39  ;;  %v1056_v42 = vadd.f32 %v2305_v10, %v1055_v40 }
  0xf1   : > { %1293 = vst [vmem:[%s2317_s12 + $0x148] sm:$0xff] %v1165_v38 }
  0xf2   : > { %v1197_v45 = vmax.f32 %v960_v41, 0.0  ;;  %v1229_v46 = vmax.f32 %v1056_v42, 0.0 }
  0xf3   : > { %v770_v47 = vpop.f32.mrf.mxu0  ;;  %v866_v48 = vpop.f32.mrf.mxu1 }
  0xf4   : > { %1325 = vst [vmem:[%s2317_s12 + $0x248] sm:$0xff] %v1197_v45  ;;  %1818 = vmatmul.msk.f32.gmra.mxu2 %vm334_vm1, %v282_v43  ;;  %1850 = vmatmul.msk.f32.gmra.mxu3 %vm334_vm1, %v314_v44  ;;  %v771_v51 = vadd.f32 %v2305_v10, %v770_v47  ;;  %v867_v52 = vadd.f32 %v2305_v10, %v866_v48  ;;  %v286_v44 = vld [vmem:[%s2168_s23 + $0x2f0] sm:$0xff] }
  0xf5   : > { %1357 = vst [vmem:[%s2317_s12 + $0x348] sm:$0xff] %v1229_v46  ;;  %v318_v45 = vld [vmem:[%s2168_s23 + $0x3f0] sm:$0xff] }
  0xf6   : > { %v1134_v53 = vmax.f32 %v771_v51, 0.0  ;;  %v1166_v54 = vmax.f32 %v867_v52, 0.0  ;;  %1754 = vmatmul.msk.f32.gmra.mxu0 %vm334_vm1, %v218_v49  ;;  %1786 = vmatmul.msk.f32.gmra.mxu1 %vm334_vm1, %v250_v50  ;;  %v222_v50 = vld [vmem:[%s2168_s23 + $0xf0] sm:$0xff] }
  0xf7   : > { %v962_v55 = vpop.f32.mrf.mxu2  ;;  %v1058_v56 = vpop.f32.mrf.mxu3  ;;  %v254_v51 = vld [vmem:[%s2168_s23 + $0x1f0] sm:$0xff] }
  0xf8   : > { %1262 = vst [vmem:[%s2317_s12 + $0x50] sm:$0xff] %v1134_v53  ;;  %v963_v57 = vadd.f32 %v2305_v10, %v962_v55  ;;  %v1059_v58 = vadd.f32 %v2305_v10, %v1058_v56 }
  0xf9   : > { %1294 = vst [vmem:[%s2317_s12 + $0x150] sm:$0xff] %v1166_v54 }
  0xfa   : > { %v1198_v61 = vmax.f32 %v963_v57, 0.0  ;;  %v1230_v62 = vmax.f32 %v1059_v58, 0.0 }
  0xfb   : > { %v773_v63 = vpop.f32.mrf.mxu0  ;;  %v869_v0 = vpop.f32.mrf.mxu1 }
  0xfc   : > { %1326 = vst [vmem:[%s2317_s12 + $0x250] sm:$0xff] %v1198_v61  ;;  %1819 = vmatmul.msk.f32.gmra.mxu2 %vm334_vm1, %v283_v59  ;;  %1851 = vmatmul.msk.f32.gmra.mxu3 %vm334_vm1, %v315_v60  ;;  %v774_v3 = vadd.f32 %v2305_v10, %v773_v63  ;;  %v870_v4 = vadd.f32 %v2305_v10, %v869_v0  ;;  %v287_v60 = vld [vmem:[%s2168_s23 + $0x2f8] sm:$0xff] }
  0xfd   : > { %1358 = vst [vmem:[%s2317_s12 + $0x350] sm:$0xff] %v1230_v62  ;;  %v319_v61 = vld [vmem:[%s2168_s23 + $0x3f8] sm:$0xff] }
  0xfe   : > { %v1135_v5 = vmax.f32 %v774_v3, 0.0  ;;  %v1167_v6 = vmax.f32 %v870_v4, 0.0  ;;  %1755 = vmatmul.msk.f32.gmra.mxu0 %vm334_vm1, %v219_v1  ;;  %1787 = vmatmul.msk.f32.gmra.mxu1 %vm334_vm1, %v251_v2  ;;  %v223_v2 = vld [vmem:[%s2168_s23 + $0xf8] sm:$0xff] }
  0xff   : > { %v965_v7 = vpop.f32.mrf.mxu2  ;;  %v1061_v8 = vpop.f32.mrf.mxu3  ;;  %v255_v3 = vld [vmem:[%s2168_s23 + $0x1f8] sm:$0xff] }
 0x100   : > { %1263 = vst [vmem:[%s2317_s12 + $0x58] sm:$0xff] %v1135_v5  ;;  %v966_v9 = vadd.f32 %v2305_v10, %v965_v7  ;;  %v1062_v11 = vadd.f32 %v2305_v10, %v1061_v8 }
 0x101   : > { %1295 = vst [vmem:[%s2317_s12 + $0x158] sm:$0xff] %v1167_v6 }
 0x102   : > { %v1199_v14 = vmax.f32 %v966_v9, 0.0  ;;  %v1231_v15 = vmax.f32 %v1062_v11, 0.0 }
 0x103   : > { %v776_v16 = vpop.f32.mrf.mxu0  ;;  %v872_v17 = vpop.f32.mrf.mxu1 }
 0x104   : > { %1327 = vst [vmem:[%s2317_s12 + $0x258] sm:$0xff] %v1199_v14  ;;  %1820 = vmatmul.msk.f32.gmra.mxu2 %vm334_vm1, %v284_v12  ;;  %1852 = vmatmul.msk.f32.gmra.mxu3 %vm334_vm1, %v316_v13  ;;  %v777_v20 = vadd.f32 %v2305_v10, %v776_v16  ;;  %v873_v21 = vadd.f32 %v2305_v10, %v872_v17 }
 0x105   : > { %1359 = vst [vmem:[%s2317_s12 + $0x358] sm:$0xff] %v1231_v15 }
 0x106   : > { %v1136_v22 = vmax.f32 %v777_v20, 0.0  ;;  %v1168_v23 = vmax.f32 %v873_v21, 0.0  ;;  %1756 = vmatmul.msk.f32.gmra.mxu0 %vm334_vm1, %v220_v18  ;;  %1788 = vmatmul.msk.f32.gmra.mxu1 %vm334_vm1, %v252_v19 }
 0x107   : > { %v968_v24 = vpop.f32.mrf.mxu2  ;;  %v1064_v25 = vpop.f32.mrf.mxu3 }
 0x108   : > { %1264 = vst [vmem:[%s2317_s12 + $0x60] sm:$0xff] %v1136_v22  ;;  %v969_v26 = vadd.f32 %v2305_v10, %v968_v24  ;;  %v1065_v27 = vadd.f32 %v2305_v10, %v1064_v25 }
 0x109   : > { %1296 = vst [vmem:[%s2317_s12 + $0x160] sm:$0xff] %v1168_v23 }
 0x10a   : > { %v1200_v30 = vmax.f32 %v969_v26, 0.0  ;;  %v1232_v31 = vmax.f32 %v1065_v27, 0.0 }
 0x10b   : > { %v779_v32 = vpop.f32.mrf.mxu0  ;;  %v875_v33 = vpop.f32.mrf.mxu1 }
 0x10c   : > { %1328 = vst [vmem:[%s2317_s12 + $0x260] sm:$0xff] %v1200_v30  ;;  %1821 = vmatmul.msk.f32.gmra.mxu2 %vm334_vm1, %v285_v28  ;;  %1853 = vmatmul.msk.f32.gmra.mxu3 %vm334_vm1, %v317_v29  ;;  %v780_v36 = vadd.f32 %v2305_v10, %v779_v32  ;;  %v876_v37 = vadd.f32 %v2305_v10, %v875_v33 }
 0x10d   : > { %1360 = vst [vmem:[%s2317_s12 + $0x360] sm:$0xff] %v1232_v31 }
 0x10e   : > { %v1137_v38 = vmax.f32 %v780_v36, 0.0  ;;  %v1169_v39 = vmax.f32 %v876_v37, 0.0  ;;  %1757 = vmatmul.msk.f32.gmra.mxu0 %vm334_vm1, %v221_v34  ;;  %1789 = vmatmul.msk.f32.gmra.mxu1 %vm334_vm1, %v253_v35 }
 0x10f   : > { %v971_v40 = vpop.f32.mrf.mxu2  ;;  %v1067_v41 = vpop.f32.mrf.mxu3 }
 0x110   : > { %1265 = vst [vmem:[%s2317_s12 + $0x68] sm:$0xff] %v1137_v38  ;;  %v972_v42 = vadd.f32 %v2305_v10, %v971_v40  ;;  %v1068_v43 = vadd.f32 %v2305_v10, %v1067_v41 }
 0x111   : > { %1297 = vst [vmem:[%s2317_s12 + $0x168] sm:$0xff] %v1169_v39 }
 0x112   : > { %v1201_v46 = vmax.f32 %v972_v42, 0.0  ;;  %v1233_v47 = vmax.f32 %v1068_v43, 0.0 }
 0x113   : > { %v782_v48 = vpop.f32.mrf.mxu0  ;;  %v878_v49 = vpop.f32.mrf.mxu1 }
 0x114   : > { %1329 = vst [vmem:[%s2317_s12 + $0x268] sm:$0xff] %v1201_v46  ;;  %1822 = vmatmul.msk.f32.gmra.mxu2 %vm334_vm1, %v286_v44  ;;  %1854 = vmatmul.msk.f32.gmra.mxu3 %vm334_vm1, %v318_v45  ;;  %v783_v52 = vadd.f32 %v2305_v10, %v782_v48  ;;  %v879_v53 = vadd.f32 %v2305_v10, %v878_v49 }
 0x115   : > { %1361 = vst [vmem:[%s2317_s12 + $0x368] sm:$0xff] %v1233_v47 }
 0x116   : > { %v1138_v54 = vmax.f32 %v783_v52, 0.0  ;;  %v1170_v55 = vmax.f32 %v879_v53, 0.0  ;;  %1758 = vmatmul.msk.f32.gmra.mxu0 %vm334_vm1, %v222_v50  ;;  %1790 = vmatmul.msk.f32.gmra.mxu1 %vm334_vm1, %v254_v51 }
 0x117   : > { %v974_v56 = vpop.f32.mrf.mxu2  ;;  %v1070_v57 = vpop.f32.mrf.mxu3 }
 0x118   : > { %1266 = vst [vmem:[%s2317_s12 + $0x70] sm:$0xff] %v1138_v54  ;;  %v975_v58 = vadd.f32 %v2305_v10, %v974_v56  ;;  %v1071_v59 = vadd.f32 %v2305_v10, %v1070_v57 }
 0x119   : > { %1298 = vst [vmem:[%s2317_s12 + $0x170] sm:$0xff] %v1170_v55 }
 0x11a   : > { %v1202_v62 = vmax.f32 %v975_v58, 0.0  ;;  %v1234_v63 = vmax.f32 %v1071_v59, 0.0 }
 0x11b   : > { %v785_v0 = vpop.f32.mrf.mxu0  ;;  %v881_v1 = vpop.f32.mrf.mxu1 }
 0x11c   : > { %1330 = vst [vmem:[%s2317_s12 + $0x270] sm:$0xff] %v1202_v62  ;;  %1823 = vmatmul.msk.f32.gmra.mxu2 %vm334_vm1, %v287_v60  ;;  %1855 = vmatmul.msk.f32.gmra.mxu3 %vm334_vm1, %v319_v61  ;;  %v786_v4 = vadd.f32 %v2305_v10, %v785_v0  ;;  %v882_v5 = vadd.f32 %v2305_v10, %v881_v1 }
 0x11d   : > { %1362 = vst [vmem:[%s2317_s12 + $0x370] sm:$0xff] %v1234_v63 }
 0x11e   : > { %v1139_v6 = vmax.f32 %v786_v4, 0.0  ;;  %v1171_v7 = vmax.f32 %v882_v5, 0.0  ;;  %1759 = vmatmul.msk.f32.gmra.mxu0 %vm334_vm1, %v223_v2  ;;  %1791 = vmatmul.msk.f32.gmra.mxu1 %vm334_vm1, %v255_v3 }
 0x11f   : > { %v977_v8 = vpop.f32.mrf.mxu2  ;;  %v1073_v9 = vpop.f32.mrf.mxu3 }
 0x120   : > { %1267 = vst [vmem:[%s2317_s12 + $0x78] sm:$0xff] %v1139_v6  ;;  %v978_v11 = vadd.f32 %v2305_v10, %v977_v8  ;;  %v1074_v12 = vadd.f32 %v2305_v10, %v1073_v9 }
 0x121   : > { %1299 = vst [vmem:[%s2317_s12 + $0x178] sm:$0xff] %v1171_v7 }
 0x122   : > { %v1203_v13 = vmax.f32 %v978_v11, 0.0  ;;  %v1235_v14 = vmax.f32 %v1074_v12, 0.0 }
 0x123   : > { %v788_v15 = vpop.f32.mrf.mxu0  ;;  %v884_v16 = vpop.f32.mrf.mxu1 }
 0x124   : > { %1331 = vst [vmem:[%s2317_s12 + $0x278] sm:$0xff] %v1203_v13  ;;  %v789_v17 = vadd.f32 %v2305_v10, %v788_v15  ;;  %v885_v18 = vadd.f32 %v2305_v10, %v884_v16 }
 0x125   : > { %1363 = vst [vmem:[%s2317_s12 + $0x378] sm:$0xff] %v1235_v14 }
 0x126   : > { %v1140_v19 = vmax.f32 %v789_v17, 0.0  ;;  %v1172_v20 = vmax.f32 %v885_v18, 0.0 }
 0x127   : > { %v980_v21 = vpop.f32.mrf.mxu2  ;;  %v1076_v22 = vpop.f32.mrf.mxu3 }
 0x128   : > { %1268 = vst [vmem:[%s2317_s12 + $0x80] sm:$0xff] %v1140_v19  ;;  %v981_v23 = vadd.f32 %v2305_v10, %v980_v21  ;;  %v1077_v24 = vadd.f32 %v2305_v10, %v1076_v22 }
 0x129   : > { %1300 = vst [vmem:[%s2317_s12 + $0x180] sm:$0xff] %v1172_v20 }
 0x12a   : > { %v1204_v25 = vmax.f32 %v981_v23, 0.0  ;;  %v1236_v26 = vmax.f32 %v1077_v24, 0.0 }
 0x12b   : > { %v791_v27 = vpop.f32.mrf.mxu0  ;;  %v887_v28 = vpop.f32.mrf.mxu1 }
 0x12c   : > { %1332 = vst [vmem:[%s2317_s12 + $0x280] sm:$0xff] %v1204_v25  ;;  %v792_v29 = vadd.f32 %v2305_v10, %v791_v27  ;;  %v888_v30 = vadd.f32 %v2305_v10, %v887_v28 }
 0x12d   : > { %1364 = vst [vmem:[%s2317_s12 + $0x380] sm:$0xff] %v1236_v26 }
 0x12e   : > { %v1141_v31 = vmax.f32 %v792_v29, 0.0  ;;  %v1173_v32 = vmax.f32 %v888_v30, 0.0 }
 0x12f   : > { %v983_v33 = vpop.f32.mrf.mxu2  ;;  %v1079_v34 = vpop.f32.mrf.mxu3 }
 0x130   : > { %1269 = vst [vmem:[%s2317_s12 + $0x88] sm:$0xff] %v1141_v31  ;;  %v984_v35 = vadd.f32 %v2305_v10, %v983_v33  ;;  %v1080_v36 = vadd.f32 %v2305_v10, %v1079_v34 }
 0x131   : > { %1301 = vst [vmem:[%s2317_s12 + $0x188] sm:$0xff] %v1173_v32 }
 0x132   : > { %v1205_v37 = vmax.f32 %v984_v35, 0.0  ;;  %v1237_v38 = vmax.f32 %v1080_v36, 0.0 }
 0x133   : > { %v794_v39 = vpop.f32.mrf.mxu0  ;;  %v890_v40 = vpop.f32.mrf.mxu1 }
 0x134   : > { %1333 = vst [vmem:[%s2317_s12 + $0x288] sm:$0xff] %v1205_v37  ;;  %v795_v41 = vadd.f32 %v2305_v10, %v794_v39  ;;  %v891_v42 = vadd.f32 %v2305_v10, %v890_v40 }
 0x135   : > { %1365 = vst [vmem:[%s2317_s12 + $0x388] sm:$0xff] %v1237_v38 }
 0x136   : > { %v1142_v43 = vmax.f32 %v795_v41, 0.0  ;;  %v1174_v44 = vmax.f32 %v891_v42, 0.0 }
 0x137   : > { %v986_v45 = vpop.f32.mrf.mxu2  ;;  %v1082_v46 = vpop.f32.mrf.mxu3 }
 0x138   : > { %1270 = vst [vmem:[%s2317_s12 + $0x90] sm:$0xff] %v1142_v43  ;;  %v987_v47 = vadd.f32 %v2305_v10, %v986_v45  ;;  %v1083_v48 = vadd.f32 %v2305_v10, %v1082_v46 }
 0x139   : > { %1302 = vst [vmem:[%s2317_s12 + $0x190] sm:$0xff] %v1174_v44 }
 0x13a   : > { %v1206_v49 = vmax.f32 %v987_v47, 0.0  ;;  %v1238_v50 = vmax.f32 %v1083_v48, 0.0 }
 0x13b   : > { %v797_v51 = vpop.f32.mrf.mxu0  ;;  %v893_v52 = vpop.f32.mrf.mxu1 }
 0x13c   : > { %1334 = vst [vmem:[%s2317_s12 + $0x290] sm:$0xff] %v1206_v49  ;;  %v798_v53 = vadd.f32 %v2305_v10, %v797_v51  ;;  %v894_v54 = vadd.f32 %v2305_v10, %v893_v52 }
 0x13d   : > { %1366 = vst [vmem:[%s2317_s12 + $0x390] sm:$0xff] %v1238_v50  ;;  %v2631_v50 = vld [vmem:[%s2842_s2] ss:$0 sm:$0xff] }
 0x13e   : > { %v1143_v55 = vmax.f32 %v798_v53, 0.0  ;;  %v1175_v56 = vmax.f32 %v894_v54, 0.0 }
 0x13f   : > { %v989_v57 = vpop.f32.mrf.mxu2  ;;  %v1085_v58 = vpop.f32.mrf.mxu3 }
 0x140   : > { %1271 = vst [vmem:[%s2317_s12 + $0x98] sm:$0xff] %v1143_v55  ;;  %v990_v59 = vadd.f32 %v2305_v10, %v989_v57  ;;  %v1086_v60 = vadd.f32 %v2305_v10, %v1085_v58 }
 0x141   : > { %1303 = vst [vmem:[%s2317_s12 + $0x198] sm:$0xff] %v1175_v56 }
 0x142   : > { %v1207_v61 = vmax.f32 %v990_v59, 0.0  ;;  %v1239_v62 = vmax.f32 %v1086_v60, 0.0 }
 0x143   : > { %v800_v63 = vpop.f32.mrf.mxu0  ;;  %v896_v0 = vpop.f32.mrf.mxu1 }
 0x144   : > { %1335 = vst [vmem:[%s2317_s12 + $0x298] sm:$0xff] %v1207_v61  ;;  %v801_v1 = vadd.f32 %v2305_v10, %v800_v63  ;;  %v897_v2 = vadd.f32 %v2305_v10, %v896_v0 }
 0x145   : > { %1367 = vst [vmem:[%s2317_s12 + $0x398] sm:$0xff] %v1239_v62 }
 0x146   : > { %v1144_v3 = vmax.f32 %v801_v1, 0.0  ;;  %v1176_v4 = vmax.f32 %v897_v2, 0.0 }
 0x147   : > { %v992_v5 = vpop.f32.mrf.mxu2  ;;  %v1088_v6 = vpop.f32.mrf.mxu3 }
 0x148   : > { %1272 = vst [vmem:[%s2317_s12 + $0xa0] sm:$0xff] %v1144_v3  ;;  %v993_v7 = vadd.f32 %v2305_v10, %v992_v5  ;;  %v1089_v8 = vadd.f32 %v2305_v10, %v1088_v6 }
 0x149   : > { %1304 = vst [vmem:[%s2317_s12 + $0x1a0] sm:$0xff] %v1176_v4 }
 0x14a   : > { %v1208_v9 = vmax.f32 %v993_v7, 0.0  ;;  %v1240_v11 = vmax.f32 %v1089_v8, 0.0 }
 0x14b   : > { %v803_v12 = vpop.f32.mrf.mxu0  ;;  %v899_v13 = vpop.f32.mrf.mxu1 }
 0x14c   : > { %1336 = vst [vmem:[%s2317_s12 + $0x2a0] sm:$0xff] %v1208_v9  ;;  %v804_v14 = vadd.f32 %v2305_v10, %v803_v12  ;;  %v900_v15 = vadd.f32 %v2305_v10, %v899_v13 }
 0x14d   : > { %1368 = vst [vmem:[%s2317_s12 + $0x3a0] sm:$0xff] %v1240_v11 }
 0x14e   : > { %v1145_v16 = vmax.f32 %v804_v14, 0.0  ;;  %v1177_v17 = vmax.f32 %v900_v15, 0.0 }
 0x14f   : > { %v995_v18 = vpop.f32.mrf.mxu2  ;;  %v1091_v19 = vpop.f32.mrf.mxu3 }
 0x150   : > { %1273 = vst [vmem:[%s2317_s12 + $0xa8] sm:$0xff] %v1145_v16  ;;  %v996_v20 = vadd.f32 %v2305_v10, %v995_v18  ;;  %v1092_v21 = vadd.f32 %v2305_v10, %v1091_v19 }
 0x151   : > { %1305 = vst [vmem:[%s2317_s12 + $0x1a8] sm:$0xff] %v1177_v17 }
 0x152   : > { %v1209_v22 = vmax.f32 %v996_v20, 0.0  ;;  %v1241_v23 = vmax.f32 %v1092_v21, 0.0 }
 0x153   : > { %v806_v24 = vpop.f32.mrf.mxu0  ;;  %v902_v25 = vpop.f32.mrf.mxu1 }
 0x154   : > { %1337 = vst [vmem:[%s2317_s12 + $0x2a8] sm:$0xff] %v1209_v22  ;;  %v807_v26 = vadd.f32 %v2305_v10, %v806_v24  ;;  %v903_v27 = vadd.f32 %v2305_v10, %v902_v25 }
 0x155   : > { %1369 = vst [vmem:[%s2317_s12 + $0x3a8] sm:$0xff] %v1241_v23 }
 0x156   : > { %v1146_v28 = vmax.f32 %v807_v26, 0.0  ;;  %v1178_v29 = vmax.f32 %v903_v27, 0.0 }
 0x157   : > { %v998_v30 = vpop.f32.mrf.mxu2  ;;  %v1094_v31 = vpop.f32.mrf.mxu3 }
 0x158   : > { %1274 = vst [vmem:[%s2317_s12 + $0xb0] sm:$0xff] %v1146_v28  ;;  %v999_v32 = vadd.f32 %v2305_v10, %v998_v30  ;;  %v1095_v33 = vadd.f32 %v2305_v10, %v1094_v31 }
 0x159   : > { %1306 = vst [vmem:[%s2317_s12 + $0x1b0] sm:$0xff] %v1178_v29 }
 0x15a   : > { %v1210_v34 = vmax.f32 %v999_v32, 0.0  ;;  %v1242_v35 = vmax.f32 %v1095_v33, 0.0 }
 0x15b   : > { %v809_v36 = vpop.f32.mrf.mxu0  ;;  %v905_v37 = vpop.f32.mrf.mxu1 }
 0x15c   : > { %1338 = vst [vmem:[%s2317_s12 + $0x2b0] sm:$0xff] %v1210_v34  ;;  %v810_v38 = vadd.f32 %v2305_v10, %v809_v36  ;;  %v906_v39 = vadd.f32 %v2305_v10, %v905_v37 }
 0x15d   : > { %1370 = vst [vmem:[%s2317_s12 + $0x3b0] sm:$0xff] %v1242_v35 }
 0x15e   : > { %v1147_v40 = vmax.f32 %v810_v38, 0.0  ;;  %v1179_v41 = vmax.f32 %v906_v39, 0.0 }
 0x15f   : > { %v1001_v42 = vpop.f32.mrf.mxu2  ;;  %v1097_v43 = vpop.f32.mrf.mxu3 }
 0x160   : > { %1275 = vst [vmem:[%s2317_s12 + $0xb8] sm:$0xff] %v1147_v40  ;;  %v1002_v44 = vadd.f32 %v2305_v10, %v1001_v42  ;;  %v1098_v45 = vadd.f32 %v2305_v10, %v1097_v43 }
 0x161   : > { %1307 = vst [vmem:[%s2317_s12 + $0x1b8] sm:$0xff] %v1179_v41 }
 0x162   : > { %v1211_v46 = vmax.f32 %v1002_v44, 0.0  ;;  %v1243_v47 = vmax.f32 %v1098_v45, 0.0 }
 0x163   : > { %v812_v48 = vpop.f32.mrf.mxu0  ;;  %v908_v49 = vpop.f32.mrf.mxu1 }
 0x164   : > { %1339 = vst [vmem:[%s2317_s12 + $0x2b8] sm:$0xff] %v1211_v46  ;;  %v813_v51 = vadd.f32 %v2631_v50, %v812_v48  ;;  %v909_v52 = vadd.f32 %v2631_v50, %v908_v49 }
 0x165   : > { %1371 = vst [vmem:[%s2317_s12 + $0x3b8] sm:$0xff] %v1243_v47 }
 0x166   : > { %v1148_v10 = vmax.f32 %v813_v51, 0.0  ;;  %v1180_v53 = vmax.f32 %v909_v52, 0.0 }
 0x167   : > { %v1004_v54 = vpop.f32.mrf.mxu2  ;;  %v1100_v55 = vpop.f32.mrf.mxu3 }
 0x168   : > { %1276 = vst [vmem:[%s2317_s12 + $0xc0] sm:$0xff] %v1148_v10  ;;  %v1005_v56 = vadd.f32 %v2631_v50, %v1004_v54  ;;  %v1101_v57 = vadd.f32 %v2631_v50, %v1100_v55 }
 0x169   : > { %1308 = vst [vmem:[%s2317_s12 + $0x1c0] sm:$0xff] %v1180_v53 }
 0x16a   : > { %v1212_v58 = vmax.f32 %v1005_v56, 0.0  ;;  %v1244_v59 = vmax.f32 %v1101_v57, 0.0 }
 0x16b   : > { %v815_v60 = vpop.f32.mrf.mxu0  ;;  %v911_v61 = vpop.f32.mrf.mxu1 }
 0x16c   : > { %1340 = vst [vmem:[%s2317_s12 + $0x2c0] sm:$0xff] %v1212_v58  ;;  %v816_v62 = vadd.f32 %v2631_v50, %v815_v60  ;;  %v912_v63 = vadd.f32 %v2631_v50, %v911_v61 }
 0x16d   : > { %1372 = vst [vmem:[%s2317_s12 + $0x3c0] sm:$0xff] %v1244_v59 }
 0x16e   : > { %v1149_v0 = vmax.f32 %v816_v62, 0.0  ;;  %v1181_v1 = vmax.f32 %v912_v63, 0.0 }
 0x16f   : > { %v1007_v2 = vpop.f32.mrf.mxu2  ;;  %v1103_v3 = vpop.f32.mrf.mxu3 }
 0x170   : > { %1277 = vst [vmem:[%s2317_s12 + $0xc8] sm:$0xff] %v1149_v0  ;;  %v1008_v4 = vadd.f32 %v2631_v50, %v1007_v2  ;;  %v1104_v5 = vadd.f32 %v2631_v50, %v1103_v3 }
 0x171   : > { %1309 = vst [vmem:[%s2317_s12 + $0x1c8] sm:$0xff] %v1181_v1 }
 0x172   : > { %v1213_v6 = vmax.f32 %v1008_v4, 0.0  ;;  %v1245_v7 = vmax.f32 %v1104_v5, 0.0 }
 0x173   : > { %v818_v8 = vpop.f32.mrf.mxu0  ;;  %v914_v9 = vpop.f32.mrf.mxu1 }
 0x174   : > { %1341 = vst [vmem:[%s2317_s12 + $0x2c8] sm:$0xff] %v1213_v6  ;;  %v819_v11 = vadd.f32 %v2631_v50, %v818_v8  ;;  %v915_v12 = vadd.f32 %v2631_v50, %v914_v9 }
 0x175   : > { %1373 = vst [vmem:[%s2317_s12 + $0x3c8] sm:$0xff] %v1245_v7 }
 0x176   : > { %v1150_v13 = vmax.f32 %v819_v11, 0.0  ;;  %v1182_v14 = vmax.f32 %v915_v12, 0.0 }
 0x177   : > { %v1010_v15 = vpop.f32.mrf.mxu2  ;;  %v1106_v16 = vpop.f32.mrf.mxu3 }
 0x178   : > { %1278 = vst [vmem:[%s2317_s12 + $0xd0] sm:$0xff] %v1150_v13  ;;  %v1011_v17 = vadd.f32 %v2631_v50, %v1010_v15  ;;  %v1107_v18 = vadd.f32 %v2631_v50, %v1106_v16 }
 0x179   : > { %1310 = vst [vmem:[%s2317_s12 + $0x1d0] sm:$0xff] %v1182_v14 }
 0x17a   : > { %v1214_v19 = vmax.f32 %v1011_v17, 0.0  ;;  %v1246_v20 = vmax.f32 %v1107_v18, 0.0 }
 0x17b   : > { %v821_v21 = vpop.f32.mrf.mxu0  ;;  %v917_v22 = vpop.f32.mrf.mxu1 }
 0x17c   : > { %1342 = vst [vmem:[%s2317_s12 + $0x2d0] sm:$0xff] %v1214_v19  ;;  %v822_v23 = vadd.f32 %v2631_v50, %v821_v21  ;;  %v918_v24 = vadd.f32 %v2631_v50, %v917_v22 }
 0x17d   : > { %1374 = vst [vmem:[%s2317_s12 + $0x3d0] sm:$0xff] %v1246_v20 }
 0x17e   : > { %v1151_v25 = vmax.f32 %v822_v23, 0.0  ;;  %v1183_v26 = vmax.f32 %v918_v24, 0.0 }
 0x17f   : > { %v1013_v27 = vpop.f32.mrf.mxu2  ;;  %v1109_v28 = vpop.f32.mrf.mxu3 }
 0x180   : > { %1279 = vst [vmem:[%s2317_s12 + $0xd8] sm:$0xff] %v1151_v25  ;;  %v1014_v29 = vadd.f32 %v2631_v50, %v1013_v27  ;;  %v1110_v30 = vadd.f32 %v2631_v50, %v1109_v28 }
 0x181   : > { %1311 = vst [vmem:[%s2317_s12 + $0x1d8] sm:$0xff] %v1183_v26 }
 0x182   : > { %v1215_v31 = vmax.f32 %v1014_v29, 0.0  ;;  %v1247_v32 = vmax.f32 %v1110_v30, 0.0 }
 0x183   : > { %v824_v33 = vpop.f32.mrf.mxu0  ;;  %v920_v34 = vpop.f32.mrf.mxu1 }
 0x184   : > { %1343 = vst [vmem:[%s2317_s12 + $0x2d8] sm:$0xff] %v1215_v31  ;;  %v825_v35 = vadd.f32 %v2631_v50, %v824_v33  ;;  %v921_v36 = vadd.f32 %v2631_v50, %v920_v34 }
 0x185   : > { %1375 = vst [vmem:[%s2317_s12 + $0x3d8] sm:$0xff] %v1247_v32 }
 0x186   : > { %v1152_v37 = vmax.f32 %v825_v35, 0.0  ;;  %v1184_v38 = vmax.f32 %v921_v36, 0.0 }
 0x187   : > { %v1016_v39 = vpop.f32.mrf.mxu2  ;;  %v1112_v40 = vpop.f32.mrf.mxu3 }
 0x188   : > { %1280 = vst [vmem:[%s2317_s12 + $0xe0] sm:$0xff] %v1152_v37  ;;  %v1017_v41 = vadd.f32 %v2631_v50, %v1016_v39  ;;  %v1113_v42 = vadd.f32 %v2631_v50, %v1112_v40 }
 0x189   : > { %1312 = vst [vmem:[%s2317_s12 + $0x1e0] sm:$0xff] %v1184_v38 }
 0x18a   : > { %v1216_v43 = vmax.f32 %v1017_v41, 0.0  ;;  %v1248_v44 = vmax.f32 %v1113_v42, 0.0 }
 0x18b   : > { %v827_v45 = vpop.f32.mrf.mxu0  ;;  %v923_v46 = vpop.f32.mrf.mxu1 }
 0x18c   : > { %1344 = vst [vmem:[%s2317_s12 + $0x2e0] sm:$0xff] %v1216_v43  ;;  %v828_v47 = vadd.f32 %v2631_v50, %v827_v45  ;;  %v924_v48 = vadd.f32 %v2631_v50, %v923_v46 }
 0x18d   : > { %1376 = vst [vmem:[%s2317_s12 + $0x3e0] sm:$0xff] %v1248_v44 }
 0x18e   : > { %v1153_v49 = vmax.f32 %v828_v47, 0.0  ;;  %v1185_v51 = vmax.f32 %v924_v48, 0.0 }
 0x18f   : > { %v1019_v52 = vpop.f32.mrf.mxu2  ;;  %v1115_v10 = vpop.f32.mrf.mxu3 }
 0x190   : > { %1281 = vst [vmem:[%s2317_s12 + $0xe8] sm:$0xff] %v1153_v49  ;;  %v1020_v53 = vadd.f32 %v2631_v50, %v1019_v52  ;;  %v1116_v54 = vadd.f32 %v2631_v50, %v1115_v10 }
 0x191   : > { %1313 = vst [vmem:[%s2317_s12 + $0x1e8] sm:$0xff] %v1185_v51 }
 0x192   : > { %v1217_v55 = vmax.f32 %v1020_v53, 0.0  ;;  %v1249_v56 = vmax.f32 %v1116_v54, 0.0 }
 0x193   : > { %v830_v57 = vpop.f32.mrf.mxu0  ;;  %v926_v58 = vpop.f32.mrf.mxu1 }
 0x194   : > { %1345 = vst [vmem:[%s2317_s12 + $0x2e8] sm:$0xff] %v1217_v55  ;;  %v831_v59 = vadd.f32 %v2631_v50, %v830_v57  ;;  %v927_v60 = vadd.f32 %v2631_v50, %v926_v58 }
 0x195   : > { %1377 = vst [vmem:[%s2317_s12 + $0x3e8] sm:$0xff] %v1249_v56 }
 0x196   : > { %v1154_v61 = vmax.f32 %v831_v59, 0.0  ;;  %v1186_v62 = vmax.f32 %v927_v60, 0.0 }
 0x197   : > { %v1022_v63 = vpop.f32.mrf.mxu2  ;;  %v1118_v0 = vpop.f32.mrf.mxu3 }
 0x198   : > { %1282 = vst [vmem:[%s2317_s12 + $0xf0] sm:$0xff] %v1154_v61  ;;  %v1023_v1 = vadd.f32 %v2631_v50, %v1022_v63  ;;  %v1119_v2 = vadd.f32 %v2631_v50, %v1118_v0 }
 0x199   : > { %1314 = vst [vmem:[%s2317_s12 + $0x1f0] sm:$0xff] %v1186_v62 }
 0x19a   : > { %v1218_v3 = vmax.f32 %v1023_v1, 0.0  ;;  %v1250_v4 = vmax.f32 %v1119_v2, 0.0 }
 0x19b   : > { %v833_v5 = vpop.f32.mrf.mxu0  ;;  %v929_v6 = vpop.f32.mrf.mxu1 }
 0x19c   : > { %1346 = vst [vmem:[%s2317_s12 + $0x2f0] sm:$0xff] %v1218_v3  ;;  %v834_v7 = vadd.f32 %v2631_v50, %v833_v5  ;;  %v930_v8 = vadd.f32 %v2631_v50, %v929_v6 }
 0x19d   : > { %1378 = vst [vmem:[%s2317_s12 + $0x3f0] sm:$0xff] %v1250_v4 }
 0x19e   : > { %v1155_v9 = vmax.f32 %v834_v7, 0.0  ;;  %v1187_v11 = vmax.f32 %v930_v8, 0.0 }
 0x19f   : > { %v1025_v12 = vpop.f32.mrf.mxu2  ;;  %v1121_v13 = vpop.f32.mrf.mxu3 }
 0x1a0   : > { %1283 = vst [vmem:[%s2317_s12 + $0xf8] sm:$0xff] %v1155_v9  ;;  %v1026_v14 = vadd.f32 %v2631_v50, %v1025_v12  ;;  %v1122_v15 = vadd.f32 %v2631_v50, %v1121_v13 }
 0x1a1   : > { %1315 = vst [vmem:[%s2317_s12 + $0x1f8] sm:$0xff] %v1187_v11  ;;  %1386 = sbr.rel (!%p2129_p4) target bundleno = 486 (0x1e6), region = 36 }
 0x1a2   : > { %v1219_v16 = vmax.f32 %v1026_v14, 0.0  ;;  %v1251_v17 = vmax.f32 %v1122_v15, 0.0 }
 0x1a4   : > { %1347 = vst [vmem:[%s2317_s12 + $0x2f8] sm:$0xff] %v1219_v16 }
 0x1a5   : > { %1379 = vst [vmem:[%s2317_s12 + $0x3f8] sm:$0xff] %v1251_v17 }
 0x1a6   : > { %s2854_s6 = smov (!%p1389_p8, %s1388_s6), 128 }
 0x1a7   : > { %s1858_s11 = sshll.u32 %s2854_s6, 3 }
 0x1a8   : > { %p1861_p9 = scmp.eq.s32.totalorder %s1858_s11, 0 }
 0x1a9   : > { %s2711_s14 = sshrl.u32 (!%p1861_p9), %s2854_s6, 5 }
 0x1aa   : > { %1397 = sbr.rel (%p1861_p9) target bundleno = 486 (0x1e6), region = 40  ;;  %p1862_p10 = scmp.le.s32.totalorder (!%p1861_p9), %s2711_s14, 0 }
 0x1af   : > { %1676 = sbr.rel (%p1862_p10) target bundleno = 469 (0x1d5), region = 116  ;;  %s2845_s15 = smov (!%p1862_p10), %s2705_s10 }
 0x1b0   : > { %s2846_s20 = smov (!%p1862_p10), %s2317_s12  ;;  %s2720_s25 = smov (!%p1862_p10), 0  }
 0x1b1   : > { %s2722_s17 = smov (!%p1862_p10), 0  }
 0x1b4 LB: >> { %v1522_v50 = vld [vmem:[%s2058_s20] sm:$0xff]  ;;  %v1524_v18 = vld [vmem:[%s2058_s20 + $0x8] sm:$0xff]  ;;  %v1526_v19 = vld [vmem:[%s2058_s20 + $0x10] sm:$0xff]  ;;  %s1586_s18 = sadd.s32 1, %s2062_s25  ;;  %s1516_s17 = sadd.s32 1, %s2066_s17   ;;  %s2066_s17 = sphi %s2722_s17, %s1516_s17   ;;  %s2062_s25 = sphi %s2720_s25, %s2849_s25   ;;  %s2058_s20 = sphi %s2846_s20, %s2848_s20   ;;  %s2054_s15 = sphi %s2845_s15, %s2847_s15  }
 0x1b5   : >> { %1523 = vst [vmem:[%s2054_s15] sm:$0xff] %v1522_v50  ;;  %v1528_v20 = vld [vmem:[%s2058_s20 + $0x18] sm:$0xff]  ;;  %p1587_p11 = scmp.ge.s32.totalorder %s1586_s18, %s2711_s14  ;;  %v1530_v21 = vld [vmem:[%s2058_s20 + $0x20] sm:$0xff]  ;;  %v1532_v22 = vld [vmem:[%s2058_s20 + $0x28] sm:$0xff]  ;;  %p1515_p12 = scmp.ge.s32.totalorder %s1516_s17, %s2711_s14 }
 0x1b6   : >> { %1525 = vst [vmem:[%s2054_s15 + $0x8] sm:$0xff] %v1524_v18  ;;  %v1534_v23 = vld [vmem:[%s2058_s20 + $0x30] sm:$0xff]  ;;  %v1536_v24 = vld [vmem:[%s2058_s20 + $0x38] sm:$0xff]  ;;  %v1538_v25 = vld [vmem:[%s2058_s20 + $0x40] sm:$0xff] }
 0x1b7   : >> { %1527 = vst [vmem:[%s2054_s15 + $0x10] sm:$0xff] %v1526_v19  ;;  %s2856_s18 = smov (%p1587_p11, %s1586_s18), 0  ;;  %v1540_v26 = vld [vmem:[%s2058_s20 + $0x48] sm:$0xff]  ;;  %v1542_v27 = vld [vmem:[%s2058_s20 + $0x50] sm:$0xff]  ;;  %v1544_v28 = vld [vmem:[%s2058_s20 + $0x58] sm:$0xff] }
 0x1b8   : >> { %1529 = vst [vmem:[%s2054_s15 + $0x18] sm:$0xff] %v1528_v20  ;;  %s1863_s21 = sshll.u32 %s2856_s18, 8  ;;  %v1546_v29 = vld [vmem:[%s2058_s20 + $0x60] sm:$0xff]  ;;  %v1548_v30 = vld [vmem:[%s2058_s20 + $0x68] sm:$0xff]  ;;  %v1550_v31 = vld [vmem:[%s2058_s20 + $0x70] sm:$0xff]  ;;  %s2849_s25 = smov %s2856_s18 }
 0x1b9   : >> { %1531 = vst [vmem:[%s2054_s15 + $0x20] sm:$0xff] %v1530_v21  ;;  %s2754_s22 = scalar_lea.vmem %s2317_s12, %s1863_s21 [#allocation2]   ;;  %s2757_s23 = scalar_lea.vmem %s2705_s10, %s1863_s21   ;;  %v1552_v32 = vld [vmem:[%s2058_s20 + $0x78] sm:$0xff]  ;;  %v1554_v33 = vld [vmem:[%s2058_s20 + $0x80] sm:$0xff]  ;;  %v1556_v34 = vld [vmem:[%s2058_s20 + $0x88] sm:$0xff] }
 0x1ba   : >> { %1533 = vst [vmem:[%s2054_s15 + $0x28] sm:$0xff] %v1532_v22  ;;  %v1558_v35 = vld [vmem:[%s2058_s20 + $0x90] sm:$0xff]  ;;  %v1560_v36 = vld [vmem:[%s2058_s20 + $0x98] sm:$0xff]  ;;  %v1562_v37 = vld [vmem:[%s2058_s20 + $0xa0] sm:$0xff] }
 0x1bb   : >> { %1535 = vst [vmem:[%s2054_s15 + $0x30] sm:$0xff] %v1534_v23  ;;  %v1564_v38 = vld [vmem:[%s2058_s20 + $0xa8] sm:$0xff]  ;;  %v1566_v39 = vld [vmem:[%s2058_s20 + $0xb0] sm:$0xff]  ;;  %v1568_v40 = vld [vmem:[%s2058_s20 + $0xb8] sm:$0xff] }
 0x1bc   : >> { %1537 = vst [vmem:[%s2054_s15 + $0x38] sm:$0xff] %v1536_v24  ;;  %v1570_v41 = vld [vmem:[%s2058_s20 + $0xc0] sm:$0xff]  ;;  %v1572_v42 = vld [vmem:[%s2058_s20 + $0xc8] sm:$0xff]  ;;  %v1574_v43 = vld [vmem:[%s2058_s20 + $0xd0] sm:$0xff] }
 0x1bd   : >> { %1539 = vst [vmem:[%s2054_s15 + $0x40] sm:$0xff] %v1538_v25  ;;  %v1576_v44 = vld [vmem:[%s2058_s20 + $0xd8] sm:$0xff]  ;;  %v1578_v45 = vld [vmem:[%s2058_s20 + $0xe0] sm:$0xff]  ;;  %v1580_v46 = vld [vmem:[%s2058_s20 + $0xe8] sm:$0xff] }
 0x1be   : >> { %1541 = vst [vmem:[%s2054_s15 + $0x48] sm:$0xff] %v1540_v26  ;;  %v1582_v47 = vld [vmem:[%s2058_s20 + $0xf0] sm:$0xff]  ;;  %v1584_v48 = vld [vmem:[%s2058_s20 + $0xf8] sm:$0xff]  ;;  %s2848_s20 = smov %s2754_s22 }
 0x1bf   : >> { %1543 = vst [vmem:[%s2054_s15 + $0x50] sm:$0xff] %v1542_v27 }
 0x1c0   : >> { %1545 = vst [vmem:[%s2054_s15 + $0x58] sm:$0xff] %v1544_v28 }
 0x1c1   : >> { %1547 = vst [vmem:[%s2054_s15 + $0x60] sm:$0xff] %v1546_v29 }
 0x1c2   : >> { %1549 = vst [vmem:[%s2054_s15 + $0x68] sm:$0xff] %v1548_v30 }
 0x1c3   : >> { %1551 = vst [vmem:[%s2054_s15 + $0x70] sm:$0xff] %v1550_v31 }
 0x1c4   : >> { %1553 = vst [vmem:[%s2054_s15 + $0x78] sm:$0xff] %v1552_v32 }
 0x1c5   : >> { %1555 = vst [vmem:[%s2054_s15 + $0x80] sm:$0xff] %v1554_v33 }
 0x1c6   : >> { %1557 = vst [vmem:[%s2054_s15 + $0x88] sm:$0xff] %v1556_v34 }
 0x1c7   : >> { %1559 = vst [vmem:[%s2054_s15 + $0x90] sm:$0xff] %v1558_v35 }
 0x1c8   : >> { %1561 = vst [vmem:[%s2054_s15 + $0x98] sm:$0xff] %v1560_v36 }
 0x1c9   : >> { %1563 = vst [vmem:[%s2054_s15 + $0xa0] sm:$0xff] %v1562_v37 }
 0x1ca   : >> { %1565 = vst [vmem:[%s2054_s15 + $0xa8] sm:$0xff] %v1564_v38 }
 0x1cb   : >> { %1567 = vst [vmem:[%s2054_s15 + $0xb0] sm:$0xff] %v1566_v39 }
 0x1cc   : >> { %1569 = vst [vmem:[%s2054_s15 + $0xb8] sm:$0xff] %v1568_v40 }
 0x1cd   : >> { %1571 = vst [vmem:[%s2054_s15 + $0xc0] sm:$0xff] %v1570_v41 }
 0x1ce   : >> { %1573 = vst [vmem:[%s2054_s15 + $0xc8] sm:$0xff] %v1572_v42 }
 0x1cf   : >> { %1575 = vst [vmem:[%s2054_s15 + $0xd0] sm:$0xff] %v1574_v43 }
 0x1d0   : >> { %1577 = vst [vmem:[%s2054_s15 + $0xd8] sm:$0xff] %v1576_v44  ;;  %1518 = sbr.rel (!%p1515_p12) target bundleno = 436 (0x1b4), region = 122 }
 0x1d1   : >> { %1579 = vst [vmem:[%s2054_s15 + $0xe0] sm:$0xff] %v1578_v45 }
 0x1d2   : >> { %1581 = vst [vmem:[%s2054_s15 + $0xe8] sm:$0xff] %v1580_v46 }
 0x1d3   : >> { %1583 = vst [vmem:[%s2054_s15 + $0xf0] sm:$0xff] %v1582_v47 }
 0x1d4   : >> { %1585 = vst [vmem:[%s2054_s15 + $0xf8] sm:$0xff] %v1584_v48  ;;  %s2847_s15 = smov %s2757_s23 }
 0x1d5 PF: > { %s2822_s24 = sand.u32 31, %s2854_s6   ;;  %s1874_s26 = sshll.u32 %s2711_s14, 8 }
 0x1d6   : > { %s1597_s27 = scalar_lea.vmem %s2317_s12, %s1874_s26 [#allocation2]   ;;  %s1599_s28 = scalar_lea.vmem %s2705_s10, %s1874_s26  }
 0x1d7   : > { %p1868_p13 = scmp.le.s32.totalorder %s2822_s24, 0 }
 0x1d8   : > { %s2068_s29 = smov (!%p1868_p13), %s1599_s28   ;;  %s2072_s30 = smov (!%p1868_p13), %s1597_s27  }
 0x1d9   : > { %1690 = sbr.rel (%p1868_p13) target bundleno = 486 (0x1e6), region = 127  ;;  %s2076_s4 = smov (!%p1868_p13), 0  }
 0x1da   : > { %s2080_s5 = smov (!%p1868_p13), 0  }
 0x1de LB: >> { %v1609_v49 = vld [vmem:[%s2074_s30] sm:$0xff]  ;;  %s1611_s6 = sadd.s32 1, %s2078_s4  ;;  %s1603_s5 = sadd.s32 1, %s2082_s5   ;;  %s2082_s5 = sphi %s2080_s5, %s1603_s5   ;;  %s2078_s4 = sphi %s2076_s4, %s2077_s4   ;;  %s2074_s30 = sphi %s2072_s30, %s1616_s30   ;;  %s2070_s29 = sphi %s2068_s29, %s1617_s29  }
 0x1df   : >> { %1610 = vst [vmem:[%s2070_s29] sm:$0xff] %v1609_v49  ;;  %p1612_p0 = scmp.ge.s32.totalorder %s1611_s6, %s2822_s24  ;;  %p1602_p1 = scmp.ge.s32.totalorder %s1603_s5, %s2822_s24 }
 0x1e1   : >> { %s2858_s6 = smov (%p1612_p0, %s1611_s6), 0  ;;  %1605 = sbr.rel (!%p1602_p1) target bundleno = 478 (0x1de), region = 133 }
 0x1e2   : >> { %s1869_s12 = sshll.u32 %s2858_s6, 3  ;;  %s2077_s4 = smov %s2858_s6  }
 0x1e3   : >> { %s1616_s30 = scalar_lea.vmem %s1597_s27, %s1869_s12 [#allocation2]   ;;  %s1617_s29 = scalar_lea.vmem %s1599_s28, %s1869_s12  }
 0x1e6 PF: > { %p10_p2 = scmp.ge.s32.totalorder %s2119_s16, 4   ;;  %s2850_s12 = smov %s2046_s13 }
 0x1e7   : > { %s2851_s13 = smov %s2127_s19  ;;  %s2852_s14 = smov %s2119_s16 }
 0x1e8   :  { %12 = sbr.rel (!%p10_p2) target bundleno = 2 (0x2), region = 144 }

// kernel: net_forward.6
= control target key start
LH: loop header
LB: loop body
LE: loop exit
PB: predicated region body
PF: predicated region fallthrough
CT: control target
= control target key end

     0   :  { %s1196_s0 = inlined_call_operand.vmem [shape: f32[2,196,128], index: 0, kind: input, shape index: {}]   ;;  %s1197_s1 = inlined_call_operand.vmem [shape: f32[2,196,128], index: 1, kind: input, shape index: {}]   ;;  %s1198_s2 = inlined_call_operand.vmem [shape: f32[2,196,128], index: 2, kind: input, shape index: {}]   ;;  %s1199_s3 = inlined_call_operand.vmem [shape: f32[2,196,128], index: 3, kind: input, shape index: {}]   ;;  %s1200_s4 = inlined_call_operand.vmem [shape: f32[2,196,128], index: 4, kind: output, shape index: {}]  }
   0x1   :  { %v17_v0 = vld [vmem:[%s1196_s0] sm:$0xff]  ;;  %v18_v5 = vld [vmem:[%s1196_s0 + $0x8] sm:$0xff]  ;;  %v19_v11 = vld [vmem:[%s1196_s0 + $0x10] sm:$0xff] }
   0x2   :  { %v67_v1 = vld [vmem:[%s1197_s1] sm:$0xff]  ;;  %v68_v6 = vld [vmem:[%s1197_s1 + $0x8] sm:$0xff]  ;;  %v69_v13 = vld [vmem:[%s1197_s1 + $0x10] sm:$0xff] }
   0x3   :  { %v167_v2 = vld [vmem:[%s1198_s2] sm:$0xff]  ;;  %v117_v3 = vmax.f32 %v17_v0, %v67_v1  ;;  %v118_v8 = vmax.f32 %v18_v5, %v68_v6  ;;  %v168_v9 = vld [vmem:[%s1198_s2 + $0x8] sm:$0xff]  ;;  %v169_v14 = vld [vmem:[%s1198_s2 + $0x10] sm:$0xff]  ;;  %v119_v17 = vmax.f32 %v19_v11, %v69_v13 }
   0x4   :  { %v217_v4 = vld [vmem:[%s1199_s3] sm:$0xff]  ;;  %v218_v10 = vld [vmem:[%s1199_s3 + $0x8] sm:$0xff]  ;;  %v219_v15 = vld [vmem:[%s1199_s3 + $0x10] sm:$0xff] }
   0x5   :  { %v267_v7 = vmax.f32 %v167_v2, %v217_v4  ;;  %v268_v12 = vmax.f32 %v168_v9, %v218_v10  ;;  %v269_v18 = vmax.f32 %v169_v14, %v219_v15  ;;  %v20_v19 = vld [vmem:[%s1196_s0 + $0x18] sm:$0xff]  ;;  %v21_v25 = vld [vmem:[%s1196_s0 + $0x20] sm:$0xff]  ;;  %v22_v32 = vld [vmem:[%s1196_s0 + $0x28] sm:$0xff] }
   0x6   :  { %v70_v20 = vld [vmem:[%s1197_s1 + $0x18] sm:$0xff]  ;;  %v71_v26 = vld [vmem:[%s1197_s1 + $0x20] sm:$0xff]  ;;  %v72_v34 = vld [vmem:[%s1197_s1 + $0x28] sm:$0xff] }
   0x7   :  { %v317_v16 = vmax.f32 %v117_v3, %v267_v7  ;;  %v170_v21 = vld [vmem:[%s1198_s2 + $0x18] sm:$0xff]  ;;  %v318_v22 = vmax.f32 %v118_v8, %v268_v12  ;;  %v120_v23 = vmax.f32 %v20_v19, %v70_v20  ;;  %v319_v27 = vmax.f32 %v119_v17, %v269_v18  ;;  %v171_v30 = vld [vmem:[%s1198_s2 + $0x20] sm:$0xff]  ;;  %v172_v35 = vld [vmem:[%s1198_s2 + $0x28] sm:$0xff] }
   0x8   :  { %v220_v24 = vld [vmem:[%s1199_s3 + $0x18] sm:$0xff]  ;;  %v121_v29 = vmax.f32 %v21_v25, %v71_v26  ;;  %v221_v31 = vld [vmem:[%s1199_s3 + $0x20] sm:$0xff]  ;;  %v222_v36 = vld [vmem:[%s1199_s3 + $0x28] sm:$0xff]  ;;  %v122_v38 = vmax.f32 %v22_v32, %v72_v34 }
   0x9   :  { %367 = vst [vmem:[%s1200_s4] sm:$0xff] %v317_v16  ;;  %v270_v28 = vmax.f32 %v170_v21, %v220_v24  ;;  %v271_v33 = vmax.f32 %v171_v30, %v221_v31  ;;  %v272_v39 = vmax.f32 %v172_v35, %v222_v36  ;;  %v23_v40 = vld [vmem:[%s1196_s0 + $0x30] sm:$0xff]  ;;  %v24_v46 = vld [vmem:[%s1196_s0 + $0x38] sm:$0xff]  ;;  %v25_v53 = vld [vmem:[%s1196_s0 + $0x40] sm:$0xff] }
   0xa   :  { %368 = vst [vmem:[%s1200_s4 + $0x8] sm:$0xff] %v318_v22  ;;  %v73_v41 = vld [vmem:[%s1197_s1 + $0x30] sm:$0xff]  ;;  %v74_v47 = vld [vmem:[%s1197_s1 + $0x38] sm:$0xff]  ;;  %v75_v55 = vld [vmem:[%s1197_s1 + $0x40] sm:$0xff] }
   0xb   :  { %369 = vst [vmem:[%s1200_s4 + $0x10] sm:$0xff] %v319_v27  ;;  %v320_v37 = vmax.f32 %v120_v23, %v270_v28  ;;  %v173_v42 = vld [vmem:[%s1198_s2 + $0x30] sm:$0xff]  ;;  %v321_v43 = vmax.f32 %v121_v29, %v271_v33  ;;  %v123_v44 = vmax.f32 %v23_v40, %v73_v41  ;;  %v322_v48 = vmax.f32 %v122_v38, %v272_v39  ;;  %v174_v51 = vld [vmem:[%s1198_s2 + $0x38] sm:$0xff]  ;;  %v175_v56 = vld [vmem:[%s1198_s2 + $0x40] sm:$0xff] }
   0xc   :  { %v223_v45 = vld [vmem:[%s1199_s3 + $0x30] sm:$0xff]  ;;  %v124_v50 = vmax.f32 %v24_v46, %v74_v47  ;;  %v224_v52 = vld [vmem:[%s1199_s3 + $0x38] sm:$0xff]  ;;  %v225_v57 = vld [vmem:[%s1199_s3 + $0x40] sm:$0xff]  ;;  %v125_v59 = vmax.f32 %v25_v53, %v75_v55 }
   0xd   :  { %370 = vst [vmem:[%s1200_s4 + $0x18] sm:$0xff] %v320_v37  ;;  %v273_v49 = vmax.f32 %v173_v42, %v223_v45  ;;  %v274_v54 = vmax.f32 %v174_v51, %v224_v52  ;;  %v275_v60 = vmax.f32 %v175_v56, %v225_v57  ;;  %v26_v61 = vld [vmem:[%s1196_s0 + $0x48] sm:$0xff]  ;;  %v27_v3 = vld [vmem:[%s1196_s0 + $0x50] sm:$0xff]  ;;  %v28_v10 = vld [vmem:[%s1196_s0 + $0x58] sm:$0xff] }
   0xe   :  { %371 = vst [vmem:[%s1200_s4 + $0x20] sm:$0xff] %v321_v43  ;;  %v76_v62 = vld [vmem:[%s1197_s1 + $0x48] sm:$0xff]  ;;  %v77_v4 = vld [vmem:[%s1197_s1 + $0x50] sm:$0xff]  ;;  %v78_v12 = vld [vmem:[%s1197_s1 + $0x58] sm:$0xff] }
   0xf   :  { %372 = vst [vmem:[%s1200_s4 + $0x28] sm:$0xff] %v322_v48  ;;  %v323_v58 = vmax.f32 %v123_v44, %v273_v49  ;;  %v176_v63 = vld [vmem:[%s1198_s2 + $0x48] sm:$0xff]  ;;  %v324_v0 = vmax.f32 %v124_v50, %v274_v54  ;;  %v126_v1 = vmax.f32 %v26_v61, %v76_v62  ;;  %v325_v5 = vmax.f32 %v125_v59, %v275_v60  ;;  %v177_v8 = vld [vmem:[%s1198_s2 + $0x50] sm:$0xff]  ;;  %v178_v13 = vld [vmem:[%s1198_s2 + $0x58] sm:$0xff] }
  0x10   :  { %v226_v2 = vld [vmem:[%s1199_s3 + $0x48] sm:$0xff]  ;;  %v127_v7 = vmax.f32 %v27_v3, %v77_v4  ;;  %v227_v9 = vld [vmem:[%s1199_s3 + $0x50] sm:$0xff]  ;;  %v228_v14 = vld [vmem:[%s1199_s3 + $0x58] sm:$0xff]  ;;  %v128_v16 = vmax.f32 %v28_v10, %v78_v12 }
  0x11   :  { %373 = vst [vmem:[%s1200_s4 + $0x30] sm:$0xff] %v323_v58  ;;  %v276_v6 = vmax.f32 %v176_v63, %v226_v2  ;;  %v277_v11 = vmax.f32 %v177_v8, %v227_v9  ;;  %v278_v17 = vmax.f32 %v178_v13, %v228_v14  ;;  %v29_v18 = vld [vmem:[%s1196_s0 + $0x60] sm:$0xff]  ;;  %v30_v24 = vld [vmem:[%s1196_s0 + $0x68] sm:$0xff]  ;;  %v31_v31 = vld [vmem:[%s1196_s0 + $0x70] sm:$0xff] }
  0x12   :  { %374 = vst [vmem:[%s1200_s4 + $0x38] sm:$0xff] %v324_v0  ;;  %v79_v19 = vld [vmem:[%s1197_s1 + $0x60] sm:$0xff]  ;;  %v80_v25 = vld [vmem:[%s1197_s1 + $0x68] sm:$0xff]  ;;  %v81_v33 = vld [vmem:[%s1197_s1 + $0x70] sm:$0xff] }
  0x13   :  { %375 = vst [vmem:[%s1200_s4 + $0x40] sm:$0xff] %v325_v5  ;;  %v326_v15 = vmax.f32 %v126_v1, %v276_v6  ;;  %v179_v20 = vld [vmem:[%s1198_s2 + $0x60] sm:$0xff]  ;;  %v327_v21 = vmax.f32 %v127_v7, %v277_v11  ;;  %v129_v22 = vmax.f32 %v29_v18, %v79_v19  ;;  %v328_v26 = vmax.f32 %v128_v16, %v278_v17  ;;  %v180_v29 = vld [vmem:[%s1198_s2 + $0x68] sm:$0xff]  ;;  %v181_v34 = vld [vmem:[%s1198_s2 + $0x70] sm:$0xff] }
  0x14   :  { %v229_v23 = vld [vmem:[%s1199_s3 + $0x60] sm:$0xff]  ;;  %v130_v28 = vmax.f32 %v30_v24, %v80_v25  ;;  %v230_v30 = vld [vmem:[%s1199_s3 + $0x68] sm:$0xff]  ;;  %v231_v35 = vld [vmem:[%s1199_s3 + $0x70] sm:$0xff]  ;;  %v131_v37 = vmax.f32 %v31_v31, %v81_v33 }
  0x15   :  { %376 = vst [vmem:[%s1200_s4 + $0x48] sm:$0xff] %v326_v15  ;;  %v279_v27 = vmax.f32 %v179_v20, %v229_v23  ;;  %v280_v32 = vmax.f32 %v180_v29, %v230_v30  ;;  %v281_v38 = vmax.f32 %v181_v34, %v231_v35  ;;  %v32_v39 = vld [vmem:[%s1196_s0 + $0x78] sm:$0xff]  ;;  %v33_v45 = vld [vmem:[%s1196_s0 + $0x80] sm:$0xff]  ;;  %v34_v52 = vld [vmem:[%s1196_s0 + $0x88] sm:$0xff] }
  0x16   :  { %377 = vst [vmem:[%s1200_s4 + $0x50] sm:$0xff] %v327_v21  ;;  %v82_v40 = vld [vmem:[%s1197_s1 + $0x78] sm:$0xff]  ;;  %v83_v46 = vld [vmem:[%s1197_s1 + $0x80] sm:$0xff]  ;;  %v84_v54 = vld [vmem:[%s1197_s1 + $0x88] sm:$0xff] }
  0x17   :  { %378 = vst [vmem:[%s1200_s4 + $0x58] sm:$0xff] %v328_v26  ;;  %v329_v36 = vmax.f32 %v129_v22, %v279_v27  ;;  %v182_v41 = vld [vmem:[%s1198_s2 + $0x78] sm:$0xff]  ;;  %v330_v42 = vmax.f32 %v130_v28, %v280_v32  ;;  %v132_v43 = vmax.f32 %v32_v39, %v82_v40  ;;  %v331_v47 = vmax.f32 %v131_v37, %v281_v38  ;;  %v183_v50 = vld [vmem:[%s1198_s2 + $0x80] sm:$0xff]  ;;  %v184_v55 = vld [vmem:[%s1198_s2 + $0x88] sm:$0xff] }
  0x18   :  { %v232_v44 = vld [vmem:[%s1199_s3 + $0x78] sm:$0xff]  ;;  %v133_v49 = vmax.f32 %v33_v45, %v83_v46  ;;  %v233_v51 = vld [vmem:[%s1199_s3 + $0x80] sm:$0xff]  ;;  %v234_v56 = vld [vmem:[%s1199_s3 + $0x88] sm:$0xff]  ;;  %v134_v58 = vmax.f32 %v34_v52, %v84_v54 }
  0x19   :  { %379 = vst [vmem:[%s1200_s4 + $0x60] sm:$0xff] %v329_v36  ;;  %v282_v48 = vmax.f32 %v182_v41, %v232_v44  ;;  %v283_v53 = vmax.f32 %v183_v50, %v233_v51  ;;  %v284_v59 = vmax.f32 %v184_v55, %v234_v56  ;;  %v35_v60 = vld [vmem:[%s1196_s0 + $0x90] sm:$0xff]  ;;  %v36_v2 = vld [vmem:[%s1196_s0 + $0x98] sm:$0xff]  ;;  %v37_v9 = vld [vmem:[%s1196_s0 + $0xa0] sm:$0xff] }
  0x1a   :  { %380 = vst [vmem:[%s1200_s4 + $0x68] sm:$0xff] %v330_v42  ;;  %v85_v61 = vld [vmem:[%s1197_s1 + $0x90] sm:$0xff]  ;;  %v86_v3 = vld [vmem:[%s1197_s1 + $0x98] sm:$0xff]  ;;  %v87_v11 = vld [vmem:[%s1197_s1 + $0xa0] sm:$0xff] }
  0x1b   :  { %381 = vst [vmem:[%s1200_s4 + $0x70] sm:$0xff] %v331_v47  ;;  %v332_v57 = vmax.f32 %v132_v43, %v282_v48  ;;  %v185_v62 = vld [vmem:[%s1198_s2 + $0x90] sm:$0xff]  ;;  %v333_v63 = vmax.f32 %v133_v49, %v283_v53  ;;  %v135_v0 = vmax.f32 %v35_v60, %v85_v61  ;;  %v334_v4 = vmax.f32 %v134_v58, %v284_v59  ;;  %v186_v7 = vld [vmem:[%s1198_s2 + $0x98] sm:$0xff]  ;;  %v187_v12 = vld [vmem:[%s1198_s2 + $0xa0] sm:$0xff] }
  0x1c   :  { %v235_v1 = vld [vmem:[%s1199_s3 + $0x90] sm:$0xff]  ;;  %v136_v6 = vmax.f32 %v36_v2, %v86_v3  ;;  %v236_v8 = vld [vmem:[%s1199_s3 + $0x98] sm:$0xff]  ;;  %v237_v13 = vld [vmem:[%s1199_s3 + $0xa0] sm:$0xff]  ;;  %v137_v15 = vmax.f32 %v37_v9, %v87_v11 }
  0x1d   :  { %382 = vst [vmem:[%s1200_s4 + $0x78] sm:$0xff] %v332_v57  ;;  %v285_v5 = vmax.f32 %v185_v62, %v235_v1  ;;  %v286_v10 = vmax.f32 %v186_v7, %v236_v8  ;;  %v287_v16 = vmax.f32 %v187_v12, %v237_v13  ;;  %v38_v17 = vld [vmem:[%s1196_s0 + $0xa8] sm:$0xff]  ;;  %v39_v23 = vld [vmem:[%s1196_s0 + $0xb0] sm:$0xff]  ;;  %v40_v30 = vld [vmem:[%s1196_s0 + $0xb8] sm:$0xff] }
  0x1e   :  { %383 = vst [vmem:[%s1200_s4 + $0x80] sm:$0xff] %v333_v63  ;;  %v88_v18 = vld [vmem:[%s1197_s1 + $0xa8] sm:$0xff]  ;;  %v89_v24 = vld [vmem:[%s1197_s1 + $0xb0] sm:$0xff]  ;;  %v90_v32 = vld [vmem:[%s1197_s1 + $0xb8] sm:$0xff] }
  0x1f   :  { %384 = vst [vmem:[%s1200_s4 + $0x88] sm:$0xff] %v334_v4  ;;  %v335_v14 = vmax.f32 %v135_v0, %v285_v5  ;;  %v188_v19 = vld [vmem:[%s1198_s2 + $0xa8] sm:$0xff]  ;;  %v336_v20 = vmax.f32 %v136_v6, %v286_v10  ;;  %v138_v21 = vmax.f32 %v38_v17, %v88_v18  ;;  %v337_v25 = vmax.f32 %v137_v15, %v287_v16  ;;  %v189_v28 = vld [vmem:[%s1198_s2 + $0xb0] sm:$0xff]  ;;  %v190_v33 = vld [vmem:[%s1198_s2 + $0xb8] sm:$0xff] }
  0x20   :  { %v238_v22 = vld [vmem:[%s1199_s3 + $0xa8] sm:$0xff]  ;;  %v139_v27 = vmax.f32 %v39_v23, %v89_v24  ;;  %v239_v29 = vld [vmem:[%s1199_s3 + $0xb0] sm:$0xff]  ;;  %v240_v34 = vld [vmem:[%s1199_s3 + $0xb8] sm:$0xff]  ;;  %v140_v36 = vmax.f32 %v40_v30, %v90_v32 }
  0x21   :  { %385 = vst [vmem:[%s1200_s4 + $0x90] sm:$0xff] %v335_v14  ;;  %v288_v26 = vmax.f32 %v188_v19, %v238_v22  ;;  %v289_v31 = vmax.f32 %v189_v28, %v239_v29  ;;  %v290_v37 = vmax.f32 %v190_v33, %v240_v34  ;;  %v41_v38 = vld [vmem:[%s1196_s0 + $0xc0] sm:$0xf]  ;;  %v42_v40 = vld [vmem:[%s1196_s0 + $0xc8] sm:$0xff]  ;;  %v43_v51 = vld [vmem:[%s1196_s0 + $0xd0] sm:$0xff] }
  0x22   :  { %386 = vst [vmem:[%s1200_s4 + $0x98] sm:$0xff] %v336_v20  ;;  %v91_v39 = vld [vmem:[%s1197_s1 + $0xc0] sm:$0xf]  ;;  %v92_v45 = vld [vmem:[%s1197_s1 + $0xc8] sm:$0xff]  ;;  %v93_v53 = vld [vmem:[%s1197_s1 + $0xd0] sm:$0xff] }
  0x23   :  { %387 = vst [vmem:[%s1200_s4 + $0xa0] sm:$0xff] %v337_v25  ;;  %v338_v35 = vmax.f32 %v138_v21, %v288_v26  ;;  %v339_v41 = vmax.f32 %v139_v27, %v289_v31  ;;  %v141_v42 = vmax.f32 %v41_v38, %v91_v39  ;;  %v191_v43 = vld [vmem:[%s1198_s2 + $0xc0] sm:$0xf]  ;;  %v340_v46 = vmax.f32 %v140_v36, %v290_v37  ;;  %v192_v49 = vld [vmem:[%s1198_s2 + $0xc8] sm:$0xff]  ;;  %v193_v54 = vld [vmem:[%s1198_s2 + $0xd0] sm:$0xff] }
  0x24   :  { %v241_v44 = vld [vmem:[%s1199_s3 + $0xc0] sm:$0xf]  ;;  %v142_v48 = vmax.f32 %v42_v40, %v92_v45  ;;  %v242_v50 = vld [vmem:[%s1199_s3 + $0xc8] sm:$0xff]  ;;  %v243_v55 = vld [vmem:[%s1199_s3 + $0xd0] sm:$0xff]  ;;  %v143_v57 = vmax.f32 %v43_v51, %v93_v53 }
  0x25   :  { %388 = vst [vmem:[%s1200_s4 + $0xa8] sm:$0xff] %v338_v35  ;;  %v291_v47 = vmax.f32 %v191_v43, %v241_v44  ;;  %v292_v52 = vmax.f32 %v192_v49, %v242_v50  ;;  %v293_v58 = vmax.f32 %v193_v54, %v243_v55  ;;  %v44_v59 = vld [vmem:[%s1196_s0 + $0xd8] sm:$0xff]  ;;  %v45_v1 = vld [vmem:[%s1196_s0 + $0xe0] sm:$0xff]  ;;  %v46_v8 = vld [vmem:[%s1196_s0 + $0xe8] sm:$0xff] }
  0x26   :  { %389 = vst [vmem:[%s1200_s4 + $0xb0] sm:$0xff] %v339_v41  ;;  %v94_v60 = vld [vmem:[%s1197_s1 + $0xd8] sm:$0xff]  ;;  %v95_v2 = vld [vmem:[%s1197_s1 + $0xe0] sm:$0xff]  ;;  %v96_v10 = vld [vmem:[%s1197_s1 + $0xe8] sm:$0xff] }
  0x27   :  { %390 = vst [vmem:[%s1200_s4 + $0xb8] sm:$0xff] %v340_v46  ;;  %v341_v56 = vmax.f32 %v141_v42, %v291_v47  ;;  %v194_v61 = vld [vmem:[%s1198_s2 + $0xd8] sm:$0xff]  ;;  %v342_v62 = vmax.f32 %v142_v48, %v292_v52  ;;  %v144_v63 = vmax.f32 %v44_v59, %v94_v60  ;;  %v343_v3 = vmax.f32 %v143_v57, %v293_v58  ;;  %v195_v6 = vld [vmem:[%s1198_s2 + $0xe0] sm:$0xff]  ;;  %v196_v11 = vld [vmem:[%s1198_s2 + $0xe8] sm:$0xff] }
  0x28   :  { %v244_v0 = vld [vmem:[%s1199_s3 + $0xd8] sm:$0xff]  ;;  %v145_v5 = vmax.f32 %v45_v1, %v95_v2  ;;  %v245_v7 = vld [vmem:[%s1199_s3 + $0xe0] sm:$0xff]  ;;  %v246_v12 = vld [vmem:[%s1199_s3 + $0xe8] sm:$0xff]  ;;  %v146_v14 = vmax.f32 %v46_v8, %v96_v10 }
  0x29   :  { %391 = vst [vmem:[%s1200_s4 + $0xc0] sm:$0xf] %v341_v56  ;;  %v294_v4 = vmax.f32 %v194_v61, %v244_v0  ;;  %v295_v9 = vmax.f32 %v195_v6, %v245_v7  ;;  %v296_v15 = vmax.f32 %v196_v11, %v246_v12  ;;  %v47_v16 = vld [vmem:[%s1196_s0 + $0xf0] sm:$0xff]  ;;  %v48_v22 = vld [vmem:[%s1196_s0 + $0xf8] sm:$0xff]  ;;  %v49_v29 = vld [vmem:[%s1196_s0 + $0x100] sm:$0xff] }
  0x2a   :  { %392 = vst [vmem:[%s1200_s4 + $0xc8] sm:$0xff] %v342_v62  ;;  %v97_v17 = vld [vmem:[%s1197_s1 + $0xf0] sm:$0xff]  ;;  %v98_v23 = vld [vmem:[%s1197_s1 + $0xf8] sm:$0xff]  ;;  %v99_v31 = vld [vmem:[%s1197_s1 + $0x100] sm:$0xff] }
  0x2b   :  { %393 = vst [vmem:[%s1200_s4 + $0xd0] sm:$0xff] %v343_v3  ;;  %v344_v13 = vmax.f32 %v144_v63, %v294_v4  ;;  %v197_v18 = vld [vmem:[%s1198_s2 + $0xf0] sm:$0xff]  ;;  %v345_v19 = vmax.f32 %v145_v5, %v295_v9  ;;  %v147_v20 = vmax.f32 %v47_v16, %v97_v17  ;;  %v346_v24 = vmax.f32 %v146_v14, %v296_v15  ;;  %v198_v27 = vld [vmem:[%s1198_s2 + $0xf8] sm:$0xff]  ;;  %v199_v32 = vld [vmem:[%s1198_s2 + $0x100] sm:$0xff] }
  0x2c   :  { %v247_v21 = vld [vmem:[%s1199_s3 + $0xf0] sm:$0xff]  ;;  %v148_v26 = vmax.f32 %v48_v22, %v98_v23  ;;  %v248_v28 = vld [vmem:[%s1199_s3 + $0xf8] sm:$0xff]  ;;  %v249_v33 = vld [vmem:[%s1199_s3 + $0x100] sm:$0xff]  ;;  %v149_v35 = vmax.f32 %v49_v29, %v99_v31 }
  0x2d   :  { %394 = vst [vmem:[%s1200_s4 + $0xd8] sm:$0xff] %v344_v13  ;;  %v297_v25 = vmax.f32 %v197_v18, %v247_v21  ;;  %v298_v30 = vmax.f32 %v198_v27, %v248_v28  ;;  %v299_v36 = vmax.f32 %v199_v32, %v249_v33  ;;  %v50_v37 = vld [vmem:[%s1196_s0 + $0x108] sm:$0xff]  ;;  %v51_v43 = vld [vmem:[%s1196_s0 + $0x110] sm:$0xff]  ;;  %v52_v50 = vld [vmem:[%s1196_s0 + $0x118] sm:$0xff] }
  0x2e   :  { %395 = vst [vmem:[%s1200_s4 + $0xe0] sm:$0xff] %v345_v19  ;;  %v100_v38 = vld [vmem:[%s1197_s1 + $0x108] sm:$0xff]  ;;  %v101_v44 = vld [vmem:[%s1197_s1 + $0x110] sm:$0xff]  ;;  %v102_v52 = vld [vmem:[%s1197_s1 + $0x118] sm:$0xff] }
  0x2f   :  { %396 = vst [vmem:[%s1200_s4 + $0xe8] sm:$0xff] %v346_v24  ;;  %v347_v34 = vmax.f32 %v147_v20, %v297_v25  ;;  %v200_v39 = vld [vmem:[%s1198_s2 + $0x108] sm:$0xff]  ;;  %v348_v40 = vmax.f32 %v148_v26, %v298_v30  ;;  %v150_v41 = vmax.f32 %v50_v37, %v100_v38  ;;  %v349_v45 = vmax.f32 %v149_v35, %v299_v36  ;;  %v201_v48 = vld [vmem:[%s1198_s2 + $0x110] sm:$0xff]  ;;  %v202_v53 = vld [vmem:[%s1198_s2 + $0x118] sm:$0xff] }
  0x30   :  { %v250_v42 = vld [vmem:[%s1199_s3 + $0x108] sm:$0xff]  ;;  %v151_v47 = vmax.f32 %v51_v43, %v101_v44  ;;  %v251_v49 = vld [vmem:[%s1199_s3 + $0x110] sm:$0xff]  ;;  %v252_v54 = vld [vmem:[%s1199_s3 + $0x118] sm:$0xff]  ;;  %v152_v56 = vmax.f32 %v52_v50, %v102_v52 }
  0x31   :  { %397 = vst [vmem:[%s1200_s4 + $0xf0] sm:$0xff] %v347_v34  ;;  %v300_v46 = vmax.f32 %v200_v39, %v250_v42  ;;  %v301_v51 = vmax.f32 %v201_v48, %v251_v49  ;;  %v302_v57 = vmax.f32 %v202_v53, %v252_v54  ;;  %v53_v58 = vld [vmem:[%s1196_s0 + $0x120] sm:$0xff]  ;;  %v54_v0 = vld [vmem:[%s1196_s0 + $0x128] sm:$0xff]  ;;  %v55_v7 = vld [vmem:[%s1196_s0 + $0x130] sm:$0xff] }
  0x32   :  { %398 = vst [vmem:[%s1200_s4 + $0xf8] sm:$0xff] %v348_v40  ;;  %v103_v59 = vld [vmem:[%s1197_s1 + $0x120] sm:$0xff]  ;;  %v104_v1 = vld [vmem:[%s1197_s1 + $0x128] sm:$0xff]  ;;  %v105_v9 = vld [vmem:[%s1197_s1 + $0x130] sm:$0xff] }
  0x33   :  { %399 = vst [vmem:[%s1200_s4 + $0x100] sm:$0xff] %v349_v45  ;;  %v350_v55 = vmax.f32 %v150_v41, %v300_v46  ;;  %v203_v60 = vld [vmem:[%s1198_s2 + $0x120] sm:$0xff]  ;;  %v351_v61 = vmax.f32 %v151_v47, %v301_v51  ;;  %v153_v62 = vmax.f32 %v53_v58, %v103_v59  ;;  %v352_v2 = vmax.f32 %v152_v56, %v302_v57  ;;  %v204_v5 = vld [vmem:[%s1198_s2 + $0x128] sm:$0xff]  ;;  %v205_v10 = vld [vmem:[%s1198_s2 + $0x130] sm:$0xff] }
  0x34   :  { %v253_v63 = vld [vmem:[%s1199_s3 + $0x120] sm:$0xff]  ;;  %v154_v4 = vmax.f32 %v54_v0, %v104_v1  ;;  %v254_v6 = vld [vmem:[%s1199_s3 + $0x128] sm:$0xff]  ;;  %v255_v11 = vld [vmem:[%s1199_s3 + $0x130] sm:$0xff]  ;;  %v155_v13 = vmax.f32 %v55_v7, %v105_v9 }
  0x35   :  { %400 = vst [vmem:[%s1200_s4 + $0x108] sm:$0xff] %v350_v55  ;;  %v303_v3 = vmax.f32 %v203_v60, %v253_v63  ;;  %v304_v8 = vmax.f32 %v204_v5, %v254_v6  ;;  %v305_v14 = vmax.f32 %v205_v10, %v255_v11  ;;  %v56_v15 = vld [vmem:[%s1196_s0 + $0x138] sm:$0xff]  ;;  %v57_v21 = vld [vmem:[%s1196_s0 + $0x140] sm:$0xff]  ;;  %v58_v28 = vld [vmem:[%s1196_s0 + $0x148] sm:$0xff] }
  0x36   :  { %401 = vst [vmem:[%s1200_s4 + $0x110] sm:$0xff] %v351_v61  ;;  %v106_v16 = vld [vmem:[%s1197_s1 + $0x138] sm:$0xff]  ;;  %v107_v22 = vld [vmem:[%s1197_s1 + $0x140] sm:$0xff]  ;;  %v108_v30 = vld [vmem:[%s1197_s1 + $0x148] sm:$0xff] }
  0x37   :  { %402 = vst [vmem:[%s1200_s4 + $0x118] sm:$0xff] %v352_v2  ;;  %v353_v12 = vmax.f32 %v153_v62, %v303_v3  ;;  %v206_v17 = vld [vmem:[%s1198_s2 + $0x138] sm:$0xff]  ;;  %v354_v18 = vmax.f32 %v154_v4, %v304_v8  ;;  %v156_v19 = vmax.f32 %v56_v15, %v106_v16  ;;  %v355_v23 = vmax.f32 %v155_v13, %v305_v14  ;;  %v207_v26 = vld [vmem:[%s1198_s2 + $0x140] sm:$0xff]  ;;  %v208_v31 = vld [vmem:[%s1198_s2 + $0x148] sm:$0xff] }
  0x38   :  { %v256_v20 = vld [vmem:[%s1199_s3 + $0x138] sm:$0xff]  ;;  %v157_v25 = vmax.f32 %v57_v21, %v107_v22  ;;  %v257_v27 = vld [vmem:[%s1199_s3 + $0x140] sm:$0xff]  ;;  %v258_v32 = vld [vmem:[%s1199_s3 + $0x148] sm:$0xff]  ;;  %v158_v34 = vmax.f32 %v58_v28, %v108_v30 }
  0x39   :  { %403 = vst [vmem:[%s1200_s4 + $0x120] sm:$0xff] %v353_v12  ;;  %v306_v24 = vmax.f32 %v206_v17, %v256_v20  ;;  %v307_v29 = vmax.f32 %v207_v26, %v257_v27  ;;  %v308_v35 = vmax.f32 %v208_v31, %v258_v32  ;;  %v59_v36 = vld [vmem:[%s1196_s0 + $0x150] sm:$0xff]  ;;  %v60_v42 = vld [vmem:[%s1196_s0 + $0x158] sm:$0xff]  ;;  %v61_v49 = vld [vmem:[%s1196_s0 + $0x160] sm:$0xff] }
  0x3a   :  { %404 = vst [vmem:[%s1200_s4 + $0x128] sm:$0xff] %v354_v18  ;;  %v109_v37 = vld [vmem:[%s1197_s1 + $0x150] sm:$0xff]  ;;  %v110_v43 = vld [vmem:[%s1197_s1 + $0x158] sm:$0xff]  ;;  %v111_v51 = vld [vmem:[%s1197_s1 + $0x160] sm:$0xff] }
  0x3b   :  { %405 = vst [vmem:[%s1200_s4 + $0x130] sm:$0xff] %v355_v23  ;;  %v356_v33 = vmax.f32 %v156_v19, %v306_v24  ;;  %v209_v38 = vld [vmem:[%s1198_s2 + $0x150] sm:$0xff]  ;;  %v357_v39 = vmax.f32 %v157_v25, %v307_v29  ;;  %v159_v40 = vmax.f32 %v59_v36, %v109_v37  ;;  %v358_v44 = vmax.f32 %v158_v34, %v308_v35  ;;  %v210_v47 = vld [vmem:[%s1198_s2 + $0x158] sm:$0xff]  ;;  %v211_v52 = vld [vmem:[%s1198_s2 + $0x160] sm:$0xff] }
  0x3c   :  { %v259_v41 = vld [vmem:[%s1199_s3 + $0x150] sm:$0xff]  ;;  %v160_v46 = vmax.f32 %v60_v42, %v110_v43  ;;  %v260_v48 = vld [vmem:[%s1199_s3 + $0x158] sm:$0xff]  ;;  %v261_v53 = vld [vmem:[%s1199_s3 + $0x160] sm:$0xff]  ;;  %v161_v55 = vmax.f32 %v61_v49, %v111_v51 }
  0x3d   :  { %406 = vst [vmem:[%s1200_s4 + $0x138] sm:$0xff] %v356_v33  ;;  %v309_v45 = vmax.f32 %v209_v38, %v259_v41  ;;  %v310_v50 = vmax.f32 %v210_v47, %v260_v48  ;;  %v311_v56 = vmax.f32 %v211_v52, %v261_v53  ;;  %v62_v57 = vld [vmem:[%s1196_s0 + $0x168] sm:$0xff]  ;;  %v63_v63 = vld [vmem:[%s1196_s0 + $0x170] sm:$0xff]  ;;  %v64_v6 = vld [vmem:[%s1196_s0 + $0x178] sm:$0xff] }
  0x3e   :  { %407 = vst [vmem:[%s1200_s4 + $0x140] sm:$0xff] %v357_v39  ;;  %v112_v58 = vld [vmem:[%s1197_s1 + $0x168] sm:$0xff]  ;;  %v113_v0 = vld [vmem:[%s1197_s1 + $0x170] sm:$0xff]  ;;  %v114_v8 = vld [vmem:[%s1197_s1 + $0x178] sm:$0xff] }
  0x3f   :  { %408 = vst [vmem:[%s1200_s4 + $0x148] sm:$0xff] %v358_v44  ;;  %v359_v54 = vmax.f32 %v159_v40, %v309_v45  ;;  %v212_v59 = vld [vmem:[%s1198_s2 + $0x168] sm:$0xff]  ;;  %v360_v60 = vmax.f32 %v160_v46, %v310_v50  ;;  %v162_v61 = vmax.f32 %v62_v57, %v112_v58  ;;  %v361_v1 = vmax.f32 %v161_v55, %v311_v56  ;;  %v213_v4 = vld [vmem:[%s1198_s2 + $0x170] sm:$0xff]  ;;  %v214_v9 = vld [vmem:[%s1198_s2 + $0x178] sm:$0xff] }
  0x40   :  { %v262_v62 = vld [vmem:[%s1199_s3 + $0x168] sm:$0xff]  ;;  %v163_v3 = vmax.f32 %v63_v63, %v113_v0  ;;  %v263_v5 = vld [vmem:[%s1199_s3 + $0x170] sm:$0xff]  ;;  %v264_v10 = vld [vmem:[%s1199_s3 + $0x178] sm:$0xff]  ;;  %v164_v12 = vmax.f32 %v64_v6, %v114_v8 }
  0x41   :  { %409 = vst [vmem:[%s1200_s4 + $0x150] sm:$0xff] %v359_v54  ;;  %v312_v2 = vmax.f32 %v212_v59, %v262_v62  ;;  %v313_v7 = vmax.f32 %v213_v4, %v263_v5  ;;  %v314_v13 = vmax.f32 %v214_v9, %v264_v10  ;;  %v65_v14 = vld [vmem:[%s1196_s0 + $0x180] sm:$0xff]  ;;  %v66_v20 = vld [vmem:[%s1196_s0 + $0x188] sm:$0xf] }
  0x42   :  { %410 = vst [vmem:[%s1200_s4 + $0x158] sm:$0xff] %v360_v60  ;;  %v115_v15 = vld [vmem:[%s1197_s1 + $0x180] sm:$0xff]  ;;  %v116_v21 = vld [vmem:[%s1197_s1 + $0x188] sm:$0xf] }
  0x43   :  { %411 = vst [vmem:[%s1200_s4 + $0x160] sm:$0xff] %v361_v1  ;;  %v362_v11 = vmax.f32 %v162_v61, %v312_v2  ;;  %v215_v16 = vld [vmem:[%s1198_s2 + $0x180] sm:$0xff]  ;;  %v363_v17 = vmax.f32 %v163_v3, %v313_v7  ;;  %v165_v18 = vmax.f32 %v65_v14, %v115_v15  ;;  %v364_v22 = vmax.f32 %v164_v12, %v314_v13  ;;  %v216_v25 = vld [vmem:[%s1198_s2 + $0x188] sm:$0xf] }
  0x44   :  { %v265_v19 = vld [vmem:[%s1199_s3 + $0x180] sm:$0xff]  ;;  %v166_v24 = vmax.f32 %v66_v20, %v116_v21  ;;  %v266_v26 = vld [vmem:[%s1199_s3 + $0x188] sm:$0xf] }
  0x45   :  { %412 = vst [vmem:[%s1200_s4 + $0x168] sm:$0xff] %v362_v11  ;;  %v315_v23 = vmax.f32 %v215_v16, %v265_v19  ;;  %v316_v27 = vmax.f32 %v216_v25, %v266_v26 }
  0x46   :  { %413 = vst [vmem:[%s1200_s4 + $0x170] sm:$0xff] %v363_v17 }
  0x47   :  { %414 = vst [vmem:[%s1200_s4 + $0x178] sm:$0xff] %v364_v22  ;;  %v365_v28 = vmax.f32 %v165_v18, %v315_v23  ;;  %v366_v29 = vmax.f32 %v166_v24, %v316_v27 }
  0x49   :  { %415 = vst [vmem:[%s1200_s4 + $0x180] sm:$0xff] %v365_v28 }
  0x4a   :  { %416 = vst [vmem:[%s1200_s4 + $0x188] sm:$0xf] %v366_v29 }

// kernel: net_forward.7
= control target key start
LH: loop header
LB: loop body
LE: loop exit
PB: predicated region body
PF: predicated region fallthrough
CT: control target
= control target key end

     0   :  { %vm163_vm0 = vcmask 1045504   ;;  %vm87_vm1 = vcmask 179200   ;;  %s856_s1 = inlined_call_operand.vmem [shape: f32[150,128], index: 1, kind: input, shape index: {}]   ;;  %s857_s0 = inlined_call_operand.vmem [shape: f32[200,150], index: 0, kind: input, shape index: {}]   ;;  %s858_s2 = inlined_call_operand.vmem [shape: f32[1,128], index: 2, kind: input, shape index: {}]   ;;  %s859_s3 = inlined_call_operand.vmem [shape: f32[200,128], index: 3, kind: output, shape index: {}]  }
   0x1   :  { %v79_v0 = vld [vmem:[%s856_s1 + $0x78] sm:$0xff]  ;;  %v493_v1 = vld [vmem:[%s856_s1 + $0x90] sm:$0x3f]  ;;  %v501_v3 = vld [vmem:[%s856_s1 + $0x88] sm:$0xff] }
   0x2   :  { %v78_v2 = vld [vmem:[%s856_s1 + $0x70] sm:$0xff]  ;;  %167 = vmatpush.msra.mxu0 %v79_v0  ;;  %431 = vmatpush.msra.mxu2 %v79_v0  ;;  %v77_v4 = vld [vmem:[%s856_s1 + $0x68] sm:$0xff]  ;;  %v511_v5 = vld [vmem:[%s856_s1 + $0x80] sm:$0xff] }
   0x3   :  { %432 = vmatpush.msra.mxu3 %v79_v0  ;;  %405 = vmatpush.msk.msra.mxu1 %vm163_vm0, %v493_v1  ;;  %v15_v6 = vld [vmem:[%s857_s0 + $0x8] sm:$0xff]  ;;  %v76_v7 = vld [vmem:[%s856_s1 + $0x60] sm:$0xff]  ;;  %v75_v8 = vld [vmem:[%s856_s1 + $0x58] sm:$0xff] }
   0x4   :  { %168 = vmatpush.msra.mxu0 %v78_v2  ;;  %433 = vmatpush.msra.mxu2 %v78_v2  ;;  %v74_v9 = vld [vmem:[%s856_s1 + $0x50] sm:$0xff]  ;;  %v73_v10 = vld [vmem:[%s856_s1 + $0x48] sm:$0xff]  ;;  %v17_v11 = vld [vmem:[%s857_s0 + $0x18] sm:$0xff] }
   0x5   :  { %434 = vmatpush.msra.mxu3 %v78_v2  ;;  %273 = vmatpush.msra.mxu1 %v501_v3  ;;  %v72_v12 = vld [vmem:[%s856_s1 + $0x40] sm:$0xff]  ;;  %v71_v13 = vld [vmem:[%s856_s1 + $0x38] sm:$0xff]  ;;  %v70_v14 = vld [vmem:[%s856_s1 + $0x30] sm:$0xff] }
   0x6   :  { %169 = vmatpush.msra.mxu0 %v77_v4  ;;  %435 = vmatpush.msra.mxu2 %v77_v4  ;;  %v69_v15 = vld [vmem:[%s856_s1 + $0x28] sm:$0xff]  ;;  %v68_v17 = vld [vmem:[%s856_s1 + $0x20] sm:$0xff]  ;;  %v67_v18 = vld [vmem:[%s856_s1 + $0x18] sm:$0xff] }
   0x7   :  { %436 = vmatpush.msra.mxu3 %v77_v4  ;;  %274 = vmatpush.msra.mxu1 %v511_v5  ;;  %v19_v16 = vld [vmem:[%s857_s0 + $0x28] sm:$0xff]  ;;  %v66_v19 = vld [vmem:[%s856_s1 + $0x10] sm:$0xff]  ;;  %v21_v21 = vld [vmem:[%s857_s0 + $0x38] sm:$0xff] }
   0x8   :  { %406 = vmatmul.msk.f32.vlgmr.msra.gmra.mxu1 %vm87_vm1, %v15_v6  ;;  %170 = vmatpush.msra.mxu0 %v76_v7  ;;  %v65_v20 = vld [vmem:[%s856_s1 + $0x8] sm:$0xff]  ;;  %v64_v22 = vld [vmem:[%s856_s1] sm:$0xff]  ;;  %v36_v24 = vld [vmem:[%s857_s0 + $0xb0] sm:$0xff] }
   0x9   :  { %437 = vmatpush.msra.mxu2 %v76_v7  ;;  %438 = vmatpush.msra.mxu3 %v76_v7  ;;  %v14_v23 = vld [vmem:[%s857_s0] sm:$0xff]  ;;  %v60_v25 = vld [vmem:[%s857_s0 + $0x170] sm:$0xff]  ;;  %v23_v26 = vld [vmem:[%s857_s0 + $0x48] sm:$0xff] }
   0xa   :  { %171 = vmatpush.msra.mxu0 %v75_v8  ;;  %v16_v27 = vld [vmem:[%s857_s0 + $0x10] sm:$0xff]  ;;  %v38_v28 = vld [vmem:[%s857_s0 + $0xc0] sm:$0xff]  ;;  %v25_v30 = vld [vmem:[%s857_s0 + $0x58] sm:$0xff] }
   0xb   :  { %439 = vmatpush.msra.mxu2 %v75_v8  ;;  %440 = vmatpush.msra.mxu3 %v75_v8  ;;  %v62_v29 = vld [vmem:[%s857_s0 + $0x180] sm:$0xff]  ;;  %v40_v32 = vld [vmem:[%s857_s0 + $0xd0] sm:$0xff]  ;;  %v45_v33 = vld [vmem:[%s857_s0 + $0xf8] sm:$0xff] }
   0xc   :  { %172 = vmatpush.msra.mxu0 %v74_v9  ;;  %v18_v31 = vld [vmem:[%s857_s0 + $0x20] sm:$0xff]  ;;  %v27_v34 = vld [vmem:[%s857_s0 + $0x68] sm:$0xff]  ;;  %v20_v35 = vld [vmem:[%s857_s0 + $0x30] sm:$0xff] }
   0xd   :  { %441 = vmatpush.msra.mxu2 %v74_v9  ;;  %442 = vmatpush.msra.mxu3 %v74_v9  ;;  %v42_v36 = vld [vmem:[%s857_s0 + $0xe0] sm:$0xff]  ;;  %v47_v37 = vld [vmem:[%s857_s0 + $0x108] sm:$0xff]  ;;  %v29_v38 = vld [vmem:[%s857_s0 + $0x78] sm:$0xff] }
   0xe   :  { %173 = vmatpush.msra.mxu0 %v73_v10  ;;  %v22_v39 = vld [vmem:[%s857_s0 + $0x40] sm:$0xff]  ;;  %v44_v40 = vld [vmem:[%s857_s0 + $0xf0] sm:$0xff]  ;;  %v49_v41 = vld [vmem:[%s857_s0 + $0x118] sm:$0xff] }
   0xf   :  { %443 = vmatpush.msra.mxu2 %v73_v10  ;;  %444 = vmatpush.msra.mxu3 %v73_v10  ;;  %v31_v42 = vld [vmem:[%s857_s0 + $0x88] sm:$0xff]  ;;  %v24_v43 = vld [vmem:[%s857_s0 + $0x50] sm:$0xff]  ;;  %v46_v44 = vld [vmem:[%s857_s0 + $0x100] sm:$0xff] }
  0x10   :  { %407 = vmatmul.msk.f32.gmra.mxu1 %vm87_vm1, %v17_v11  ;;  %174 = vmatpush.msra.mxu0 %v72_v12  ;;  %v51_v45 = vld [vmem:[%s857_s0 + $0x128] sm:$0xff]  ;;  %v33_v46 = vld [vmem:[%s857_s0 + $0x98] sm:$0xff]  ;;  %v26_v47 = vld [vmem:[%s857_s0 + $0x60] sm:$0xff] }
  0x11   :  { %445 = vmatpush.msra.mxu2 %v72_v12  ;;  %446 = vmatpush.msra.mxu3 %v72_v12  ;;  %v48_v48 = vld [vmem:[%s857_s0 + $0x110] sm:$0xff]  ;;  %v53_v49 = vld [vmem:[%s857_s0 + $0x138] sm:$0xff]  ;;  %v35_v50 = vld [vmem:[%s857_s0 + $0xa8] sm:$0xff] }
  0x12   :  { %175 = vmatpush.msra.mxu0 %v71_v13  ;;  %v28_v51 = vld [vmem:[%s857_s0 + $0x70] sm:$0xff]  ;;  %v50_v52 = vld [vmem:[%s857_s0 + $0x120] sm:$0xff]  ;;  %v55_v53 = vld [vmem:[%s857_s0 + $0x148] sm:$0xff] }
  0x13   :  { %447 = vmatpush.msra.mxu2 %v71_v13  ;;  %448 = vmatpush.msra.mxu3 %v71_v13  ;;  %v37_v54 = vld [vmem:[%s857_s0 + $0xb8] sm:$0xff]  ;;  %v30_v55 = vld [vmem:[%s857_s0 + $0x80] sm:$0xff]  ;;  %v52_v56 = vld [vmem:[%s857_s0 + $0x130] sm:$0xff] }
  0x14   :  { %176 = vmatpush.msra.mxu0 %v70_v14  ;;  %v57_v57 = vld [vmem:[%s857_s0 + $0x158] sm:$0xff]  ;;  %v39_v58 = vld [vmem:[%s857_s0 + $0xc8] sm:$0xff]  ;;  %v32_v59 = vld [vmem:[%s857_s0 + $0x90] sm:$0xff] }
  0x15   :  { %449 = vmatpush.msra.mxu2 %v70_v14  ;;  %450 = vmatpush.msra.mxu3 %v70_v14  ;;  %v54_v60 = vld [vmem:[%s857_s0 + $0x140] sm:$0xff]  ;;  %v59_v61 = vld [vmem:[%s857_s0 + $0x168] sm:$0xff]  ;;  %v41_v62 = vld [vmem:[%s857_s0 + $0xd8] sm:$0xff] }
  0x16   :  { %177 = vmatpush.msra.mxu0 %v69_v15  ;;  %v34_v63 = vld [vmem:[%s857_s0 + $0xa0] sm:$0xff]  ;;  %v56_v0 = vld [vmem:[%s857_s0 + $0x150] sm:$0xff]  ;;  %v43_v2 = vld [vmem:[%s857_s0 + $0xe8] sm:$0xff] }
  0x17   :  { %451 = vmatpush.msra.mxu2 %v69_v15  ;;  %452 = vmatpush.msra.mxu3 %v69_v15  ;;  %v63_v4 = vld [vmem:[%s857_s0 + $0x188] sm:$0xff]  ;;  %v736_v8 = vld [vmem:[%s858_s2] ss:$0 sm:$0xff] }
  0x18   :  { %408 = vmatmul.msk.f32.gmra.mxu1 %vm87_vm1, %v19_v16  ;;  %178 = vmatpush.msra.mxu0 %v68_v17 }
  0x19   :  { %453 = vmatpush.msra.mxu2 %v68_v17  ;;  %454 = vmatpush.msra.mxu3 %v68_v17 }
  0x1a   :  { %179 = vmatpush.msra.mxu0 %v67_v18 }
  0x1b   :  { %455 = vmatpush.msra.mxu2 %v67_v18  ;;  %456 = vmatpush.msra.mxu3 %v67_v18 }
  0x1c   :  { %180 = vmatpush.msra.mxu0 %v66_v19 }
  0x1d   :  { %457 = vmatpush.msra.mxu2 %v66_v19  ;;  %458 = vmatpush.msra.mxu3 %v66_v19 }
  0x1e   :  { %181 = vmatpush.msra.mxu0 %v65_v20 }
  0x1f   :  { %459 = vmatpush.msra.mxu2 %v65_v20  ;;  %460 = vmatpush.msra.mxu3 %v65_v20 }
  0x20   :  { %409 = vmatmul.msk.f32.gmra.mxu1 %vm87_vm1, %v21_v21  ;;  %182 = vmatpush.msra.mxu0 %v64_v22 }
  0x21   :  { %461 = vmatpush.msra.mxu2 %v64_v22  ;;  %462 = vmatpush.msra.mxu3 %v64_v22 }
  0x22   :  { %183 = vmatmul.f32.vlgmr.msra.gmra.mxu0 %v14_v23  ;;  %216 = vmatmul.f32.vlgmr.msra.gmra.mxu2 %v36_v24 }
  0x23   :  { %252 = vmatmul.f32.vlgmr.msra.gmra.mxu3 %v60_v25 }
  0x24   :  { %463 = vmatpush.msk.msrb.mxu3 %vm163_vm0, %v493_v1  ;;  %v61_v1 = vld [vmem:[%s857_s0 + $0x178] sm:$0xff] }
  0x26   :  { %464 = vmatpush.msrb.mxu3 %v501_v3  ;;  %v58_v3 = vld [vmem:[%s857_s0 + $0x160] sm:$0xff] }
  0x28   :  { %410 = vmatmul.msk.f32.gmra.mxu1 %vm87_vm1, %v23_v26  ;;  %465 = vmatpush.msrb.mxu3 %v511_v5 }
  0x2a   :  { %186 = vmatmul.f32.gmra.mxu0 %v16_v27  ;;  %219 = vmatmul.f32.gmra.mxu2 %v38_v28 }
  0x2b   :  { %255 = vmatmul.f32.gmra.mxu3 %v62_v29 }
  0x30   :  { %411 = vmatmul.msk.f32.gmra.mxu1 %vm87_vm1, %v25_v30 }
  0x32   :  { %189 = vmatmul.f32.gmra.mxu0 %v18_v31  ;;  %222 = vmatmul.f32.gmra.mxu2 %v40_v32 }
  0x33   :  { %421 = vmatmul.msk.f32.vlgmr.msrb.gmra.mxu3 %vm87_vm1, %v45_v33 }
  0x38   :  { %412 = vmatmul.msk.f32.gmra.mxu1 %vm87_vm1, %v27_v34 }
  0x3a   :  { %192 = vmatmul.f32.gmra.mxu0 %v20_v35  ;;  %225 = vmatmul.f32.gmra.mxu2 %v42_v36 }
  0x3b   :  { %422 = vmatmul.msk.f32.gmra.mxu3 %vm87_vm1, %v47_v37 }
  0x40   :  { %413 = vmatmul.msk.f32.gmra.mxu1 %vm87_vm1, %v29_v38 }
  0x42   :  { %195 = vmatmul.f32.gmra.mxu0 %v22_v39  ;;  %228 = vmatmul.f32.gmra.mxu2 %v44_v40 }
  0x43   :  { %423 = vmatmul.msk.f32.gmra.mxu3 %vm87_vm1, %v49_v41 }
  0x48   :  { %414 = vmatmul.msk.f32.gmra.mxu1 %vm87_vm1, %v31_v42 }
  0x4a   :  { %198 = vmatmul.f32.gmra.mxu0 %v24_v43  ;;  %231 = vmatmul.f32.gmra.mxu2 %v46_v44 }
  0x4b   :  { %424 = vmatmul.msk.f32.gmra.mxu3 %vm87_vm1, %v51_v45 }
  0x50   :  { %415 = vmatmul.msk.f32.gmra.mxu1 %vm87_vm1, %v33_v46 }
  0x52   :  { %201 = vmatmul.f32.gmra.mxu0 %v26_v47  ;;  %234 = vmatmul.f32.gmra.mxu2 %v48_v48 }
  0x53   :  { %425 = vmatmul.msk.f32.gmra.mxu3 %vm87_vm1, %v53_v49 }
  0x58   :  { %416 = vmatmul.msk.f32.gmra.mxu1 %vm87_vm1, %v35_v50 }
  0x5a   :  { %204 = vmatmul.f32.gmra.mxu0 %v28_v51  ;;  %237 = vmatmul.f32.gmra.mxu2 %v50_v52 }
  0x5b   :  { %426 = vmatmul.msk.f32.gmra.mxu3 %vm87_vm1, %v55_v53 }
  0x60   :  { %417 = vmatmul.msk.f32.gmra.mxu1 %vm87_vm1, %v37_v54 }
  0x62   :  { %207 = vmatmul.f32.gmra.mxu0 %v30_v55  ;;  %240 = vmatmul.f32.gmra.mxu2 %v52_v56 }
  0x63   :  { %427 = vmatmul.msk.f32.gmra.mxu3 %vm87_vm1, %v57_v57 }
  0x68   :  { %418 = vmatmul.msk.f32.gmra.mxu1 %vm87_vm1, %v39_v58 }
  0x6a   :  { %210 = vmatmul.f32.gmra.mxu0 %v32_v59  ;;  %243 = vmatmul.f32.gmra.mxu2 %v54_v60 }
  0x6b   :  { %428 = vmatmul.msk.f32.gmra.mxu3 %vm87_vm1, %v59_v61 }
  0x70   :  { %419 = vmatmul.msk.f32.gmra.mxu1 %vm87_vm1, %v41_v62 }
  0x72   :  { %213 = vmatmul.f32.gmra.mxu0 %v34_v63  ;;  %246 = vmatmul.f32.gmra.mxu2 %v56_v0 }
  0x73   :  { %429 = vmatmul.msk.f32.gmra.mxu3 %vm87_vm1, %v61_v1 }
  0x78   :  { %420 = vmatmul.msk.f32.gmra.mxu1 %vm87_vm1, %v43_v2 }
  0x7a   :  { %249 = vmatmul.f32.gmra.mxu2 %v58_v3 }
  0x7b   :  { %430 = vmatmul.msk.f32.gmra.mxu3 %vm87_vm1, %v63_v4 }
  0x85   :  { %v276_v5 = vpop.f32.mrf.mxu1 }
  0x8d   :  { %v279_v6 = vpop.f32.mrf.mxu1 }
  0x95   :  { %v282_v7 = vpop.f32.mrf.mxu1 }
  0x9d   :  { %v285_v9 = vpop.f32.mrf.mxu1 }
  0x9f   :  { %v184_v10 = vpop.f32.mrf.mxu0 }
  0xa0   :  { %v185_v11 = vadd.f32 %v736_v8, %v184_v10 }
  0xa2   :  { %v277_v12 = vadd.f32 %v276_v5, %v185_v11 }
  0xa4   :  { %v351_v13 = vmax.f32 %v277_v12, 0.0 }
  0xa5   :  { %v739_v14 = vpop.f32.mrf.mxu2  ;;  %v288_v15 = vpop.f32.mrf.mxu1 }
  0xa6   :  { %376 = vst [vmem:[%s859_s3] sm:$0xff] %v351_v13  ;;  %v744_v16 = vpop.f32.mrf.mxu3 }
  0xa7   :  { %v187_v17 = vpop.f32.mrf.mxu0 }
  0xa8   :  { %v188_v18 = vadd.f32 %v736_v8, %v187_v17 }
  0xaa   :  { %v280_v19 = vadd.f32 %v279_v6, %v188_v18 }
  0xac   :  { %v352_v20 = vmax.f32 %v280_v19, 0.0 }
  0xad   :  { %v747_v21 = vpop.f32.mrf.mxu2  ;;  %v291_v22 = vpop.f32.mrf.mxu1 }
  0xae   :  { %377 = vst [vmem:[%s859_s3 + $0x8] sm:$0xff] %v352_v20  ;;  %v752_v23 = vpop.f32.mrf.mxu3 }
  0xaf   :  { %v190_v24 = vpop.f32.mrf.mxu0 }
  0xb0   :  { %v191_v25 = vadd.f32 %v736_v8, %v190_v24  ;;  %v221_v24 = vadd.f32 %v736_v8, %v747_v21 }
  0xb2   :  { %v283_v26 = vadd.f32 %v282_v7, %v191_v25  ;;  %v218_v7 = vadd.f32 %v736_v8, %v739_v14 }
  0xb4   :  { %v353_v27 = vmax.f32 %v283_v26, 0.0 }
  0xb5   :  { %v755_v28 = vpop.f32.mrf.mxu2  ;;  %v294_v29 = vpop.f32.mrf.mxu1 }
  0xb6   :  { %378 = vst [vmem:[%s859_s3 + $0x10] sm:$0xff] %v353_v27  ;;  %v321_v30 = vpop.f32.mrf.mxu3 }
  0xb7   :  { %v193_v31 = vpop.f32.mrf.mxu0 }
  0xb8   :  { %v194_v32 = vadd.f32 %v736_v8, %v193_v31 }
  0xba   :  { %v286_v33 = vadd.f32 %v285_v9, %v194_v32 }
  0xbc   :  { %v354_v34 = vmax.f32 %v286_v33, 0.0 }
  0xbd   :  { %v761_v35 = vpop.f32.mrf.mxu2  ;;  %v297_v36 = vpop.f32.mrf.mxu1 }
  0xbe   :  { %379 = vst [vmem:[%s859_s3 + $0x18] sm:$0xff] %v354_v34  ;;  %v324_v37 = vpop.f32.mrf.mxu3 }
  0xbf   :  { %v196_v38 = vpop.f32.mrf.mxu0 }
  0xc0   :  { %v197_v39 = vadd.f32 %v736_v8, %v196_v38  ;;  %v224_v38 = vadd.f32 %v736_v8, %v755_v28 }
  0xc2   :  { %v289_v40 = vadd.f32 %v288_v15, %v197_v39 }
  0xc4   :  { %v355_v41 = vmax.f32 %v289_v40, 0.0 }
  0xc5   :  { %v229_v42 = vpop.f32.mrf.mxu2  ;;  %v300_v43 = vpop.f32.mrf.mxu1 }
  0xc6   :  { %380 = vst [vmem:[%s859_s3 + $0x20] sm:$0xff] %v355_v41  ;;  %v230_v44 = vadd.f32 %v736_v8, %v229_v42  ;;  %v327_v45 = vpop.f32.mrf.mxu3 }
  0xc7   :  { %v199_v46 = vpop.f32.mrf.mxu0 }
  0xc8   :  { %v322_v47 = vadd.f32 %v321_v30, %v230_v44  ;;  %v200_v48 = vadd.f32 %v736_v8, %v199_v46 }
  0xca   :  { %v366_v49 = vmax.f32 %v322_v47, 0.0  ;;  %v292_v50 = vadd.f32 %v291_v22, %v200_v48 }
  0xcc   :  { %391 = vst [vmem:[%s859_s3 + $0x78] sm:$0xff] %v366_v49  ;;  %v356_v51 = vmax.f32 %v292_v50, 0.0  ;;  %v227_v50 = vadd.f32 %v736_v8, %v761_v35 }
  0xcd   :  { %v232_v52 = vpop.f32.mrf.mxu2  ;;  %v303_v53 = vpop.f32.mrf.mxu1 }
  0xce   :  { %381 = vst [vmem:[%s859_s3 + $0x28] sm:$0xff] %v356_v51  ;;  %v233_v54 = vadd.f32 %v736_v8, %v232_v52  ;;  %v330_v55 = vpop.f32.mrf.mxu3  ;;  %v254_v52 = vadd.f32 %v736_v8, %v744_v16  ;;  %v257_v16 = vadd.f32 %v736_v8, %v752_v23 }
  0xcf   :  { %v202_v56 = vpop.f32.mrf.mxu0 }
  0xd0   :  { %v325_v57 = vadd.f32 %v324_v37, %v233_v54  ;;  %v203_v58 = vadd.f32 %v736_v8, %v202_v56 }
  0xd2   :  { %v367_v59 = vmax.f32 %v325_v57, 0.0  ;;  %v295_v60 = vadd.f32 %v294_v29, %v203_v58 }
  0xd4   :  { %392 = vst [vmem:[%s859_s3 + $0x80] sm:$0xff] %v367_v59  ;;  %v357_v61 = vmax.f32 %v295_v60, 0.0 }
  0xd5   :  { %v235_v62 = vpop.f32.mrf.mxu2  ;;  %v306_v63 = vpop.f32.mrf.mxu1 }
  0xd6   :  { %382 = vst [vmem:[%s859_s3 + $0x30] sm:$0xff] %v357_v61  ;;  %v236_v0 = vadd.f32 %v736_v8, %v235_v62  ;;  %v333_v1 = vpop.f32.mrf.mxu3 }
  0xd7   :  { %v205_v2 = vpop.f32.mrf.mxu0 }
  0xd8   :  { %v328_v3 = vadd.f32 %v327_v45, %v236_v0  ;;  %v206_v4 = vadd.f32 %v736_v8, %v205_v2 }
  0xda   :  { %v368_v5 = vmax.f32 %v328_v3, 0.0  ;;  %v298_v6 = vadd.f32 %v297_v36, %v206_v4 }
  0xdc   :  { %393 = vst [vmem:[%s859_s3 + $0x88] sm:$0xff] %v368_v5  ;;  %v358_v9 = vmax.f32 %v298_v6, 0.0 }
  0xdd   :  { %v238_v10 = vpop.f32.mrf.mxu2  ;;  %v309_v11 = vpop.f32.mrf.mxu1 }
  0xde   :  { %383 = vst [vmem:[%s859_s3 + $0x38] sm:$0xff] %v358_v9  ;;  %v239_v12 = vadd.f32 %v736_v8, %v238_v10  ;;  %v310_v13 = vadd.f32 %v309_v11, %v218_v7  ;;  %v336_v15 = vpop.f32.mrf.mxu3 }
  0xdf   :  { %v208_v17 = vpop.f32.mrf.mxu0 }
  0xe0   :  { %v331_v18 = vadd.f32 %v330_v55, %v239_v12  ;;  %v362_v19 = vmax.f32 %v310_v13, 0.0  ;;  %v209_v14 = vadd.f32 %v736_v8, %v208_v17 }
  0xe2   :  { %v369_v20 = vmax.f32 %v331_v18, 0.0  ;;  %387 = vst [vmem:[%s859_s3 + $0x58] sm:$0xff] %v362_v19  ;;  %v301_v22 = vadd.f32 %v300_v43, %v209_v14 }
  0xe4   :  { %394 = vst [vmem:[%s859_s3 + $0x90] sm:$0xff] %v369_v20  ;;  %v359_v25 = vmax.f32 %v301_v22, 0.0 }
  0xe5   :  { %v241_v26 = vpop.f32.mrf.mxu2  ;;  %v312_v27 = vpop.f32.mrf.mxu1 }
  0xe6   :  { %384 = vst [vmem:[%s859_s3 + $0x40] sm:$0xff] %v359_v25  ;;  %v242_v29 = vadd.f32 %v736_v8, %v241_v26  ;;  %v313_v30 = vadd.f32 %v312_v27, %v221_v24  ;;  %v339_v31 = vpop.f32.mrf.mxu3 }
  0xe7   :  { %v211_v32 = vpop.f32.mrf.mxu0 }
  0xe8   :  { %v334_v33 = vadd.f32 %v333_v1, %v242_v29  ;;  %v363_v34 = vmax.f32 %v313_v30, 0.0  ;;  %v212_v21 = vadd.f32 %v736_v8, %v211_v32 }
  0xea   :  { %v370_v36 = vmax.f32 %v334_v33, 0.0  ;;  %388 = vst [vmem:[%s859_s3 + $0x60] sm:$0xff] %v363_v34  ;;  %v304_v37 = vadd.f32 %v303_v53, %v212_v21 }
  0xec   :  { %395 = vst [vmem:[%s859_s3 + $0x98] sm:$0xff] %v370_v36  ;;  %v360_v39 = vmax.f32 %v304_v37, 0.0 }
  0xed   :  { %v244_v40 = vpop.f32.mrf.mxu2  ;;  %v315_v41 = vpop.f32.mrf.mxu1 }
  0xee   :  { %385 = vst [vmem:[%s859_s3 + $0x48] sm:$0xff] %v360_v39  ;;  %v245_v42 = vadd.f32 %v736_v8, %v244_v40  ;;  %v316_v43 = vadd.f32 %v315_v41, %v224_v38  ;;  %v342_v44 = vpop.f32.mrf.mxu3 }
  0xef   :  { %v214_v45 = vpop.f32.mrf.mxu0 }
  0xf0   :  { %v337_v46 = vadd.f32 %v336_v15, %v245_v42  ;;  %v364_v47 = vmax.f32 %v316_v43, 0.0  ;;  %v215_v28 = vadd.f32 %v736_v8, %v214_v45 }
  0xf2   :  { %v371_v48 = vmax.f32 %v337_v46, 0.0  ;;  %389 = vst [vmem:[%s859_s3 + $0x68] sm:$0xff] %v364_v47  ;;  %v307_v49 = vadd.f32 %v306_v63, %v215_v28 }
  0xf4   :  { %396 = vst [vmem:[%s859_s3 + $0xa0] sm:$0xff] %v371_v48  ;;  %v361_v51 = vmax.f32 %v307_v49, 0.0 }
  0xf5   :  { %v247_v53 = vpop.f32.mrf.mxu2  ;;  %v318_v54 = vpop.f32.mrf.mxu1 }
  0xf6   :  { %386 = vst [vmem:[%s859_s3 + $0x50] sm:$0xff] %v361_v51  ;;  %v248_v55 = vadd.f32 %v736_v8, %v247_v53  ;;  %v319_v56 = vadd.f32 %v318_v54, %v227_v50  ;;  %v345_v57 = vpop.f32.mrf.mxu3 }
  0xf7   :  { %v346_v58 = vadd.f32 %v345_v57, %v254_v52 }
  0xf8   :  { %v340_v35 = vadd.f32 %v339_v31, %v248_v55  ;;  %v365_v59 = vmax.f32 %v319_v56, 0.0 }
  0xf9   :  { %v374_v60 = vmax.f32 %v346_v58, 0.0 }
  0xfa   :  { %v372_v61 = vmax.f32 %v340_v35, 0.0  ;;  %390 = vst [vmem:[%s859_s3 + $0x70] sm:$0xff] %v365_v59 }
  0xfb   :  { %399 = vst [vmem:[%s859_s3 + $0xb8] sm:$0xff] %v374_v60 }
  0xfc   :  { %397 = vst [vmem:[%s859_s3 + $0xa8] sm:$0xff] %v372_v61 }
  0xfd   :  { %v250_v62 = vpop.f32.mrf.mxu2 }
  0xfe   :  { %v251_v63 = vadd.f32 %v736_v8, %v250_v62  ;;  %v348_v0 = vpop.f32.mrf.mxu3 }
  0xff   :  { %v349_v1 = vadd.f32 %v348_v0, %v257_v16 }
 0x100   :  { %v343_v2 = vadd.f32 %v342_v44, %v251_v63 }
 0x101   :  { %v375_v3 = vmax.f32 %v349_v1, 0.0 }
 0x102   :  { %v373_v4 = vmax.f32 %v343_v2, 0.0 }
 0x103   :  { %400 = vst [vmem:[%s859_s3 + $0xc0] sm:$0xff] %v375_v3 }
 0x104   :  { %398 = vst [vmem:[%s859_s3 + $0xb0] sm:$0xff] %v373_v4 }

// kernel: net_forward.8
= control target key start
LH: loop header
LB: loop body
LE: loop exit
PB: predicated region body
PF: predicated region fallthrough
CT: control target
= control target key end

     0   :  { %s230_s0 = inlined_call_operand.vmem [shape: f32[2,25,128], index: 0, kind: input, shape index: {}]   ;;  %s231_s1 = inlined_call_operand.vmem [shape: f32[2,25,128], index: 1, kind: input, shape index: {}]   ;;  %s232_s2 = inlined_call_operand.vmem [shape: f32[2,25,128], index: 2, kind: input, shape index: {}]   ;;  %s233_s3 = inlined_call_operand.vmem [shape: f32[2,25,128], index: 3, kind: input, shape index: {}]   ;;  %s234_s4 = inlined_call_operand.vmem [shape: f32[2,25,128], index: 4, kind: output, shape index: {}]  }
   0x1   :  { %v17_v0 = vld [vmem:[%s230_s0] sm:$0xff]  ;;  %v18_v5 = vld [vmem:[%s230_s0 + $0x8] sm:$0xff]  ;;  %v19_v11 = vld [vmem:[%s230_s0 + $0x10] sm:$0xff] }
   0x2   :  { %v25_v1 = vld [vmem:[%s231_s1] sm:$0xff]  ;;  %v26_v6 = vld [vmem:[%s231_s1 + $0x8] sm:$0xff]  ;;  %v27_v13 = vld [vmem:[%s231_s1 + $0x10] sm:$0xff] }
   0x3   :  { %v41_v2 = vld [vmem:[%s232_s2] sm:$0xff]  ;;  %v33_v3 = vmax.f32 %v17_v0, %v25_v1  ;;  %v34_v8 = vmax.f32 %v18_v5, %v26_v6  ;;  %v42_v9 = vld [vmem:[%s232_s2 + $0x8] sm:$0xff]  ;;  %v43_v14 = vld [vmem:[%s232_s2 + $0x10] sm:$0xff]  ;;  %v35_v17 = vmax.f32 %v19_v11, %v27_v13 }
   0x4   :  { %v49_v4 = vld [vmem:[%s233_s3] sm:$0xff]  ;;  %v50_v10 = vld [vmem:[%s233_s3 + $0x8] sm:$0xff]  ;;  %v51_v15 = vld [vmem:[%s233_s3 + $0x10] sm:$0xff] }
   0x5   :  { %v57_v7 = vmax.f32 %v41_v2, %v49_v4  ;;  %v58_v12 = vmax.f32 %v42_v9, %v50_v10  ;;  %v59_v18 = vmax.f32 %v43_v14, %v51_v15  ;;  %v20_v19 = vld [vmem:[%s230_s0 + $0x18] sm:$0x1]  ;;  %v21_v25 = vld [vmem:[%s230_s0 + $0x20] sm:$0xff]  ;;  %v22_v32 = vld [vmem:[%s230_s0 + $0x28] sm:$0xff] }
   0x6   :  { %v28_v20 = vld [vmem:[%s231_s1 + $0x18] sm:$0x1]  ;;  %v29_v26 = vld [vmem:[%s231_s1 + $0x20] sm:$0xff]  ;;  %v30_v34 = vld [vmem:[%s231_s1 + $0x28] sm:$0xff] }
   0x7   :  { %v65_v16 = vmax.f32 %v33_v3, %v57_v7  ;;  %v44_v21 = vld [vmem:[%s232_s2 + $0x18] sm:$0x1]  ;;  %v66_v22 = vmax.f32 %v34_v8, %v58_v12  ;;  %v36_v23 = vmax.f32 %v20_v19, %v28_v20  ;;  %v67_v27 = vmax.f32 %v35_v17, %v59_v18  ;;  %v45_v30 = vld [vmem:[%s232_s2 + $0x20] sm:$0xff]  ;;  %v46_v35 = vld [vmem:[%s232_s2 + $0x28] sm:$0xff] }
   0x8   :  { %v52_v24 = vld [vmem:[%s233_s3 + $0x18] sm:$0x1]  ;;  %v37_v29 = vmax.f32 %v21_v25, %v29_v26  ;;  %v53_v31 = vld [vmem:[%s233_s3 + $0x20] sm:$0xff]  ;;  %v54_v36 = vld [vmem:[%s233_s3 + $0x28] sm:$0xff]  ;;  %v38_v38 = vmax.f32 %v22_v32, %v30_v34 }
   0x9   :  { %73 = vst [vmem:[%s234_s4] sm:$0xff] %v65_v16  ;;  %v60_v28 = vmax.f32 %v44_v21, %v52_v24  ;;  %v61_v33 = vmax.f32 %v45_v30, %v53_v31  ;;  %v62_v39 = vmax.f32 %v46_v35, %v54_v36  ;;  %v23_v40 = vld [vmem:[%s230_s0 + $0x30] sm:$0xff]  ;;  %v24_v46 = vld [vmem:[%s230_s0 + $0x38] sm:$0x1] }
   0xa   :  { %74 = vst [vmem:[%s234_s4 + $0x8] sm:$0xff] %v66_v22  ;;  %v31_v41 = vld [vmem:[%s231_s1 + $0x30] sm:$0xff]  ;;  %v32_v47 = vld [vmem:[%s231_s1 + $0x38] sm:$0x1] }
   0xb   :  { %75 = vst [vmem:[%s234_s4 + $0x10] sm:$0xff] %v67_v27  ;;  %v68_v37 = vmax.f32 %v36_v23, %v60_v28  ;;  %v47_v42 = vld [vmem:[%s232_s2 + $0x30] sm:$0xff]  ;;  %v69_v43 = vmax.f32 %v37_v29, %v61_v33  ;;  %v39_v44 = vmax.f32 %v23_v40, %v31_v41  ;;  %v70_v48 = vmax.f32 %v38_v38, %v62_v39  ;;  %v48_v51 = vld [vmem:[%s232_s2 + $0x38] sm:$0x1] }
   0xc   :  { %v55_v45 = vld [vmem:[%s233_s3 + $0x30] sm:$0xff]  ;;  %v40_v50 = vmax.f32 %v24_v46, %v32_v47  ;;  %v56_v52 = vld [vmem:[%s233_s3 + $0x38] sm:$0x1] }
   0xd   :  { %76 = vst [vmem:[%s234_s4 + $0x18] sm:$0x1] %v68_v37  ;;  %v63_v49 = vmax.f32 %v47_v42, %v55_v45  ;;  %v64_v53 = vmax.f32 %v48_v51, %v56_v52 }
   0xe   :  { %77 = vst [vmem:[%s234_s4 + $0x20] sm:$0xff] %v69_v43 }
   0xf   :  { %78 = vst [vmem:[%s234_s4 + $0x28] sm:$0xff] %v70_v48  ;;  %v71_v54 = vmax.f32 %v39_v44, %v63_v49  ;;  %v72_v55 = vmax.f32 %v40_v50, %v64_v53 }
  0x11   :  { %79 = vst [vmem:[%s234_s4 + $0x30] sm:$0xff] %v71_v54 }
  0x12   :  { %80 = vst [vmem:[%s234_s4 + $0x38] sm:$0x1] %v72_v55 }

// kernel: net_forward.9
= control target key start
LH: loop header
LB: loop body
LE: loop exit
PB: predicated region body
PF: predicated region fallthrough
CT: control target
= control target key end

     0   :  { %vm84_vm0 = vcmask 130048   ;;  %s569_s1 = inlined_call_operand.vmem [shape: f32[400,128], index: 1, kind: input, shape index: {}]   ;;  %s570_s0 = inlined_call_operand.vmem [shape: f32[8,400], index: 0, kind: input, shape index: {}]   ;;  %s571_s3 = inlined_call_operand.vmem [shape: f32[128,128], index: 3, kind: input, shape index: {}]   ;;  %s572_s2 = inlined_call_operand.vmem [shape: f32[1,128], index: 2, kind: input, shape index: {}]   ;;  %s573_s4 = inlined_call_operand.vmem [shape: f32[1,128], index: 4, kind: input, shape index: {}]   ;;  %s574_s5 = inlined_call_operand.vmem [shape: f32[128,128], index: 5, kind: input, shape index: {}]   ;;  %s575_s6 = inlined_call_operand.vmem [shape: f32[1,128], index: 6, kind: input, shape index: {}]   ;;  %s576_s7 = inlined_call_operand.vmem [shape: f32[8,128], index: 7, kind: output, shape index: {}]  }
   0x1   :  { %v77_v0 = vld [vmem:[%s569_s1 + $0x178] sm:$0xff]  ;;  %v76_v2 = vld [vmem:[%s569_s1 + $0x170] sm:$0xff]  ;;  %v75_v5 = vld [vmem:[%s569_s1 + $0x168] sm:$0xff] }
   0x2   :  { %v45_v1 = vld [vmem:[%s569_s1 + $0x78] sm:$0xff]  ;;  %128 = vmatpush.msra.mxu2 %v77_v0  ;;  %v44_v3 = vld [vmem:[%s569_s1 + $0x70] sm:$0xff]  ;;  %v43_v6 = vld [vmem:[%s569_s1 + $0x68] sm:$0xff] }
   0x3   :  { %88 = vmatpush.msra.mxu0 %v45_v1  ;;  %v61_v4 = vld [vmem:[%s569_s1 + $0xf8] sm:$0xff]  ;;  %v60_v7 = vld [vmem:[%s569_s1 + $0xf0] sm:$0xff]  ;;  %v59_v8 = vld [vmem:[%s569_s1 + $0xe8] sm:$0xff] }
   0x4   :  { %108 = vmatpush.msra.mxu1 %v61_v4  ;;  %129 = vmatpush.msra.mxu2 %v76_v2  ;;  %v74_v9 = vld [vmem:[%s569_s1 + $0x160] sm:$0xff]  ;;  %v73_v12 = vld [vmem:[%s569_s1 + $0x158] sm:$0xff]  ;;  %v72_v15 = vld [vmem:[%s569_s1 + $0x150] sm:$0xff] }
   0x5   :  { %89 = vmatpush.msra.mxu0 %v44_v3  ;;  %v42_v10 = vld [vmem:[%s569_s1 + $0x60] sm:$0xff]  ;;  %v41_v13 = vld [vmem:[%s569_s1 + $0x58] sm:$0xff]  ;;  %v40_v16 = vld [vmem:[%s569_s1 + $0x50] sm:$0xff] }
   0x6   :  { %109 = vmatpush.msra.mxu1 %v60_v7  ;;  %130 = vmatpush.msra.mxu2 %v75_v5  ;;  %v58_v11 = vld [vmem:[%s569_s1 + $0xe0] sm:$0xff]  ;;  %v57_v14 = vld [vmem:[%s569_s1 + $0xd8] sm:$0xff]  ;;  %v56_v17 = vld [vmem:[%s569_s1 + $0xd0] sm:$0xff] }
   0x7   :  { %90 = vmatpush.msra.mxu0 %v43_v6  ;;  %v71_v18 = vld [vmem:[%s569_s1 + $0x148] sm:$0xff]  ;;  %v70_v21 = vld [vmem:[%s569_s1 + $0x140] sm:$0xff]  ;;  %v69_v24 = vld [vmem:[%s569_s1 + $0x138] sm:$0xff] }
   0x8   :  { %110 = vmatpush.msra.mxu1 %v59_v8  ;;  %131 = vmatpush.msra.mxu2 %v74_v9  ;;  %v39_v19 = vld [vmem:[%s569_s1 + $0x48] sm:$0xff]  ;;  %v38_v22 = vld [vmem:[%s569_s1 + $0x40] sm:$0xff]  ;;  %v37_v25 = vld [vmem:[%s569_s1 + $0x38] sm:$0xff] }
   0x9   :  { %91 = vmatpush.msra.mxu0 %v42_v10  ;;  %v55_v20 = vld [vmem:[%s569_s1 + $0xc8] sm:$0xff]  ;;  %v54_v23 = vld [vmem:[%s569_s1 + $0xc0] sm:$0xff]  ;;  %v53_v26 = vld [vmem:[%s569_s1 + $0xb8] sm:$0xff] }
   0xa   :  { %111 = vmatpush.msra.mxu1 %v58_v11  ;;  %132 = vmatpush.msra.mxu2 %v73_v12  ;;  %v79_v27 = vld [vmem:[%s569_s1 + $0x188] sm:$0xff]  ;;  %v68_v28 = vld [vmem:[%s569_s1 + $0x130] sm:$0xff]  ;;  %v78_v30 = vld [vmem:[%s569_s1 + $0x180] sm:$0xff] }
   0xb   :  { %92 = vmatpush.msra.mxu0 %v41_v13  ;;  %v36_v29 = vld [vmem:[%s569_s1 + $0x30] sm:$0xff]  ;;  %162 = vmatpush.msra.mxu3 %v79_v27  ;;  %v29_v32 = vld [vmem:[%s570_s0 + $0x18] sm:$0xff]  ;;  %v67_v33 = vld [vmem:[%s569_s1 + $0x128] sm:$0xff] }
   0xc   :  { %112 = vmatpush.msra.mxu1 %v57_v14  ;;  %133 = vmatpush.msra.mxu2 %v72_v15  ;;  %v52_v31 = vld [vmem:[%s569_s1 + $0xb0] sm:$0xff]  ;;  %v35_v34 = vld [vmem:[%s569_s1 + $0x28] sm:$0xff]  ;;  %v184_v36 = vld [vmem:[%s571_s3 + $0x78] sm:$0xff] }
   0xd   :  { %93 = vmatpush.msra.mxu0 %v40_v16  ;;  %163 = vmatpush.msra.mxu3 %v78_v30  ;;  %v51_v35 = vld [vmem:[%s569_s1 + $0xa8] sm:$0xff]  ;;  %v66_v37 = vld [vmem:[%s569_s1 + $0x120] sm:$0xff]  ;;  %v183_v40 = vld [vmem:[%s571_s3 + $0x70] sm:$0xff] }
   0xe   :  { %113 = vmatpush.msra.mxu1 %v56_v17  ;;  %134 = vmatpush.msra.mxu2 %v71_v18  ;;  %v34_v38 = vld [vmem:[%s569_s1 + $0x20] sm:$0xff]  ;;  %v65_v41 = vld [vmem:[%s569_s1 + $0x118] sm:$0xff]  ;;  %v182_v44 = vld [vmem:[%s571_s3 + $0x68] sm:$0xff] }
   0xf   :  { %94 = vmatpush.msra.mxu0 %v39_v19  ;;  %255 = vmatmul.msk.f32.vlgmr.msra.gmra.mxu3 %vm84_vm0, %v29_v32  ;;  %v50_v39 = vld [vmem:[%s569_s1 + $0xa0] sm:$0xff]  ;;  %v33_v42 = vld [vmem:[%s569_s1 + $0x18] sm:$0xff]  ;;  %v64_v45 = vld [vmem:[%s569_s1 + $0x110] sm:$0xff] }
  0x10   :  { %114 = vmatpush.msra.mxu1 %v55_v20  ;;  %135 = vmatpush.msra.mxu2 %v70_v21  ;;  %v49_v43 = vld [vmem:[%s569_s1 + $0x98] sm:$0xff]  ;;  %v32_v46 = vld [vmem:[%s569_s1 + $0x10] sm:$0xff]  ;;  %v181_v48 = vld [vmem:[%s571_s3 + $0x60] sm:$0xff] }
  0x11   :  { %95 = vmatpush.msra.mxu0 %v38_v22  ;;  %189 = vmatpush.msrb.mxu3 %v184_v36  ;;  %v48_v47 = vld [vmem:[%s569_s1 + $0x90] sm:$0xff]  ;;  %v63_v49 = vld [vmem:[%s569_s1 + $0x108] sm:$0xff]  ;;  %v180_v52 = vld [vmem:[%s571_s3 + $0x58] sm:$0xff] }
  0x12   :  { %115 = vmatpush.msra.mxu1 %v54_v23  ;;  %136 = vmatpush.msra.mxu2 %v69_v24  ;;  %v31_v50 = vld [vmem:[%s569_s1 + $0x8] sm:$0xff]  ;;  %v62_v53 = vld [vmem:[%s569_s1 + $0x100] sm:$0xff]  ;;  %v28_v55 = vld [vmem:[%s570_s0 + $0x10] sm:$0xff] }
  0x13   :  { %96 = vmatpush.msra.mxu0 %v37_v25  ;;  %190 = vmatpush.msrb.mxu3 %v183_v40  ;;  %v47_v51 = vld [vmem:[%s569_s1 + $0x88] sm:$0xff]  ;;  %v30_v54 = vld [vmem:[%s569_s1] sm:$0xff]  ;;  %v179_v58 = vld [vmem:[%s571_s3 + $0x50] sm:$0xff] }
  0x14   :  { %116 = vmatpush.msra.mxu1 %v53_v26  ;;  %137 = vmatpush.msra.mxu2 %v68_v28  ;;  %v26_v56 = vld [vmem:[%s570_s0] sm:$0xff]  ;;  %v27_v59 = vld [vmem:[%s570_s0 + $0x8] sm:$0xff]  ;;  %v176_v62 = vld [vmem:[%s571_s3 + $0x38] sm:$0xff] }
  0x15   :  { %97 = vmatpush.msra.mxu0 %v36_v29  ;;  %191 = vmatpush.msrb.mxu3 %v182_v44  ;;  %v46_v57 = vld [vmem:[%s569_s1 + $0x80] sm:$0xff]  ;;  %v178_v60 = vld [vmem:[%s571_s3 + $0x48] sm:$0xff]  ;;  %v175_v63 = vld [vmem:[%s571_s3 + $0x30] sm:$0xff] }
  0x16   :  { %117 = vmatpush.msra.mxu1 %v52_v31  ;;  %138 = vmatpush.msra.mxu2 %v67_v33  ;;  %v177_v61 = vld [vmem:[%s571_s3 + $0x40] sm:$0xff]  ;;  %v174_v0 = vld [vmem:[%s571_s3 + $0x28] sm:$0xff]  ;;  %v172_v2 = vld [vmem:[%s571_s3 + $0x18] sm:$0xff] }
  0x17   :  { %98 = vmatpush.msra.mxu0 %v35_v34  ;;  %192 = vmatpush.msrb.mxu3 %v181_v48  ;;  %v173_v1 = vld [vmem:[%s571_s3 + $0x20] sm:$0xff]  ;;  %v171_v3 = vld [vmem:[%s571_s3 + $0x10] sm:$0xff]  ;;  %v170_v4 = vld [vmem:[%s571_s3 + $0x8] sm:$0xff] }
  0x18   :  { %118 = vmatpush.msra.mxu1 %v51_v35  ;;  %139 = vmatpush.msra.mxu2 %v66_v37  ;;  %v169_v5 = vld [vmem:[%s571_s3] sm:$0xff]  ;;  %v225_v6 = vld [vmem:[%s574_s5 + $0x78] sm:$0xff]  ;;  %v224_v7 = vld [vmem:[%s574_s5 + $0x70] sm:$0xff] }
  0x19   :  { %99 = vmatpush.msra.mxu0 %v34_v38  ;;  %193 = vmatpush.msrb.mxu3 %v180_v52  ;;  %v223_v8 = vld [vmem:[%s574_s5 + $0x68] sm:$0xff]  ;;  %v222_v9 = vld [vmem:[%s574_s5 + $0x60] sm:$0xff]  ;;  %v221_v10 = vld [vmem:[%s574_s5 + $0x58] sm:$0xff] }
  0x1a   :  { %119 = vmatpush.msra.mxu1 %v50_v39  ;;  %140 = vmatpush.msra.mxu2 %v65_v41  ;;  %v220_v11 = vld [vmem:[%s574_s5 + $0x50] sm:$0xff]  ;;  %v219_v12 = vld [vmem:[%s574_s5 + $0x48] sm:$0xff]  ;;  %v218_v13 = vld [vmem:[%s574_s5 + $0x40] sm:$0xff] }
  0x1b   :  { %100 = vmatpush.msra.mxu0 %v33_v42  ;;  %194 = vmatpush.msrb.mxu3 %v179_v58  ;;  %v217_v14 = vld [vmem:[%s574_s5 + $0x38] sm:$0xff]  ;;  %v256_v15 = vld [vmem:[%s572_s2] ss:$0 sm:$0xff]  ;;  %v216_v16 = vld [vmem:[%s574_s5 + $0x30] sm:$0xff] }
  0x1c   :  { %120 = vmatpush.msra.mxu1 %v49_v43  ;;  %141 = vmatpush.msra.mxu2 %v64_v45  ;;  %v215_v17 = vld [vmem:[%s574_s5 + $0x28] sm:$0xff]  ;;  %v214_v20 = vld [vmem:[%s574_s5 + $0x20] sm:$0xff]  ;;  %v213_v23 = vld [vmem:[%s574_s5 + $0x18] sm:$0xff] }
  0x1d   :  { %101 = vmatpush.msra.mxu0 %v32_v46  ;;  %195 = vmatpush.msrb.mxu3 %v178_v60  ;;  %v212_v29 = vld [vmem:[%s574_s5 + $0x10] sm:$0xff]  ;;  %v211_v30 = vld [vmem:[%s574_s5 + $0x8] sm:$0xff]  ;;  %v210_v31 = vld [vmem:[%s574_s5] sm:$0xff] }
  0x1e   :  { %121 = vmatpush.msra.mxu1 %v48_v47  ;;  %142 = vmatpush.msra.mxu2 %v63_v49  ;;  %v257_v32 = vld [vmem:[%s573_s4] ss:$0 sm:$0xff] }
  0x1f   :  { %102 = vmatpush.msra.mxu0 %v31_v50  ;;  %196 = vmatpush.msrb.mxu3 %v177_v61  ;;  %v258_v36 = vld [vmem:[%s575_s6] ss:$0 sm:$0xff] }
  0x20   :  { %122 = vmatpush.msra.mxu1 %v47_v51  ;;  %143 = vmatpush.msra.mxu2 %v62_v53 }
  0x21   :  { %103 = vmatpush.msra.mxu0 %v30_v54  ;;  %144 = vmatmul.f32.vlgmr.msra.gmra.mxu2 %v28_v55 }
  0x22   :  { %104 = vmatmul.f32.vlgmr.msra.gmra.mxu0 %v26_v56  ;;  %123 = vmatpush.msra.mxu1 %v46_v57 }
  0x23   :  { %124 = vmatmul.f32.vlgmr.msra.gmra.mxu1 %v27_v59  ;;  %197 = vmatpush.msrb.mxu3 %v176_v62 }
  0x24   :  { %230 = vmatpush.msrb.mxu0 %v225_v6 }
  0x25   :  { %198 = vmatpush.msrb.mxu3 %v175_v63 }
  0x26   :  { %231 = vmatpush.msrb.mxu0 %v224_v7 }
  0x27   :  { %199 = vmatpush.msrb.mxu3 %v174_v0 }
  0x28   :  { %232 = vmatpush.msrb.mxu0 %v223_v8 }
  0x29   :  { %200 = vmatpush.msrb.mxu3 %v173_v1 }
  0x2a   :  { %233 = vmatpush.msrb.mxu0 %v222_v9 }
  0x2b   :  { %201 = vmatpush.msrb.mxu3 %v172_v2 }
  0x2c   :  { %234 = vmatpush.msrb.mxu0 %v221_v10 }
  0x2d   :  { %202 = vmatpush.msrb.mxu3 %v171_v3 }
  0x2e   :  { %235 = vmatpush.msrb.mxu0 %v220_v11 }
  0x2f   :  { %203 = vmatpush.msrb.mxu3 %v170_v4 }
  0x30   :  { %236 = vmatpush.msrb.mxu0 %v219_v12 }
  0x31   :  { %204 = vmatpush.msrb.mxu3 %v169_v5 }
  0x32   :  { %237 = vmatpush.msrb.mxu0 %v218_v13 }
  0x34   :  { %238 = vmatpush.msrb.mxu0 %v217_v14 }
  0x36   :  { %239 = vmatpush.msrb.mxu0 %v216_v16 }
  0x38   :  { %240 = vmatpush.msrb.mxu0 %v215_v17 }
  0x3a   :  { %241 = vmatpush.msrb.mxu0 %v214_v20 }
  0x3c   :  { %242 = vmatpush.msrb.mxu0 %v213_v23 }
  0x3e   :  { %243 = vmatpush.msrb.mxu0 %v212_v29 }
  0x40   :  { %244 = vmatpush.msrb.mxu0 %v211_v30 }
  0x42   :  { %245 = vmatpush.msrb.mxu0 %v210_v31 }
  0x92   :  { %v165_v25 = vpop.f32.mrf.mxu3 }
  0x9f   :  { %v105_v18 = vpop.f32.mrf.mxu0 }
  0xa0   :  { %v106_v19 = vadd.f32 %v256_v15, %v105_v18  ;;  %v125_v21 = vpop.f32.mrf.mxu1 }
  0xa2   :  { %v126_v22 = vadd.f32 %v125_v21, %v106_v19 }
  0xa4   :  { %v145_v24 = vpop.f32.mrf.mxu2 }
  0xa5   :  { %v146_v26 = vadd.f32 %v145_v24, %v126_v22 }
  0xa7   :  { %v166_v27 = vadd.f32 %v165_v25, %v146_v26 }
  0xa9   :  { %v168_v28 = vmax.f32 %v166_v27, 0.0 }
  0xab   :  { %205 = vmatmul.f32.vlgmr.msrb.gmra.mxu3 %v168_v28 }
 0x12e   :  { %v206_v33 = vpop.f32.mrf.mxu3 }
 0x12f   :  { %v207_v34 = vadd.f32 %v257_v32, %v206_v33 }
 0x131   :  { %v209_v35 = vmax.f32 %v207_v34, 0.0 }
 0x133   :  { %246 = vmatmul.f32.vlgmr.msrb.gmra.mxu0 %v209_v35 }
 0x1b0   :  { %v247_v37 = vpop.f32.mrf.mxu0 }
 0x1b1   :  { %v248_v38 = vadd.f32 %v258_v36, %v247_v37 }
 0x1b3   :  { %250 = vst [vmem:[%s576_s7] sm:$0xff] %v248_v38 }

</bundles_post_ra>
